<compile_context>
chip_gen: v5e
topology: v5e:2x2
jax: 0.10.0
libtpu: 0.0.40
codegen_flags: <defaults>
</compile_context>

<pallas_src>
import functools

import numpy as np
import jax
import jax.numpy as jnp
from jax import lax
from jax.experimental import pallas as pl
from jax.experimental.pallas import tpu as pltpu


_LANE = 128  # lane-aligned halo size for the flattened-spatial zero padding


# ------------------------------------------------------------------
# In-kernel building blocks
# ------------------------------------------------------------------

def _pw_vpu(x, w, b, relu6):
    """1x1 conv (+ folded BN, optional ReLU6) as unrolled VPU multiply-adds.

    x: (Cin, R)   channels on sublanes, flattened spatial on lanes
    w: (Cout, Cin)  BN scale already folded into the weights
    b: (Cout, 1)
    """
    cout, cin = w.shape
    r = x.shape[1]
    acc = jnp.zeros((cout, r), jnp.float32)
    for ci in range(cin):                        # Cin <= 32 -> fully unrolled on the VPU
        acc = acc + w[:, ci:ci + 1] * x[ci:ci + 1, :]
    y = acc + b
    if relu6:
        y = jnp.clip(y, 0.0, 6.0)
    return y


def _dw3x3_flat(pad_ref, x, k, b, W):
    """3x3 depthwise conv (stride 1, padding 1) + folded BN + ReLU6 on flattened spatial.

    pad_ref: (C, R + 2*halo) VMEM scratch, halo >= W+1 and a multiple of 128
    x: (C, R) with R = H*W flattened row-major;  k: (C, 9) folded taps;  b: (C, 1)

    Row out-of-bounds taps land in the zero halo of the scratch; column out-of-bounds
    taps (including the halo "leak" corners) are killed by the column masks.
    """
    C, R = x.shape
    lp = (pad_ref.shape[1] - R) // 2            # lane-aligned left halo

    pad_ref[...] = jnp.zeros(pad_ref.shape, jnp.float32)
    pad_ref[:, lp:lp + R] = x                   # aligned interior store

    col = lax.broadcasted_iota(jnp.int32, (1, R), 1) % W
    acc = jnp.zeros((C, R), jnp.float32)
    for di in (-1, 0, 1):
        for dj in (-1, 0, 1):
            t = 3 * (di + 1) + (dj + 1)
            start = lp + di * W + dj
            shifted = pad_ref[:, start:start + R]       # lane-axis shifted read
            if dj == -1:
                shifted = jnp.where(col >= 1, shifted, 0.0)
            elif dj == 1:
                shifted = jnp.where(col <= W - 2, shifted, 0.0)
            acc = acc + shifted * k[:, t:t + 1]
    return jnp.clip(acc + b, 0.0, 6.0)


def _stage_kernel(x_ref,
                  w1_ref, b1_ref, k1_ref, kb1_ref, s_ref, w2_ref, b2_ref,
                  w3_ref, b3_ref, k2_ref, kb2_ref, w4_ref, b4_ref,
                  o_ref, pad1_ref, pad2_ref, *, W1, W2):
    """Whole 2-block stage for one batch element; all intermediates live in VMEM."""
    x = x_ref[0].astype(jnp.float32)                                   # (Cin, H*W)

    # ---- block 1: 1x1 expand + ReLU6 -> dw3x3 stride 2 + ReLU6 -> 1x1 project ----
    h1 = _pw_vpu(x, w1_ref[...], b1_ref[...], relu6=True)              # (hid1, H*W)
    d1 = _dw3x3_flat(pad1_ref, h1, k1_ref[...], kb1_ref[...], W1)      # stride-1 dw
    # stride-2: pick the (2ho, 2wo) positions via a 0/1 selection matmul (stays in VMEM)
    d1 = jnp.dot(d1, s_ref[...], preferred_element_type=jnp.float32)   # (hid1, Ho*Wo)
    m1 = _pw_vpu(d1, w2_ref[...], b2_ref[...], relu6=False)            # (Cmid, Ho*Wo)

    # ---- block 2: 1x1 expand + ReLU6 -> dw3x3 stride 1 + ReLU6 -> 1x1 project ----
    h2 = _pw_vpu(m1, w3_ref[...], b3_ref[...], relu6=True)             # (hid2, Ho*Wo)
    d2 = _dw3x3_flat(pad2_ref, h2, k2_ref[...], kb2_ref[...], W2)
    y = _pw_vpu(d2, w4_ref[...], b4_ref[...], relu6=False)             # (Cout, Ho*Wo)
    # no residual in either block (block1: stride 2, block2: inp != oup), as in torchvision

    o_ref[0] = y.astype(o_ref.dtype)


# ------------------------------------------------------------------
# Wrapper: fold BN, build specs, single pallas_call
# ------------------------------------------------------------------

def _fold_pw(w, scale, bias):
    """(Cin,Cout) conv weight + BN -> (Cout,Cin) folded weight, (Cout,1) bias."""
    return (jnp.asarray((w * scale[None, :]).T, jnp.float32),
            jnp.asarray(bias[:, None], jnp.float32))


def _fold_dw(w, scale, bias):
    """(3,3,C) depthwise weight + BN -> (C,9) folded taps, (C,1) bias."""
    k = (w * scale[None, None, :]).reshape(9, -1).T
    return jnp.asarray(k, jnp.float32), jnp.asarray(bias[:, None], jnp.float32)


def _subsample_matrix(H, W, stride):
    """0/1 matrix S (H*W, Ho*Wo) so that y_flat @ S == y[::stride, ::stride] flattened."""
    Ho = (H - 1) // stride + 1
    Wo = (W - 1) // stride + 1
    S = np.zeros((H * W, Ho * Wo), np.float32)
    for ho in range(Ho):
        for wo in range(Wo):
            S[stride * ho * W + stride * wo, ho * Wo + wo] = 1.0
    return jnp.asarray(S)


def _halo(W):
    return pl.cdiv(W + 1, _LANE) * _LANE


def depth_stream_stage(x_nchw, params):
    """PyTorch-equivalent DepthStreamStage forward. Input NCHW, output NCHW."""
    N, Cin, H, W = x_nchw.shape
    p1, p2 = params["block1"], params["block2"]
    hid1 = p1["pw_w"].shape[1]
    hid2 = p2["pw_w"].shape[1]
    cout = p2["pwl_w"].shape[1]

    Ho = (H - 1) // 2 + 1
    Wo = (W - 1) // 2 + 1
    R1, R2 = H * W, Ho * Wo

    w1, b1 = _fold_pw(p1["pw_w"], p1["pw_s"], p1["pw_b"])
    k1, kb1 = _fold_dw(p1["dw_w"], p1["dw_s"], p1["dw_b"])
    w2, b2 = _fold_pw(p1["pwl_w"], p1["pwl_s"], p1["pwl_b"])
    w3, b3 = _fold_pw(p2["pw_w"], p2["pw_s"], p2["pw_b"])
    k2, kb2 = _fold_dw(p2["dw_w"], p2["dw_s"], p2["dw_b"])
    w4, b4 = _fold_pw(p2["pwl_w"], p2["pwl_s"], p2["pwl_b"])
    S = _subsample_matrix(H, W, 2)

    x3 = x_nchw.reshape(N, Cin, R1)                 # NCHW -> (N, C, H*W): free, no transpose

    operands = (w1, b1, k1, kb1, S, w2, b2, w3, b3, k2, kb2, w4, b4)
    resident = [pl.BlockSpec(a.shape, lambda n: (0, 0)) for a in operands]

    out = pl.pallas_call(
        functools.partial(_stage_kernel, W1=W, W2=Wo),
        out_shape=jax.ShapeDtypeStruct((N, cout, R2), jnp.float32),
        grid=(N,),
        in_specs=[pl.BlockSpec((1, Cin, R1), lambda n: (n, 0, 0))] + resident,
        out_specs=pl.BlockSpec((1, cout, R2), lambda n: (n, 0, 0)),
        scratch_shapes=[
            pltpu.VMEM((hid1, R1 + 2 * _halo(W)), jnp.float32),    # haloed block-1 dw input
            pltpu.VMEM((hid2, R2 + 2 * _halo(Wo)), jnp.float32),   # haloed block-2 dw input
        ],
        compiler_params=pltpu.CompilerParams(
            dimension_semantics=("parallel",),
            vmem_limit_bytes=32 * 1024 * 1024,
        ),
    )(x3, *operands)
    return out.reshape(N, cout, Ho, Wo)


# ------------------------------------------------------------------
# Deterministic parameter initialization (eval-mode BN folded to scale/bias)
# ------------------------------------------------------------------

def _conv_bn_params(key, cin, cout, depthwise=False):
    k1, k2, k3, k4, k5 = jax.random.split(key, 5)
    if depthwise:
        w = 0.1 * jax.random.normal(k1, (3, 3, cout), jnp.float32)
    else:
        w = 0.1 * jax.random.normal(k1, (cin, cout), jnp.float32)
    gamma = 1.0 + 0.1 * jax.random.normal(k2, (cout,), jnp.float32)
    beta = 0.1 * jax.random.normal(k3, (cout,), jnp.float32)
    mean = 0.1 * jax.random.normal(k4, (cout,), jnp.float32)
    var = 1.0 + jnp.abs(jax.random.normal(k5, (cout,), jnp.float32))
    scale = gamma / jnp.sqrt(var + 1e-5)
    bias = beta - mean * scale
    return w, scale, bias


def _block_params(key, inp, oup, expand_ratio):
    hidden = int(round(inp * expand_ratio))
    k1, k2, k3 = jax.random.split(key, 3)
    pw_w, pw_s, pw_b = _conv_bn_params(k1, inp, hidden)
    dw_w, dw_s, dw_b = _conv_bn_params(k2, hidden, hidden, depthwise=True)
    pwl_w, pwl_s, pwl_b = _conv_bn_params(k3, hidden, oup)
    return dict(pw_w=pw_w, pw_s=pw_s, pw_b=pw_b,
                dw_w=dw_w, dw_s=dw_s, dw_b=dw_b,
                pwl_w=pwl_w, pwl_s=pwl_s, pwl_b=pwl_b)


def init_stage_params(key, in_channels, out_channels, M=4):
    k1, k2 = jax.random.split(key)
    return {
        "block1": _block_params(k1, in_channels, out_channels // M, M),
        "block2": _block_params(k2, out_channels // M, out_channels, M),
    }


# ------------------------------------------------------------------
# Pure-JAX reference (for correctness check)
# ------------------------------------------------------------------

def _ref_block(x, p, stride):
    y = jnp.einsum("nhwc,cd->nhwd", x, p["pw_w"]) * p["pw_s"] + p["pw_b"]
    y = jnp.clip(y, 0.0, 6.0)
    C = y.shape[-1]
    wd = p["dw_w"][:, :, None, :]                      # (3,3,1,C) HWIO
    y = lax.conv_general_dilated(
        y, wd, (stride, stride), ((1, 1), (1, 1)),
        dimension_numbers=("NHWC", "HWIO", "NHWC"), feature_group_count=C)
    y = jnp.clip(y * p["dw_s"] + p["dw_b"], 0.0, 6.0)
    y = jnp.einsum("nhwc,cd->nhwd", y, p["pwl_w"]) * p["pwl_s"] + p["pwl_b"]
    return y


def ref_depth_stream_stage(x_nchw, params):
    x = jnp.transpose(x_nchw, (0, 2, 3, 1))
    x = _ref_block(x, params["block1"], 2)
    x = _ref_block(x, params["block2"], 1)
    return jnp.transpose(x, (0, 3, 1, 2))


# ------------------------------------------------------------------

if __name__ == "__main__":
    key = jax.random.PRNGKey(0)
    kx, kp = jax.random.split(key)

    in_channels, out_channels, M = 4, 32, 4
    x = jax.random.normal(kx, (2, in_channels, 16, 16), jnp.float32)   # NCHW, like PyTorch
    params = init_stage_params(kp, in_channels, out_channels, M)

    out = jax.block_until_ready(depth_stream_stage(x, params))
    assert out.shape == (2, out_channels, 8, 8), out.shape

    ref = jax.block_until_ready(ref_depth_stream_stage(x, params))
    np.testing.assert_allclose(np.asarray(out), np.asarray(ref), rtol=1e-4, atol=1e-4)

    print("KERNEL_OK")
</pallas_src>

<mosaic_0001>
module attributes {stable_mosaic.version = 11 : i64} {
  func.func @_stage_kernel(%arg0: i32, %arg1: memref<1x4x256xf32, #tpu.memory_space<vmem>>, %arg2: memref<16x4xf32, #tpu.memory_space<vmem>>, %arg3: memref<16x1xf32, #tpu.memory_space<vmem>>, %arg4: memref<16x9xf32, #tpu.memory_space<vmem>>, %arg5: memref<16x1xf32, #tpu.memory_space<vmem>>, %arg6: memref<256x64xf32, #tpu.memory_space<vmem>>, %arg7: memref<8x16xf32, #tpu.memory_space<vmem>>, %arg8: memref<8x1xf32, #tpu.memory_space<vmem>>, %arg9: memref<32x8xf32, #tpu.memory_space<vmem>>, %arg10: memref<32x1xf32, #tpu.memory_space<vmem>>, %arg11: memref<32x9xf32, #tpu.memory_space<vmem>>, %arg12: memref<32x1xf32, #tpu.memory_space<vmem>>, %arg13: memref<32x32xf32, #tpu.memory_space<vmem>>, %arg14: memref<32x1xf32, #tpu.memory_space<vmem>>, %arg15: memref<1x32x64xf32, #tpu.memory_space<vmem>>, %arg16: memref<16x512xf32, #tpu.memory_space<vmem>>, %arg17: memref<32x320xf32, #tpu.memory_space<vmem>>) attributes {dimension_semantics = [#tpu.dimension_semantics<parallel>], iteration_bounds = array<i64: 2>, scalar_prefetch = 0 : i64, scratch_operands = 2 : i64, tpu.core_type = #tpu.core_type<tc>, window_params = [{transform_indices = @transform_0, window_bounds = array<i64: 1, 4, 256>}, {pipeline_mode = #tpu.pipeline_mode<synchronous>, transform_indices = @transform_1, window_bounds = array<i64: 16, 4>}, {pipeline_mode = #tpu.pipeline_mode<synchronous>, transform_indices = @transform_2, window_bounds = array<i64: 16, 1>}, {pipeline_mode = #tpu.pipeline_mode<synchronous>, transform_indices = @transform_3, window_bounds = array<i64: 16, 9>}, {pipeline_mode = #tpu.pipeline_mode<synchronous>, transform_indices = @transform_4, window_bounds = array<i64: 16, 1>}, {pipeline_mode = #tpu.pipeline_mode<synchronous>, transform_indices = @transform_5, window_bounds = array<i64: 256, 64>}, {pipeline_mode = #tpu.pipeline_mode<synchronous>, transform_indices = @transform_6, window_bounds = array<i64: 8, 16>}, {pipeline_mode = #tpu.pipeline_mode<synchronous>, transform_indices = @transform_7, window_bounds = array<i64: 8, 1>}, {pipeline_mode = #tpu.pipeline_mode<synchronous>, transform_indices = @transform_8, window_bounds = array<i64: 32, 8>}, {pipeline_mode = #tpu.pipeline_mode<synchronous>, transform_indices = @transform_9, window_bounds = array<i64: 32, 1>}, {pipeline_mode = #tpu.pipeline_mode<synchronous>, transform_indices = @transform_10, window_bounds = array<i64: 32, 9>}, {pipeline_mode = #tpu.pipeline_mode<synchronous>, transform_indices = @transform_11, window_bounds = array<i64: 32, 1>}, {pipeline_mode = #tpu.pipeline_mode<synchronous>, transform_indices = @transform_12, window_bounds = array<i64: 32, 32>}, {pipeline_mode = #tpu.pipeline_mode<synchronous>, transform_indices = @transform_13, window_bounds = array<i64: 32, 1>}, {transform_indices = @transform_14, window_bounds = array<i64: 1, 32, 64>}]} {
    %c0 = arith.constant 0 : index
    %c0_0 = arith.constant 0 : index
    %c0_1 = arith.constant 0 : index
    %0 = vector.load %arg1[%c0, %c0_0, %c0_1] : memref<1x4x256xf32, #tpu.memory_space<vmem>>, vector<1x4x256xf32>
    %1 = vector.shape_cast %0 : vector<1x4x256xf32> to vector<4x256xf32>
    %c0_2 = arith.constant 0 : index
    %c0_3 = arith.constant 0 : index
    %2 = vector.load %arg2[%c0_2, %c0_3] : memref<16x4xf32, #tpu.memory_space<vmem>>, vector<16x4xf32>
    %c0_4 = arith.constant 0 : index
    %c0_5 = arith.constant 0 : index
    %3 = vector.load %arg3[%c0_4, %c0_5] : memref<16x1xf32, #tpu.memory_space<vmem>>, vector<16x1xf32>
    %cst = arith.constant 0.000000e+00 : f32
    %4 = vector.broadcast %cst : f32 to vector<16x256xf32>
    %5 = vector.extract_strided_slice %2 {offsets = [0, 0], sizes = [16, 1], strides = [1, 1]} : vector<16x4xf32> to vector<16x1xf32>
    %6 = vector.extract_strided_slice %1 {offsets = [0, 0], sizes = [1, 256], strides = [1, 1]} : vector<4x256xf32> to vector<1x256xf32>
    %7 = vector.broadcast %5 : vector<16x1xf32> to vector<16x256xf32>
    %8 = vector.broadcast %6 : vector<1x256xf32> to vector<16x256xf32>
    %9 = arith.mulf %7, %8 : vector<16x256xf32>
    %10 = arith.addf %4, %9 : vector<16x256xf32>
    %11 = vector.extract_strided_slice %2 {offsets = [0, 1], sizes = [16, 1], strides = [1, 1]} : vector<16x4xf32> to vector<16x1xf32>
    %12 = vector.extract_strided_slice %1 {offsets = [1, 0], sizes = [1, 256], strides = [1, 1]} : vector<4x256xf32> to vector<1x256xf32>
    %13 = vector.broadcast %11 : vector<16x1xf32> to vector<16x256xf32>
    %14 = vector.broadcast %12 : vector<1x256xf32> to vector<16x256xf32>
    %15 = arith.mulf %13, %14 : vector<16x256xf32>
    %16 = arith.addf %10, %15 : vector<16x256xf32>
    %17 = vector.extract_strided_slice %2 {offsets = [0, 2], sizes = [16, 1], strides = [1, 1]} : vector<16x4xf32> to vector<16x1xf32>
    %18 = vector.extract_strided_slice %1 {offsets = [2, 0], sizes = [1, 256], strides = [1, 1]} : vector<4x256xf32> to vector<1x256xf32>
    %19 = vector.broadcast %17 : vector<16x1xf32> to vector<16x256xf32>
    %20 = vector.broadcast %18 : vector<1x256xf32> to vector<16x256xf32>
    %21 = arith.mulf %19, %20 : vector<16x256xf32>
    %22 = arith.addf %16, %21 : vector<16x256xf32>
    %23 = vector.extract_strided_slice %2 {offsets = [0, 3], sizes = [16, 1], strides = [1, 1]} : vector<16x4xf32> to vector<16x1xf32>
    %24 = vector.extract_strided_slice %1 {offsets = [3, 0], sizes = [1, 256], strides = [1, 1]} : vector<4x256xf32> to vector<1x256xf32>
    %25 = vector.broadcast %23 : vector<16x1xf32> to vector<16x256xf32>
    %26 = vector.broadcast %24 : vector<1x256xf32> to vector<16x256xf32>
    %27 = arith.mulf %25, %26 : vector<16x256xf32>
    %28 = arith.addf %22, %27 : vector<16x256xf32>
    %29 = vector.broadcast %3 : vector<16x1xf32> to vector<16x256xf32>
    %30 = arith.addf %28, %29 : vector<16x256xf32>
    %cst_6 = arith.constant 0.000000e+00 : f32
    %cst_7 = arith.constant 6.000000e+00 : f32
    %31 = vector.broadcast %cst_6 : f32 to vector<16x256xf32>
    %32 = arith.maximumf %31, %30 : vector<16x256xf32>
    %33 = vector.broadcast %cst_7 : f32 to vector<16x256xf32>
    %34 = arith.minimumf %33, %32 : vector<16x256xf32>
    %c0_8 = arith.constant 0 : index
    %c0_9 = arith.constant 0 : index
    %35 = vector.load %arg4[%c0_8, %c0_9] : memref<16x9xf32, #tpu.memory_space<vmem>>, vector<16x9xf32>
    %c0_10 = arith.constant 0 : index
    %c0_11 = arith.constant 0 : index
    %36 = vector.load %arg5[%c0_10, %c0_11] : memref<16x1xf32, #tpu.memory_space<vmem>>, vector<16x1xf32>
    %cst_12 = arith.constant 0.000000e+00 : f32
    %37 = vector.broadcast %cst_12 : f32 to vector<16x512xf32>
    %c0_13 = arith.constant 0 : index
    %c0_14 = arith.constant 0 : index
    %38 = vector.load %arg16[%c0_13, %c0_14] : memref<16x512xf32, #tpu.memory_space<vmem>>, vector<16x512xf32>
    tpu.vector_store %arg16[%c0_13, %c0_14], %37 {strides = array<i32>} : memref<16x512xf32, #tpu.memory_space<vmem>>, vector<16x512xf32>,
    %c0_15 = arith.constant 0 : index
    %c128 = arith.constant 128 : index
    %39 = vector.load %arg16[%c0_15, %c128] : memref<16x512xf32, #tpu.memory_space<vmem>>, vector<16x256xf32>
    tpu.vector_store %arg16[%c0_15, %c128], %34 {strides = array<i32>} : memref<16x512xf32, #tpu.memory_space<vmem>>, vector<16x256xf32>,
    %40 = tpu.iota {dimensions = array<i32: 1>} : vector<1x256xi32>
    %c16_i32 = arith.constant 16 : i32
    %c0_i32 = arith.constant 0 : i32
    %41 = arith.cmpi eq, %c16_i32, %c0_i32 : i32
    %c1_i32 = arith.constant 1 : i32
    %42 = arith.select %41, %c1_i32, %c16_i32 : i32
    %43 = vector.broadcast %42 : i32 to vector<1x256xi32>
    %44 = arith.remsi %40, %43 : vector<1x256xi32>
    %c0_i32_16 = arith.constant 0 : i32
    %45 = vector.broadcast %c0_i32_16 : i32 to vector<1x256xi32>
    %46 = arith.cmpi ne, %44, %45 : vector<1x256xi32>
    %c0_i32_17 = arith.constant 0 : i32
    %47 = vector.broadcast %c0_i32_17 : i32 to vector<1x256xi32>
    %48 = arith.cmpi slt, %44, %47 : vector<1x256xi32>
    %c0_i32_18 = arith.constant 0 : i32
    %49 = arith.cmpi slt, %42, %c0_i32_18 : i32
    %50 = vector.broadcast %49 : i1 to vector<1x256xi1>
    %51 = vector.broadcast %50 : vector<1x256xi1> to vector<1x256xi1>
    %52 = arith.xori %48, %51 : vector<1x256xi1>
    %53 = arith.andi %52, %46 : vector<1x256xi1>
    %54 = vector.broadcast %42 : i32 to vector<1x256xi32>
    %55 = arith.addi %44, %54 : vector<1x256xi32>
    %56 = arith.select %53, %55, %44 : vector<1x256xi1>, vector<1x256xi32>
    %cst_19 = arith.constant 0.000000e+00 : f32
    %57 = vector.broadcast %cst_19 : f32 to vector<16x256xf32>
    %c0_20 = arith.constant 0 : index
    %c111 = arith.constant 111 : index
    %58 = vector.load %arg16[%c0_20, %c111] : memref<16x512xf32, #tpu.memory_space<vmem>>, vector<16x256xf32>
    %c1_i32_21 = arith.constant 1 : i32
    %59 = vector.broadcast %c1_i32_21 : i32 to vector<1x256xi32>
    %60 = arith.cmpi sge, %56, %59 : vector<1x256xi32>
    %cst_22 = arith.constant 0.000000e+00 : f32
    %61 = vector.shape_cast %60 : vector<1x256xi1> to vector<1x256xi1>
    %62 = vector.broadcast %61 : vector<1x256xi1> to vector<16x256xi1>
    %63 = vector.broadcast %cst_22 : f32 to vector<16x256xf32>
    %64 = arith.select %62, %58, %63 : vector<16x256xi1>, vector<16x256xf32>
    %65 = vector.extract_strided_slice %35 {offsets = [0, 0], sizes = [16, 1], strides = [1, 1]} : vector<16x9xf32> to vector<16x1xf32>
    %66 = vector.broadcast %65 : vector<16x1xf32> to vector<16x256xf32>
    %67 = arith.mulf %64, %66 : vector<16x256xf32>
    %68 = arith.addf %57, %67 : vector<16x256xf32>
    %c0_23 = arith.constant 0 : index
    %c112 = arith.constant 112 : index
    %69 = vector.load %arg16[%c0_23, %c112] : memref<16x512xf32, #tpu.memory_space<vmem>>, vector<16x256xf32>
    %70 = vector.extract_strided_slice %35 {offsets = [0, 1], sizes = [16, 1], strides = [1, 1]} : vector<16x9xf32> to vector<16x1xf32>
    %71 = vector.broadcast %70 : vector<16x1xf32> to vector<16x256xf32>
    %72 = arith.mulf %69, %71 : vector<16x256xf32>
    %73 = arith.addf %68, %72 : vector<16x256xf32>
    %c0_24 = arith.constant 0 : index
    %c113 = arith.constant 113 : index
    %74 = vector.load %arg16[%c0_24, %c113] : memref<16x512xf32, #tpu.memory_space<vmem>>, vector<16x256xf32>
    %c14_i32 = arith.constant 14 : i32
    %75 = vector.broadcast %c14_i32 : i32 to vector<1x256xi32>
    %76 = arith.cmpi sle, %56, %75 : vector<1x256xi32>
    %cst_25 = arith.constant 0.000000e+00 : f32
    %77 = vector.shape_cast %76 : vector<1x256xi1> to vector<1x256xi1>
    %78 = vector.broadcast %77 : vector<1x256xi1> to vector<16x256xi1>
    %79 = vector.broadcast %cst_25 : f32 to vector<16x256xf32>
    %80 = arith.select %78, %74, %79 : vector<16x256xi1>, vector<16x256xf32>
    %81 = vector.extract_strided_slice %35 {offsets = [0, 2], sizes = [16, 1], strides = [1, 1]} : vector<16x9xf32> to vector<16x1xf32>
    %82 = vector.broadcast %81 : vector<16x1xf32> to vector<16x256xf32>
    %83 = arith.mulf %80, %82 : vector<16x256xf32>
    %84 = arith.addf %73, %83 : vector<16x256xf32>
    %c0_26 = arith.constant 0 : index
    %c127 = arith.constant 127 : index
    %85 = vector.load %arg16[%c0_26, %c127] : memref<16x512xf32, #tpu.memory_space<vmem>>, vector<16x256xf32>
    %c1_i32_27 = arith.constant 1 : i32
    %86 = vector.broadcast %c1_i32_27 : i32 to vector<1x256xi32>
    %87 = arith.cmpi sge, %56, %86 : vector<1x256xi32>
    %cst_28 = arith.constant 0.000000e+00 : f32
    %88 = vector.shape_cast %87 : vector<1x256xi1> to vector<1x256xi1>
    %89 = vector.broadcast %88 : vector<1x256xi1> to vector<16x256xi1>
    %90 = vector.broadcast %cst_28 : f32 to vector<16x256xf32>
    %91 = arith.select %89, %85, %90 : vector<16x256xi1>, vector<16x256xf32>
    %92 = vector.extract_strided_slice %35 {offsets = [0, 3], sizes = [16, 1], strides = [1, 1]} : vector<16x9xf32> to vector<16x1xf32>
    %93 = vector.broadcast %92 : vector<16x1xf32> to vector<16x256xf32>
    %94 = arith.mulf %91, %93 : vector<16x256xf32>
    %95 = arith.addf %84, %94 : vector<16x256xf32>
    %c0_29 = arith.constant 0 : index
    %c128_30 = arith.constant 128 : index
    %96 = vector.load %arg16[%c0_29, %c128_30] : memref<16x512xf32, #tpu.memory_space<vmem>>, vector<16x256xf32>
    %97 = vector.extract_strided_slice %35 {offsets = [0, 4], sizes = [16, 1], strides = [1, 1]} : vector<16x9xf32> to vector<16x1xf32>
    %98 = vector.broadcast %97 : vector<16x1xf32> to vector<16x256xf32>
    %99 = arith.mulf %96, %98 : vector<16x256xf32>
    %100 = arith.addf %95, %99 : vector<16x256xf32>
    %c0_31 = arith.constant 0 : index
    %c129 = arith.constant 129 : index
    %101 = vector.load %arg16[%c0_31, %c129] : memref<16x512xf32, #tpu.memory_space<vmem>>, vector<16x256xf32>
    %c14_i32_32 = arith.constant 14 : i32
    %102 = vector.broadcast %c14_i32_32 : i32 to vector<1x256xi32>
    %103 = arith.cmpi sle, %56, %102 : vector<1x256xi32>
    %cst_33 = arith.constant 0.000000e+00 : f32
    %104 = vector.shape_cast %103 : vector<1x256xi1> to vector<1x256xi1>
    %105 = vector.broadcast %104 : vector<1x256xi1> to vector<16x256xi1>
    %106 = vector.broadcast %cst_33 : f32 to vector<16x256xf32>
    %107 = arith.select %105, %101, %106 : vector<16x256xi1>, vector<16x256xf32>
    %108 = vector.extract_strided_slice %35 {offsets = [0, 5], sizes = [16, 1], strides = [1, 1]} : vector<16x9xf32> to vector<16x1xf32>
    %109 = vector.broadcast %108 : vector<16x1xf32> to vector<16x256xf32>
    %110 = arith.mulf %107, %109 : vector<16x256xf32>
    %111 = arith.addf %100, %110 : vector<16x256xf32>
    %c0_34 = arith.constant 0 : index
    %c143 = arith.constant 143 : index
    %112 = vector.load %arg16[%c0_34, %c143] : memref<16x512xf32, #tpu.memory_space<vmem>>, vector<16x256xf32>
    %c1_i32_35 = arith.constant 1 : i32
    %113 = vector.broadcast %c1_i32_35 : i32 to vector<1x256xi32>
    %114 = arith.cmpi sge, %56, %113 : vector<1x256xi32>
    %cst_36 = arith.constant 0.000000e+00 : f32
    %115 = vector.shape_cast %114 : vector<1x256xi1> to vector<1x256xi1>
    %116 = vector.broadcast %115 : vector<1x256xi1> to vector<16x256xi1>
    %117 = vector.broadcast %cst_36 : f32 to vector<16x256xf32>
    %118 = arith.select %116, %112, %117 : vector<16x256xi1>, vector<16x256xf32>
    %119 = vector.extract_strided_slice %35 {offsets = [0, 6], sizes = [16, 1], strides = [1, 1]} : vector<16x9xf32> to vector<16x1xf32>
    %120 = vector.broadcast %119 : vector<16x1xf32> to vector<16x256xf32>
    %121 = arith.mulf %118, %120 : vector<16x256xf32>
    %122 = arith.addf %111, %121 : vector<16x256xf32>
    %c0_37 = arith.constant 0 : index
    %c144 = arith.constant 144 : index
    %123 = vector.load %arg16[%c0_37, %c144] : memref<16x512xf32, #tpu.memory_space<vmem>>, vector<16x256xf32>
    %124 = vector.extract_strided_slice %35 {offsets = [0, 7], sizes = [16, 1], strides = [1, 1]} : vector<16x9xf32> to vector<16x1xf32>
    %125 = vector.broadcast %124 : vector<16x1xf32> to vector<16x256xf32>
    %126 = arith.mulf %123, %125 : vector<16x256xf32>
    %127 = arith.addf %122, %126 : vector<16x256xf32>
    %c0_38 = arith.constant 0 : index
    %c145 = arith.constant 145 : index
    %128 = vector.load %arg16[%c0_38, %c145] : memref<16x512xf32, #tpu.memory_space<vmem>>, vector<16x256xf32>
    %c14_i32_39 = arith.constant 14 : i32
    %129 = vector.broadcast %c14_i32_39 : i32 to vector<1x256xi32>
    %130 = arith.cmpi sle, %56, %129 : vector<1x256xi32>
    %cst_40 = arith.constant 0.000000e+00 : f32
    %131 = vector.shape_cast %130 : vector<1x256xi1> to vector<1x256xi1>
    %132 = vector.broadcast %131 : vector<1x256xi1> to vector<16x256xi1>
    %133 = vector.broadcast %cst_40 : f32 to vector<16x256xf32>
    %134 = arith.select %132, %128, %133 : vector<16x256xi1>, vector<16x256xf32>
    %135 = vector.extract_strided_slice %35 {offsets = [0, 8], sizes = [16, 1], strides = [1, 1]} : vector<16x9xf32> to vector<16x1xf32>
    %136 = vector.broadcast %135 : vector<16x1xf32> to vector<16x256xf32>
    %137 = arith.mulf %134, %136 : vector<16x256xf32>
    %138 = arith.addf %127, %137 : vector<16x256xf32>
    %139 = vector.broadcast %36 : vector<16x1xf32> to vector<16x256xf32>
    %140 = arith.addf %138, %139 : vector<16x256xf32>
    %cst_41 = arith.constant 0.000000e+00 : f32
    %cst_42 = arith.constant 6.000000e+00 : f32
    %141 = vector.broadcast %cst_41 : f32 to vector<16x256xf32>
    %142 = arith.maximumf %141, %140 : vector<16x256xf32>
    %143 = vector.broadcast %cst_42 : f32 to vector<16x256xf32>
    %144 = arith.minimumf %143, %142 : vector<16x256xf32>
    %c0_43 = arith.constant 0 : index
    %c0_44 = arith.constant 0 : index
    %145 = vector.load %arg6[%c0_43, %c0_44] : memref<256x64xf32, #tpu.memory_space<vmem>>, vector<256x64xf32>
    %cst_45 = arith.constant dense<0.000000e+00> : vector<16x64xf32>
    %146 = tpu.matmul %144, %145, %cst_45 {dimension_numbers = #tpu.dot_dimension_numbers<[1], [0], [0], [1], [0, 0, 1, 1], [], []>} : vector<16x256xf32>, vector<256x64xf32>, vector<16x64xf32> -> vector<16x64xf32>
    %c0_46 = arith.constant 0 : index
    %c0_47 = arith.constant 0 : index
    %147 = vector.load %arg7[%c0_46, %c0_47] : memref<8x16xf32, #tpu.memory_space<vmem>>, vector<8x16xf32>
    %c0_48 = arith.constant 0 : index
    %c0_49 = arith.constant 0 : index
    %148 = vector.load %arg8[%c0_48, %c0_49] : memref<8x1xf32, #tpu.memory_space<vmem>>, vector<8x1xf32>
    %cst_50 = arith.constant 0.000000e+00 : f32
    %149 = vector.broadcast %cst_50 : f32 to vector<8x64xf32>
    %150 = vector.extract_strided_slice %147 {offsets = [0, 0], sizes = [8, 1], strides = [1, 1]} : vector<8x16xf32> to vector<8x1xf32>
    %151 = vector.extract_strided_slice %146 {offsets = [0, 0], sizes = [1, 64], strides = [1, 1]} : vector<16x64xf32> to vector<1x64xf32>
    %152 = vector.broadcast %150 : vector<8x1xf32> to vector<8x64xf32>
    %153 = vector.broadcast %151 : vector<1x64xf32> to vector<8x64xf32>
    %154 = arith.mulf %152, %153 : vector<8x64xf32>
    %155 = arith.addf %149, %154 : vector<8x64xf32>
    %156 = vector.extract_strided_slice %147 {offsets = [0, 1], sizes = [8, 1], strides = [1, 1]} : vector<8x16xf32> to vector<8x1xf32>
    %157 = vector.extract_strided_slice %146 {offsets = [1, 0], sizes = [1, 64], strides = [1, 1]} : vector<16x64xf32> to vector<1x64xf32>
    %158 = vector.broadcast %156 : vector<8x1xf32> to vector<8x64xf32>
    %159 = vector.broadcast %157 : vector<1x64xf32> to vector<8x64xf32>
    %160 = arith.mulf %158, %159 : vector<8x64xf32>
    %161 = arith.addf %155, %160 : vector<8x64xf32>
    %162 = vector.extract_strided_slice %147 {offsets = [0, 2], sizes = [8, 1], strides = [1, 1]} : vector<8x16xf32> to vector<8x1xf32>
    %163 = vector.extract_strided_slice %146 {offsets = [2, 0], sizes = [1, 64], strides = [1, 1]} : vector<16x64xf32> to vector<1x64xf32>
    %164 = vector.broadcast %162 : vector<8x1xf32> to vector<8x64xf32>
    %165 = vector.broadcast %163 : vector<1x64xf32> to vector<8x64xf32>
    %166 = arith.mulf %164, %165 : vector<8x64xf32>
    %167 = arith.addf %161, %166 : vector<8x64xf32>
    %168 = vector.extract_strided_slice %147 {offsets = [0, 3], sizes = [8, 1], strides = [1, 1]} : vector<8x16xf32> to vector<8x1xf32>
    %169 = vector.extract_strided_slice %146 {offsets = [3, 0], sizes = [1, 64], strides = [1, 1]} : vector<16x64xf32> to vector<1x64xf32>
    %170 = vector.broadcast %168 : vector<8x1xf32> to vector<8x64xf32>
    %171 = vector.broadcast %169 : vector<1x64xf32> to vector<8x64xf32>
    %172 = arith.mulf %170, %171 : vector<8x64xf32>
    %173 = arith.addf %167, %172 : vector<8x64xf32>
    %174 = vector.extract_strided_slice %147 {offsets = [0, 4], sizes = [8, 1], strides = [1, 1]} : vector<8x16xf32> to vector<8x1xf32>
    %175 = vector.extract_strided_slice %146 {offsets = [4, 0], sizes = [1, 64], strides = [1, 1]} : vector<16x64xf32> to vector<1x64xf32>
    %176 = vector.broadcast %174 : vector<8x1xf32> to vector<8x64xf32>
    %177 = vector.broadcast %175 : vector<1x64xf32> to vector<8x64xf32>
    %178 = arith.mulf %176, %177 : vector<8x64xf32>
    %179 = arith.addf %173, %178 : vector<8x64xf32>
    %180 = vector.extract_strided_slice %147 {offsets = [0, 5], sizes = [8, 1], strides = [1, 1]} : vector<8x16xf32> to vector<8x1xf32>
    %181 = vector.extract_strided_slice %146 {offsets = [5, 0], sizes = [1, 64], strides = [1, 1]} : vector<16x64xf32> to vector<1x64xf32>
    %182 = vector.broadcast %180 : vector<8x1xf32> to vector<8x64xf32>
    %183 = vector.broadcast %181 : vector<1x64xf32> to vector<8x64xf32>
    %184 = arith.mulf %182, %183 : vector<8x64xf32>
    %185 = arith.addf %179, %184 : vector<8x64xf32>
    %186 = vector.extract_strided_slice %147 {offsets = [0, 6], sizes = [8, 1], strides = [1, 1]} : vector<8x16xf32> to vector<8x1xf32>
    %187 = vector.extract_strided_slice %146 {offsets = [6, 0], sizes = [1, 64], strides = [1, 1]} : vector<16x64xf32> to vector<1x64xf32>
    %188 = vector.broadcast %186 : vector<8x1xf32> to vector<8x64xf32>
    %189 = vector.broadcast %187 : vector<1x64xf32> to vector<8x64xf32>
    %190 = arith.mulf %188, %189 : vector<8x64xf32>
    %191 = arith.addf %185, %190 : vector<8x64xf32>
    %192 = vector.extract_strided_slice %147 {offsets = [0, 7], sizes = [8, 1], strides = [1, 1]} : vector<8x16xf32> to vector<8x1xf32>
    %193 = vector.extract_strided_slice %146 {offsets = [7, 0], sizes = [1, 64], strides = [1, 1]} : vector<16x64xf32> to vector<1x64xf32>
    %194 = vector.broadcast %192 : vector<8x1xf32> to vector<8x64xf32>
    %195 = vector.broadcast %193 : vector<1x64xf32> to vector<8x64xf32>
    %196 = arith.mulf %194, %195 : vector<8x64xf32>
    %197 = arith.addf %191, %196 : vector<8x64xf32>
    %198 = vector.extract_strided_slice %147 {offsets = [0, 8], sizes = [8, 1], strides = [1, 1]} : vector<8x16xf32> to vector<8x1xf32>
    %199 = vector.extract_strided_slice %146 {offsets = [8, 0], sizes = [1, 64], strides = [1, 1]} : vector<16x64xf32> to vector<1x64xf32>
    %200 = vector.broadcast %198 : vector<8x1xf32> to vector<8x64xf32>
    %201 = vector.broadcast %199 : vector<1x64xf32> to vector<8x64xf32>
    %202 = arith.mulf %200, %201 : vector<8x64xf32>
    %203 = arith.addf %197, %202 : vector<8x64xf32>
    %204 = vector.extract_strided_slice %147 {offsets = [0, 9], sizes = [8, 1], strides = [1, 1]} : vector<8x16xf32> to vector<8x1xf32>
    %205 = vector.extract_strided_slice %146 {offsets = [9, 0], sizes = [1, 64], strides = [1, 1]} : vector<16x64xf32> to vector<1x64xf32>
    %206 = vector.broadcast %204 : vector<8x1xf32> to vector<8x64xf32>
    %207 = vector.broadcast %205 : vector<1x64xf32> to vector<8x64xf32>
    %208 = arith.mulf %206, %207 : vector<8x64xf32>
    %209 = arith.addf %203, %208 : vector<8x64xf32>
    %210 = vector.extract_strided_slice %147 {offsets = [0, 10], sizes = [8, 1], strides = [1, 1]} : vector<8x16xf32> to vector<8x1xf32>
    %211 = vector.extract_strided_slice %146 {offsets = [10, 0], sizes = [1, 64], strides = [1, 1]} : vector<16x64xf32> to vector<1x64xf32>
    %212 = vector.broadcast %210 : vector<8x1xf32> to vector<8x64xf32>
    %213 = vector.broadcast %211 : vector<1x64xf32> to vector<8x64xf32>
    %214 = arith.mulf %212, %213 : vector<8x64xf32>
    %215 = arith.addf %209, %214 : vector<8x64xf32>
    %216 = vector.extract_strided_slice %147 {offsets = [0, 11], sizes = [8, 1], strides = [1, 1]} : vector<8x16xf32> to vector<8x1xf32>
    %217 = vector.extract_strided_slice %146 {offsets = [11, 0], sizes = [1, 64], strides = [1, 1]} : vector<16x64xf32> to vector<1x64xf32>
    %218 = vector.broadcast %216 : vector<8x1xf32> to vector<8x64xf32>
    %219 = vector.broadcast %217 : vector<1x64xf32> to vector<8x64xf32>
    %220 = arith.mulf %218, %219 : vector<8x64xf32>
    %221 = arith.addf %215, %220 : vector<8x64xf32>
    %222 = vector.extract_strided_slice %147 {offsets = [0, 12], sizes = [8, 1], strides = [1, 1]} : vector<8x16xf32> to vector<8x1xf32>
    %223 = vector.extract_strided_slice %146 {offsets = [12, 0], sizes = [1, 64], strides = [1, 1]} : vector<16x64xf32> to vector<1x64xf32>
    %224 = vector.broadcast %222 : vector<8x1xf32> to vector<8x64xf32>
    %225 = vector.broadcast %223 : vector<1x64xf32> to vector<8x64xf32>
    %226 = arith.mulf %224, %225 : vector<8x64xf32>
    %227 = arith.addf %221, %226 : vector<8x64xf32>
    %228 = vector.extract_strided_slice %147 {offsets = [0, 13], sizes = [8, 1], strides = [1, 1]} : vector<8x16xf32> to vector<8x1xf32>
    %229 = vector.extract_strided_slice %146 {offsets = [13, 0], sizes = [1, 64], strides = [1, 1]} : vector<16x64xf32> to vector<1x64xf32>
    %230 = vector.broadcast %228 : vector<8x1xf32> to vector<8x64xf32>
    %231 = vector.broadcast %229 : vector<1x64xf32> to vector<8x64xf32>
    %232 = arith.mulf %230, %231 : vector<8x64xf32>
    %233 = arith.addf %227, %232 : vector<8x64xf32>
    %234 = vector.extract_strided_slice %147 {offsets = [0, 14], sizes = [8, 1], strides = [1, 1]} : vector<8x16xf32> to vector<8x1xf32>
    %235 = vector.extract_strided_slice %146 {offsets = [14, 0], sizes = [1, 64], strides = [1, 1]} : vector<16x64xf32> to vector<1x64xf32>
    %236 = vector.broadcast %234 : vector<8x1xf32> to vector<8x64xf32>
    %237 = vector.broadcast %235 : vector<1x64xf32> to vector<8x64xf32>
    %238 = arith.mulf %236, %237 : vector<8x64xf32>
    %239 = arith.addf %233, %238 : vector<8x64xf32>
    %240 = vector.extract_strided_slice %147 {offsets = [0, 15], sizes = [8, 1], strides = [1, 1]} : vector<8x16xf32> to vector<8x1xf32>
    %241 = vector.extract_strided_slice %146 {offsets = [15, 0], sizes = [1, 64], strides = [1, 1]} : vector<16x64xf32> to vector<1x64xf32>
    %242 = vector.broadcast %240 : vector<8x1xf32> to vector<8x64xf32>
    %243 = vector.broadcast %241 : vector<1x64xf32> to vector<8x64xf32>
    %244 = arith.mulf %242, %243 : vector<8x64xf32>
    %245 = arith.addf %239, %244 : vector<8x64xf32>
    %246 = vector.broadcast %148 : vector<8x1xf32> to vector<8x64xf32>
    %247 = arith.addf %245, %246 : vector<8x64xf32>
    %c0_51 = arith.constant 0 : index
    %c0_52 = arith.constant 0 : index
    %248 = vector.load %arg9[%c0_51, %c0_52] : memref<32x8xf32, #tpu.memory_space<vmem>>, vector<32x8xf32>
    %c0_53 = arith.constant 0 : index
    %c0_54 = arith.constant 0 : index
    %249 = vector.load %arg10[%c0_53, %c0_54] : memref<32x1xf32, #tpu.memory_space<vmem>>, vector<32x1xf32>
    %cst_55 = arith.constant 0.000000e+00 : f32
    %250 = vector.broadcast %cst_55 : f32 to vector<32x64xf32>
    %251 = vector.extract_strided_slice %248 {offsets = [0, 0], sizes = [32, 1], strides = [1, 1]} : vector<32x8xf32> to vector<32x1xf32>
    %252 = vector.extract_strided_slice %247 {offsets = [0, 0], sizes = [1, 64], strides = [1, 1]} : vector<8x64xf32> to vector<1x64xf32>
    %253 = vector.broadcast %251 : vector<32x1xf32> to vector<32x64xf32>
    %254 = vector.broadcast %252 : vector<1x64xf32> to vector<32x64xf32>
    %255 = arith.mulf %253, %254 : vector<32x64xf32>
    %256 = arith.addf %250, %255 : vector<32x64xf32>
    %257 = vector.extract_strided_slice %248 {offsets = [0, 1], sizes = [32, 1], strides = [1, 1]} : vector<32x8xf32> to vector<32x1xf32>
    %258 = vector.extract_strided_slice %247 {offsets = [1, 0], sizes = [1, 64], strides = [1, 1]} : vector<8x64xf32> to vector<1x64xf32>
    %259 = vector.broadcast %257 : vector<32x1xf32> to vector<32x64xf32>
    %260 = vector.broadcast %258 : vector<1x64xf32> to vector<32x64xf32>
    %261 = arith.mulf %259, %260 : vector<32x64xf32>
    %262 = arith.addf %256, %261 : vector<32x64xf32>
    %263 = vector.extract_strided_slice %248 {offsets = [0, 2], sizes = [32, 1], strides = [1, 1]} : vector<32x8xf32> to vector<32x1xf32>
    %264 = vector.extract_strided_slice %247 {offsets = [2, 0], sizes = [1, 64], strides = [1, 1]} : vector<8x64xf32> to vector<1x64xf32>
    %265 = vector.broadcast %263 : vector<32x1xf32> to vector<32x64xf32>
    %266 = vector.broadcast %264 : vector<1x64xf32> to vector<32x64xf32>
    %267 = arith.mulf %265, %266 : vector<32x64xf32>
    %268 = arith.addf %262, %267 : vector<32x64xf32>
    %269 = vector.extract_strided_slice %248 {offsets = [0, 3], sizes = [32, 1], strides = [1, 1]} : vector<32x8xf32> to vector<32x1xf32>
    %270 = vector.extract_strided_slice %247 {offsets = [3, 0], sizes = [1, 64], strides = [1, 1]} : vector<8x64xf32> to vector<1x64xf32>
    %271 = vector.broadcast %269 : vector<32x1xf32> to vector<32x64xf32>
    %272 = vector.broadcast %270 : vector<1x64xf32> to vector<32x64xf32>
    %273 = arith.mulf %271, %272 : vector<32x64xf32>
    %274 = arith.addf %268, %273 : vector<32x64xf32>
    %275 = vector.extract_strided_slice %248 {offsets = [0, 4], sizes = [32, 1], strides = [1, 1]} : vector<32x8xf32> to vector<32x1xf32>
    %276 = vector.extract_strided_slice %247 {offsets = [4, 0], sizes = [1, 64], strides = [1, 1]} : vector<8x64xf32> to vector<1x64xf32>
    %277 = vector.broadcast %275 : vector<32x1xf32> to vector<32x64xf32>
    %278 = vector.broadcast %276 : vector<1x64xf32> to vector<32x64xf32>
    %279 = arith.mulf %277, %278 : vector<32x64xf32>
    %280 = arith.addf %274, %279 : vector<32x64xf32>
    %281 = vector.extract_strided_slice %248 {offsets = [0, 5], sizes = [32, 1], strides = [1, 1]} : vector<32x8xf32> to vector<32x1xf32>
    %282 = vector.extract_strided_slice %247 {offsets = [5, 0], sizes = [1, 64], strides = [1, 1]} : vector<8x64xf32> to vector<1x64xf32>
    %283 = vector.broadcast %281 : vector<32x1xf32> to vector<32x64xf32>
    %284 = vector.broadcast %282 : vector<1x64xf32> to vector<32x64xf32>
    %285 = arith.mulf %283, %284 : vector<32x64xf32>
    %286 = arith.addf %280, %285 : vector<32x64xf32>
    %287 = vector.extract_strided_slice %248 {offsets = [0, 6], sizes = [32, 1], strides = [1, 1]} : vector<32x8xf32> to vector<32x1xf32>
    %288 = vector.extract_strided_slice %247 {offsets = [6, 0], sizes = [1, 64], strides = [1, 1]} : vector<8x64xf32> to vector<1x64xf32>
    %289 = vector.broadcast %287 : vector<32x1xf32> to vector<32x64xf32>
    %290 = vector.broadcast %288 : vector<1x64xf32> to vector<32x64xf32>
    %291 = arith.mulf %289, %290 : vector<32x64xf32>
    %292 = arith.addf %286, %291 : vector<32x64xf32>
    %293 = vector.extract_strided_slice %248 {offsets = [0, 7], sizes = [32, 1], strides = [1, 1]} : vector<32x8xf32> to vector<32x1xf32>
    %294 = vector.extract_strided_slice %247 {offsets = [7, 0], sizes = [1, 64], strides = [1, 1]} : vector<8x64xf32> to vector<1x64xf32>
    %295 = vector.broadcast %293 : vector<32x1xf32> to vector<32x64xf32>
    %296 = vector.broadcast %294 : vector<1x64xf32> to vector<32x64xf32>
    %297 = arith.mulf %295, %296 : vector<32x64xf32>
    %298 = arith.addf %292, %297 : vector<32x64xf32>
    %299 = vector.broadcast %249 : vector<32x1xf32> to vector<32x64xf32>
    %300 = arith.addf %298, %299 : vector<32x64xf32>
    %cst_56 = arith.constant 0.000000e+00 : f32
    %cst_57 = arith.constant 6.000000e+00 : f32
    %301 = vector.broadcast %cst_56 : f32 to vector<32x64xf32>
    %302 = arith.maximumf %301, %300 : vector<32x64xf32>
    %303 = vector.broadcast %cst_57 : f32 to vector<32x64xf32>
    %304 = arith.minimumf %303, %302 : vector<32x64xf32>
    %c0_58 = arith.constant 0 : index
    %c0_59 = arith.constant 0 : index
    %305 = vector.load %arg11[%c0_58, %c0_59] : memref<32x9xf32, #tpu.memory_space<vmem>>, vector<32x9xf32>
    %c0_60 = arith.constant 0 : index
    %c0_61 = arith.constant 0 : index
    %306 = vector.load %arg12[%c0_60, %c0_61] : memref<32x1xf32, #tpu.memory_space<vmem>>, vector<32x1xf32>
    %cst_62 = arith.constant 0.000000e+00 : f32
    %307 = vector.broadcast %cst_62 : f32 to vector<32x320xf32>
    %c0_63 = arith.constant 0 : index
    %c0_64 = arith.constant 0 : index
    %308 = vector.load %arg17[%c0_63, %c0_64] : memref<32x320xf32, #tpu.memory_space<vmem>>, vector<32x320xf32>
    tpu.vector_store %arg17[%c0_63, %c0_64], %307 {strides = array<i32>} : memref<32x320xf32, #tpu.memory_space<vmem>>, vector<32x320xf32>,
    %c0_65 = arith.constant 0 : index
    %c128_66 = arith.constant 128 : index
    %309 = vector.load %arg17[%c0_65, %c128_66] : memref<32x320xf32, #tpu.memory_space<vmem>>, vector<32x64xf32>
    tpu.vector_store %arg17[%c0_65, %c128_66], %304 {strides = array<i32>} : memref<32x320xf32, #tpu.memory_space<vmem>>, vector<32x64xf32>,
    %310 = tpu.iota {dimensions = array<i32: 1>} : vector<1x64xi32>
    %c8_i32 = arith.constant 8 : i32
    %c0_i32_67 = arith.constant 0 : i32
    %311 = arith.cmpi eq, %c8_i32, %c0_i32_67 : i32
    %c1_i32_68 = arith.constant 1 : i32
    %312 = arith.select %311, %c1_i32_68, %c8_i32 : i32
    %313 = vector.broadcast %312 : i32 to vector<1x64xi32>
    %314 = arith.remsi %310, %313 : vector<1x64xi32>
    %c0_i32_69 = arith.constant 0 : i32
    %315 = vector.broadcast %c0_i32_69 : i32 to vector<1x64xi32>
    %316 = arith.cmpi ne, %314, %315 : vector<1x64xi32>
    %c0_i32_70 = arith.constant 0 : i32
    %317 = vector.broadcast %c0_i32_70 : i32 to vector<1x64xi32>
    %318 = arith.cmpi slt, %314, %317 : vector<1x64xi32>
    %c0_i32_71 = arith.constant 0 : i32
    %319 = arith.cmpi slt, %312, %c0_i32_71 : i32
    %320 = vector.broadcast %319 : i1 to vector<1x64xi1>
    %321 = vector.broadcast %320 : vector<1x64xi1> to vector<1x64xi1>
    %322 = arith.xori %318, %321 : vector<1x64xi1>
    %323 = arith.andi %322, %316 : vector<1x64xi1>
    %324 = vector.broadcast %312 : i32 to vector<1x64xi32>
    %325 = arith.addi %314, %324 : vector<1x64xi32>
    %326 = arith.select %323, %325, %314 : vector<1x64xi1>, vector<1x64xi32>
    %cst_72 = arith.constant 0.000000e+00 : f32
    %327 = vector.broadcast %cst_72 : f32 to vector<32x64xf32>
    %c0_73 = arith.constant 0 : index
    %c119 = arith.constant 119 : index
    %328 = vector.load %arg17[%c0_73, %c119] : memref<32x320xf32, #tpu.memory_space<vmem>>, vector<32x64xf32>
    %c1_i32_74 = arith.constant 1 : i32
    %329 = vector.broadcast %c1_i32_74 : i32 to vector<1x64xi32>
    %330 = arith.cmpi sge, %326, %329 : vector<1x64xi32>
    %cst_75 = arith.constant 0.000000e+00 : f32
    %331 = vector.shape_cast %330 : vector<1x64xi1> to vector<1x64xi1>
    %332 = vector.broadcast %331 : vector<1x64xi1> to vector<32x64xi1>
    %333 = vector.broadcast %cst_75 : f32 to vector<32x64xf32>
    %334 = arith.select %332, %328, %333 : vector<32x64xi1>, vector<32x64xf32>
    %335 = vector.extract_strided_slice %305 {offsets = [0, 0], sizes = [32, 1], strides = [1, 1]} : vector<32x9xf32> to vector<32x1xf32>
    %336 = vector.broadcast %335 : vector<32x1xf32> to vector<32x64xf32>
    %337 = arith.mulf %334, %336 : vector<32x64xf32>
    %338 = arith.addf %327, %337 : vector<32x64xf32>
    %c0_76 = arith.constant 0 : index
    %c120 = arith.constant 120 : index
    %339 = vector.load %arg17[%c0_76, %c120] : memref<32x320xf32, #tpu.memory_space<vmem>>, vector<32x64xf32>
    %340 = vector.extract_strided_slice %305 {offsets = [0, 1], sizes = [32, 1], strides = [1, 1]} : vector<32x9xf32> to vector<32x1xf32>
    %341 = vector.broadcast %340 : vector<32x1xf32> to vector<32x64xf32>
    %342 = arith.mulf %339, %341 : vector<32x64xf32>
    %343 = arith.addf %338, %342 : vector<32x64xf32>
    %c0_77 = arith.constant 0 : index
    %c121 = arith.constant 121 : index
    %344 = vector.load %arg17[%c0_77, %c121] : memref<32x320xf32, #tpu.memory_space<vmem>>, vector<32x64xf32>
    %c6_i32 = arith.constant 6 : i32
    %345 = vector.broadcast %c6_i32 : i32 to vector<1x64xi32>
    %346 = arith.cmpi sle, %326, %345 : vector<1x64xi32>
    %cst_78 = arith.constant 0.000000e+00 : f32
    %347 = vector.shape_cast %346 : vector<1x64xi1> to vector<1x64xi1>
    %348 = vector.broadcast %347 : vector<1x64xi1> to vector<32x64xi1>
    %349 = vector.broadcast %cst_78 : f32 to vector<32x64xf32>
    %350 = arith.select %348, %344, %349 : vector<32x64xi1>, vector<32x64xf32>
    %351 = vector.extract_strided_slice %305 {offsets = [0, 2], sizes = [32, 1], strides = [1, 1]} : vector<32x9xf32> to vector<32x1xf32>
    %352 = vector.broadcast %351 : vector<32x1xf32> to vector<32x64xf32>
    %353 = arith.mulf %350, %352 : vector<32x64xf32>
    %354 = arith.addf %343, %353 : vector<32x64xf32>
    %c0_79 = arith.constant 0 : index
    %c127_80 = arith.constant 127 : index
    %355 = vector.load %arg17[%c0_79, %c127_80] : memref<32x320xf32, #tpu.memory_space<vmem>>, vector<32x64xf32>
    %c1_i32_81 = arith.constant 1 : i32
    %356 = vector.broadcast %c1_i32_81 : i32 to vector<1x64xi32>
    %357 = arith.cmpi sge, %326, %356 : vector<1x64xi32>
    %cst_82 = arith.constant 0.000000e+00 : f32
    %358 = vector.shape_cast %357 : vector<1x64xi1> to vector<1x64xi1>
    %359 = vector.broadcast %358 : vector<1x64xi1> to vector<32x64xi1>
    %360 = vector.broadcast %cst_82 : f32 to vector<32x64xf32>
    %361 = arith.select %359, %355, %360 : vector<32x64xi1>, vector<32x64xf32>
    %362 = vector.extract_strided_slice %305 {offsets = [0, 3], sizes = [32, 1], strides = [1, 1]} : vector<32x9xf32> to vector<32x1xf32>
    %363 = vector.broadcast %362 : vector<32x1xf32> to vector<32x64xf32>
    %364 = arith.mulf %361, %363 : vector<32x64xf32>
    %365 = arith.addf %354, %364 : vector<32x64xf32>
    %c0_83 = arith.constant 0 : index
    %c128_84 = arith.constant 128 : index
    %366 = vector.load %arg17[%c0_83, %c128_84] : memref<32x320xf32, #tpu.memory_space<vmem>>, vector<32x64xf32>
    %367 = vector.extract_strided_slice %305 {offsets = [0, 4], sizes = [32, 1], strides = [1, 1]} : vector<32x9xf32> to vector<32x1xf32>
    %368 = vector.broadcast %367 : vector<32x1xf32> to vector<32x64xf32>
    %369 = arith.mulf %366, %368 : vector<32x64xf32>
    %370 = arith.addf %365, %369 : vector<32x64xf32>
    %c0_85 = arith.constant 0 : index
    %c129_86 = arith.constant 129 : index
    %371 = vector.load %arg17[%c0_85, %c129_86] : memref<32x320xf32, #tpu.memory_space<vmem>>, vector<32x64xf32>
    %c6_i32_87 = arith.constant 6 : i32
    %372 = vector.broadcast %c6_i32_87 : i32 to vector<1x64xi32>
    %373 = arith.cmpi sle, %326, %372 : vector<1x64xi32>
    %cst_88 = arith.constant 0.000000e+00 : f32
    %374 = vector.shape_cast %373 : vector<1x64xi1> to vector<1x64xi1>
    %375 = vector.broadcast %374 : vector<1x64xi1> to vector<32x64xi1>
    %376 = vector.broadcast %cst_88 : f32 to vector<32x64xf32>
    %377 = arith.select %375, %371, %376 : vector<32x64xi1>, vector<32x64xf32>
    %378 = vector.extract_strided_slice %305 {offsets = [0, 5], sizes = [32, 1], strides = [1, 1]} : vector<32x9xf32> to vector<32x1xf32>
    %379 = vector.broadcast %378 : vector<32x1xf32> to vector<32x64xf32>
    %380 = arith.mulf %377, %379 : vector<32x64xf32>
    %381 = arith.addf %370, %380 : vector<32x64xf32>
    %c0_89 = arith.constant 0 : index
    %c135 = arith.constant 135 : index
    %382 = vector.load %arg17[%c0_89, %c135] : memref<32x320xf32, #tpu.memory_space<vmem>>, vector<32x64xf32>
    %c1_i32_90 = arith.constant 1 : i32
    %383 = vector.broadcast %c1_i32_90 : i32 to vector<1x64xi32>
    %384 = arith.cmpi sge, %326, %383 : vector<1x64xi32>
    %cst_91 = arith.constant 0.000000e+00 : f32
    %385 = vector.shape_cast %384 : vector<1x64xi1> to vector<1x64xi1>
    %386 = vector.broadcast %385 : vector<1x64xi1> to vector<32x64xi1>
    %387 = vector.broadcast %cst_91 : f32 to vector<32x64xf32>
    %388 = arith.select %386, %382, %387 : vector<32x64xi1>, vector<32x64xf32>
    %389 = vector.extract_strided_slice %305 {offsets = [0, 6], sizes = [32, 1], strides = [1, 1]} : vector<32x9xf32> to vector<32x1xf32>
    %390 = vector.broadcast %389 : vector<32x1xf32> to vector<32x64xf32>
    %391 = arith.mulf %388, %390 : vector<32x64xf32>
    %392 = arith.addf %381, %391 : vector<32x64xf32>
    %c0_92 = arith.constant 0 : index
    %c136 = arith.constant 136 : index
    %393 = vector.load %arg17[%c0_92, %c136] : memref<32x320xf32, #tpu.memory_space<vmem>>, vector<32x64xf32>
    %394 = vector.extract_strided_slice %305 {offsets = [0, 7], sizes = [32, 1], strides = [1, 1]} : vector<32x9xf32> to vector<32x1xf32>
    %395 = vector.broadcast %394 : vector<32x1xf32> to vector<32x64xf32>
    %396 = arith.mulf %393, %395 : vector<32x64xf32>
    %397 = arith.addf %392, %396 : vector<32x64xf32>
    %c0_93 = arith.constant 0 : index
    %c137 = arith.constant 137 : index
    %398 = vector.load %arg17[%c0_93, %c137] : memref<32x320xf32, #tpu.memory_space<vmem>>, vector<32x64xf32>
    %c6_i32_94 = arith.constant 6 : i32
    %399 = vector.broadcast %c6_i32_94 : i32 to vector<1x64xi32>
    %400 = arith.cmpi sle, %326, %399 : vector<1x64xi32>
    %cst_95 = arith.constant 0.000000e+00 : f32
    %401 = vector.shape_cast %400 : vector<1x64xi1> to vector<1x64xi1>
    %402 = vector.broadcast %401 : vector<1x64xi1> to vector<32x64xi1>
    %403 = vector.broadcast %cst_95 : f32 to vector<32x64xf32>
    %404 = arith.select %402, %398, %403 : vector<32x64xi1>, vector<32x64xf32>
    %405 = vector.extract_strided_slice %305 {offsets = [0, 8], sizes = [32, 1], strides = [1, 1]} : vector<32x9xf32> to vector<32x1xf32>
    %406 = vector.broadcast %405 : vector<32x1xf32> to vector<32x64xf32>
    %407 = arith.mulf %404, %406 : vector<32x64xf32>
    %408 = arith.addf %397, %407 : vector<32x64xf32>
    %409 = vector.broadcast %306 : vector<32x1xf32> to vector<32x64xf32>
    %410 = arith.addf %408, %409 : vector<32x64xf32>
    %cst_96 = arith.constant 0.000000e+00 : f32
    %cst_97 = arith.constant 6.000000e+00 : f32
    %411 = vector.broadcast %cst_96 : f32 to vector<32x64xf32>
    %412 = arith.maximumf %411, %410 : vector<32x64xf32>
    %413 = vector.broadcast %cst_97 : f32 to vector<32x64xf32>
    %414 = arith.minimumf %413, %412 : vector<32x64xf32>
    %c0_98 = arith.constant 0 : index
    %c0_99 = arith.constant 0 : index
    %415 = vector.load %arg13[%c0_98, %c0_99] : memref<32x32xf32, #tpu.memory_space<vmem>>, vector<32x32xf32>
    %c0_100 = arith.constant 0 : index
    %c0_101 = arith.constant 0 : index
    %416 = vector.load %arg14[%c0_100, %c0_101] : memref<32x1xf32, #tpu.memory_space<vmem>>, vector<32x1xf32>
    %cst_102 = arith.constant 0.000000e+00 : f32
    %417 = vector.broadcast %cst_102 : f32 to vector<32x64xf32>
    %418 = vector.extract_strided_slice %415 {offsets = [0, 0], sizes = [32, 1], strides = [1, 1]} : vector<32x32xf32> to vector<32x1xf32>
    %419 = vector.extract_strided_slice %414 {offsets = [0, 0], sizes = [1, 64], strides = [1, 1]} : vector<32x64xf32> to vector<1x64xf32>
    %420 = vector.broadcast %418 : vector<32x1xf32> to vector<32x64xf32>
    %421 = vector.broadcast %419 : vector<1x64xf32> to vector<32x64xf32>
    %422 = arith.mulf %420, %421 : vector<32x64xf32>
    %423 = arith.addf %417, %422 : vector<32x64xf32>
    %424 = vector.extract_strided_slice %415 {offsets = [0, 1], sizes = [32, 1], strides = [1, 1]} : vector<32x32xf32> to vector<32x1xf32>
    %425 = vector.extract_strided_slice %414 {offsets = [1, 0], sizes = [1, 64], strides = [1, 1]} : vector<32x64xf32> to vector<1x64xf32>
    %426 = vector.broadcast %424 : vector<32x1xf32> to vector<32x64xf32>
    %427 = vector.broadcast %425 : vector<1x64xf32> to vector<32x64xf32>
    %428 = arith.mulf %426, %427 : vector<32x64xf32>
    %429 = arith.addf %423, %428 : vector<32x64xf32>
    %430 = vector.extract_strided_slice %415 {offsets = [0, 2], sizes = [32, 1], strides = [1, 1]} : vector<32x32xf32> to vector<32x1xf32>
    %431 = vector.extract_strided_slice %414 {offsets = [2, 0], sizes = [1, 64], strides = [1, 1]} : vector<32x64xf32> to vector<1x64xf32>
    %432 = vector.broadcast %430 : vector<32x1xf32> to vector<32x64xf32>
    %433 = vector.broadcast %431 : vector<1x64xf32> to vector<32x64xf32>
    %434 = arith.mulf %432, %433 : vector<32x64xf32>
    %435 = arith.addf %429, %434 : vector<32x64xf32>
    %436 = vector.extract_strided_slice %415 {offsets = [0, 3], sizes = [32, 1], strides = [1, 1]} : vector<32x32xf32> to vector<32x1xf32>
    %437 = vector.extract_strided_slice %414 {offsets = [3, 0], sizes = [1, 64], strides = [1, 1]} : vector<32x64xf32> to vector<1x64xf32>
    %438 = vector.broadcast %436 : vector<32x1xf32> to vector<32x64xf32>
    %439 = vector.broadcast %437 : vector<1x64xf32> to vector<32x64xf32>
    %440 = arith.mulf %438, %439 : vector<32x64xf32>
    %441 = arith.addf %435, %440 : vector<32x64xf32>
    %442 = vector.extract_strided_slice %415 {offsets = [0, 4], sizes = [32, 1], strides = [1, 1]} : vector<32x32xf32> to vector<32x1xf32>
    %443 = vector.extract_strided_slice %414 {offsets = [4, 0], sizes = [1, 64], strides = [1, 1]} : vector<32x64xf32> to vector<1x64xf32>
    %444 = vector.broadcast %442 : vector<32x1xf32> to vector<32x64xf32>
    %445 = vector.broadcast %443 : vector<1x64xf32> to vector<32x64xf32>
    %446 = arith.mulf %444, %445 : vector<32x64xf32>
    %447 = arith.addf %441, %446 : vector<32x64xf32>
    %448 = vector.extract_strided_slice %415 {offsets = [0, 5], sizes = [32, 1], strides = [1, 1]} : vector<32x32xf32> to vector<32x1xf32>
    %449 = vector.extract_strided_slice %414 {offsets = [5, 0], sizes = [1, 64], strides = [1, 1]} : vector<32x64xf32> to vector<1x64xf32>
    %450 = vector.broadcast %448 : vector<32x1xf32> to vector<32x64xf32>
    %451 = vector.broadcast %449 : vector<1x64xf32> to vector<32x64xf32>
    %452 = arith.mulf %450, %451 : vector<32x64xf32>
    %453 = arith.addf %447, %452 : vector<32x64xf32>
    %454 = vector.extract_strided_slice %415 {offsets = [0, 6], sizes = [32, 1], strides = [1, 1]} : vector<32x32xf32> to vector<32x1xf32>
    %455 = vector.extract_strided_slice %414 {offsets = [6, 0], sizes = [1, 64], strides = [1, 1]} : vector<32x64xf32> to vector<1x64xf32>
    %456 = vector.broadcast %454 : vector<32x1xf32> to vector<32x64xf32>
    %457 = vector.broadcast %455 : vector<1x64xf32> to vector<32x64xf32>
    %458 = arith.mulf %456, %457 : vector<32x64xf32>
    %459 = arith.addf %453, %458 : vector<32x64xf32>
    %460 = vector.extract_strided_slice %415 {offsets = [0, 7], sizes = [32, 1], strides = [1, 1]} : vector<32x32xf32> to vector<32x1xf32>
    %461 = vector.extract_strided_slice %414 {offsets = [7, 0], sizes = [1, 64], strides = [1, 1]} : vector<32x64xf32> to vector<1x64xf32>
    %462 = vector.broadcast %460 : vector<32x1xf32> to vector<32x64xf32>
    %463 = vector.broadcast %461 : vector<1x64xf32> to vector<32x64xf32>
    %464 = arith.mulf %462, %463 : vector<32x64xf32>
    %465 = arith.addf %459, %464 : vector<32x64xf32>
    %466 = vector.extract_strided_slice %415 {offsets = [0, 8], sizes = [32, 1], strides = [1, 1]} : vector<32x32xf32> to vector<32x1xf32>
    %467 = vector.extract_strided_slice %414 {offsets = [8, 0], sizes = [1, 64], strides = [1, 1]} : vector<32x64xf32> to vector<1x64xf32>
    %468 = vector.broadcast %466 : vector<32x1xf32> to vector<32x64xf32>
    %469 = vector.broadcast %467 : vector<1x64xf32> to vector<32x64xf32>
    %470 = arith.mulf %468, %469 : vector<32x64xf32>
    %471 = arith.addf %465, %470 : vector<32x64xf32>
    %472 = vector.extract_strided_slice %415 {offsets = [0, 9], sizes = [32, 1], strides = [1, 1]} : vector<32x32xf32> to vector<32x1xf32>
    %473 = vector.extract_strided_slice %414 {offsets = [9, 0], sizes = [1, 64], strides = [1, 1]} : vector<32x64xf32> to vector<1x64xf32>
    %474 = vector.broadcast %472 : vector<32x1xf32> to vector<32x64xf32>
    %475 = vector.broadcast %473 : vector<1x64xf32> to vector<32x64xf32>
    %476 = arith.mulf %474, %475 : vector<32x64xf32>
    %477 = arith.addf %471, %476 : vector<32x64xf32>
    %478 = vector.extract_strided_slice %415 {offsets = [0, 10], sizes = [32, 1], strides = [1, 1]} : vector<32x32xf32> to vector<32x1xf32>
    %479 = vector.extract_strided_slice %414 {offsets = [10, 0], sizes = [1, 64], strides = [1, 1]} : vector<32x64xf32> to vector<1x64xf32>
    %480 = vector.broadcast %478 : vector<32x1xf32> to vector<32x64xf32>
    %481 = vector.broadcast %479 : vector<1x64xf32> to vector<32x64xf32>
    %482 = arith.mulf %480, %481 : vector<32x64xf32>
    %483 = arith.addf %477, %482 : vector<32x64xf32>
    %484 = vector.extract_strided_slice %415 {offsets = [0, 11], sizes = [32, 1], strides = [1, 1]} : vector<32x32xf32> to vector<32x1xf32>
    %485 = vector.extract_strided_slice %414 {offsets = [11, 0], sizes = [1, 64], strides = [1, 1]} : vector<32x64xf32> to vector<1x64xf32>
    %486 = vector.broadcast %484 : vector<32x1xf32> to vector<32x64xf32>
    %487 = vector.broadcast %485 : vector<1x64xf32> to vector<32x64xf32>
    %488 = arith.mulf %486, %487 : vector<32x64xf32>
    %489 = arith.addf %483, %488 : vector<32x64xf32>
    %490 = vector.extract_strided_slice %415 {offsets = [0, 12], sizes = [32, 1], strides = [1, 1]} : vector<32x32xf32> to vector<32x1xf32>
    %491 = vector.extract_strided_slice %414 {offsets = [12, 0], sizes = [1, 64], strides = [1, 1]} : vector<32x64xf32> to vector<1x64xf32>
    %492 = vector.broadcast %490 : vector<32x1xf32> to vector<32x64xf32>
    %493 = vector.broadcast %491 : vector<1x64xf32> to vector<32x64xf32>
    %494 = arith.mulf %492, %493 : vector<32x64xf32>
    %495 = arith.addf %489, %494 : vector<32x64xf32>
    %496 = vector.extract_strided_slice %415 {offsets = [0, 13], sizes = [32, 1], strides = [1, 1]} : vector<32x32xf32> to vector<32x1xf32>
    %497 = vector.extract_strided_slice %414 {offsets = [13, 0], sizes = [1, 64], strides = [1, 1]} : vector<32x64xf32> to vector<1x64xf32>
    %498 = vector.broadcast %496 : vector<32x1xf32> to vector<32x64xf32>
    %499 = vector.broadcast %497 : vector<1x64xf32> to vector<32x64xf32>
    %500 = arith.mulf %498, %499 : vector<32x64xf32>
    %501 = arith.addf %495, %500 : vector<32x64xf32>
    %502 = vector.extract_strided_slice %415 {offsets = [0, 14], sizes = [32, 1], strides = [1, 1]} : vector<32x32xf32> to vector<32x1xf32>
    %503 = vector.extract_strided_slice %414 {offsets = [14, 0], sizes = [1, 64], strides = [1, 1]} : vector<32x64xf32> to vector<1x64xf32>
    %504 = vector.broadcast %502 : vector<32x1xf32> to vector<32x64xf32>
    %505 = vector.broadcast %503 : vector<1x64xf32> to vector<32x64xf32>
    %506 = arith.mulf %504, %505 : vector<32x64xf32>
    %507 = arith.addf %501, %506 : vector<32x64xf32>
    %508 = vector.extract_strided_slice %415 {offsets = [0, 15], sizes = [32, 1], strides = [1, 1]} : vector<32x32xf32> to vector<32x1xf32>
    %509 = vector.extract_strided_slice %414 {offsets = [15, 0], sizes = [1, 64], strides = [1, 1]} : vector<32x64xf32> to vector<1x64xf32>
    %510 = vector.broadcast %508 : vector<32x1xf32> to vector<32x64xf32>
    %511 = vector.broadcast %509 : vector<1x64xf32> to vector<32x64xf32>
    %512 = arith.mulf %510, %511 : vector<32x64xf32>
    %513 = arith.addf %507, %512 : vector<32x64xf32>
    %514 = vector.extract_strided_slice %415 {offsets = [0, 16], sizes = [32, 1], strides = [1, 1]} : vector<32x32xf32> to vector<32x1xf32>
    %515 = vector.extract_strided_slice %414 {offsets = [16, 0], sizes = [1, 64], strides = [1, 1]} : vector<32x64xf32> to vector<1x64xf32>
    %516 = vector.broadcast %514 : vector<32x1xf32> to vector<32x64xf32>
    %517 = vector.broadcast %515 : vector<1x64xf32> to vector<32x64xf32>
    %518 = arith.mulf %516, %517 : vector<32x64xf32>
    %519 = arith.addf %513, %518 : vector<32x64xf32>
    %520 = vector.extract_strided_slice %415 {offsets = [0, 17], sizes = [32, 1], strides = [1, 1]} : vector<32x32xf32> to vector<32x1xf32>
    %521 = vector.extract_strided_slice %414 {offsets = [17, 0], sizes = [1, 64], strides = [1, 1]} : vector<32x64xf32> to vector<1x64xf32>
    %522 = vector.broadcast %520 : vector<32x1xf32> to vector<32x64xf32>
    %523 = vector.broadcast %521 : vector<1x64xf32> to vector<32x64xf32>
    %524 = arith.mulf %522, %523 : vector<32x64xf32>
    %525 = arith.addf %519, %524 : vector<32x64xf32>
    %526 = vector.extract_strided_slice %415 {offsets = [0, 18], sizes = [32, 1], strides = [1, 1]} : vector<32x32xf32> to vector<32x1xf32>
    %527 = vector.extract_strided_slice %414 {offsets = [18, 0], sizes = [1, 64], strides = [1, 1]} : vector<32x64xf32> to vector<1x64xf32>
    %528 = vector.broadcast %526 : vector<32x1xf32> to vector<32x64xf32>
    %529 = vector.broadcast %527 : vector<1x64xf32> to vector<32x64xf32>
    %530 = arith.mulf %528, %529 : vector<32x64xf32>
    %531 = arith.addf %525, %530 : vector<32x64xf32>
    %532 = vector.extract_strided_slice %415 {offsets = [0, 19], sizes = [32, 1], strides = [1, 1]} : vector<32x32xf32> to vector<32x1xf32>
    %533 = vector.extract_strided_slice %414 {offsets = [19, 0], sizes = [1, 64], strides = [1, 1]} : vector<32x64xf32> to vector<1x64xf32>
    %534 = vector.broadcast %532 : vector<32x1xf32> to vector<32x64xf32>
    %535 = vector.broadcast %533 : vector<1x64xf32> to vector<32x64xf32>
    %536 = arith.mulf %534, %535 : vector<32x64xf32>
    %537 = arith.addf %531, %536 : vector<32x64xf32>
    %538 = vector.extract_strided_slice %415 {offsets = [0, 20], sizes = [32, 1], strides = [1, 1]} : vector<32x32xf32> to vector<32x1xf32>
    %539 = vector.extract_strided_slice %414 {offsets = [20, 0], sizes = [1, 64], strides = [1, 1]} : vector<32x64xf32> to vector<1x64xf32>
    %540 = vector.broadcast %538 : vector<32x1xf32> to vector<32x64xf32>
    %541 = vector.broadcast %539 : vector<1x64xf32> to vector<32x64xf32>
    %542 = arith.mulf %540, %541 : vector<32x64xf32>
    %543 = arith.addf %537, %542 : vector<32x64xf32>
    %544 = vector.extract_strided_slice %415 {offsets = [0, 21], sizes = [32, 1], strides = [1, 1]} : vector<32x32xf32> to vector<32x1xf32>
    %545 = vector.extract_strided_slice %414 {offsets = [21, 0], sizes = [1, 64], strides = [1, 1]} : vector<32x64xf32> to vector<1x64xf32>
    %546 = vector.broadcast %544 : vector<32x1xf32> to vector<32x64xf32>
    %547 = vector.broadcast %545 : vector<1x64xf32> to vector<32x64xf32>
    %548 = arith.mulf %546, %547 : vector<32x64xf32>
    %549 = arith.addf %543, %548 : vector<32x64xf32>
    %550 = vector.extract_strided_slice %415 {offsets = [0, 22], sizes = [32, 1], strides = [1, 1]} : vector<32x32xf32> to vector<32x1xf32>
    %551 = vector.extract_strided_slice %414 {offsets = [22, 0], sizes = [1, 64], strides = [1, 1]} : vector<32x64xf32> to vector<1x64xf32>
    %552 = vector.broadcast %550 : vector<32x1xf32> to vector<32x64xf32>
    %553 = vector.broadcast %551 : vector<1x64xf32> to vector<32x64xf32>
    %554 = arith.mulf %552, %553 : vector<32x64xf32>
    %555 = arith.addf %549, %554 : vector<32x64xf32>
    %556 = vector.extract_strided_slice %415 {offsets = [0, 23], sizes = [32, 1], strides = [1, 1]} : vector<32x32xf32> to vector<32x1xf32>
    %557 = vector.extract_strided_slice %414 {offsets = [23, 0], sizes = [1, 64], strides = [1, 1]} : vector<32x64xf32> to vector<1x64xf32>
    %558 = vector.broadcast %556 : vector<32x1xf32> to vector<32x64xf32>
    %559 = vector.broadcast %557 : vector<1x64xf32> to vector<32x64xf32>
    %560 = arith.mulf %558, %559 : vector<32x64xf32>
    %561 = arith.addf %555, %560 : vector<32x64xf32>
    %562 = vector.extract_strided_slice %415 {offsets = [0, 24], sizes = [32, 1], strides = [1, 1]} : vector<32x32xf32> to vector<32x1xf32>
    %563 = vector.extract_strided_slice %414 {offsets = [24, 0], sizes = [1, 64], strides = [1, 1]} : vector<32x64xf32> to vector<1x64xf32>
    %564 = vector.broadcast %562 : vector<32x1xf32> to vector<32x64xf32>
    %565 = vector.broadcast %563 : vector<1x64xf32> to vector<32x64xf32>
    %566 = arith.mulf %564, %565 : vector<32x64xf32>
    %567 = arith.addf %561, %566 : vector<32x64xf32>
    %568 = vector.extract_strided_slice %415 {offsets = [0, 25], sizes = [32, 1], strides = [1, 1]} : vector<32x32xf32> to vector<32x1xf32>
    %569 = vector.extract_strided_slice %414 {offsets = [25, 0], sizes = [1, 64], strides = [1, 1]} : vector<32x64xf32> to vector<1x64xf32>
    %570 = vector.broadcast %568 : vector<32x1xf32> to vector<32x64xf32>
    %571 = vector.broadcast %569 : vector<1x64xf32> to vector<32x64xf32>
    %572 = arith.mulf %570, %571 : vector<32x64xf32>
    %573 = arith.addf %567, %572 : vector<32x64xf32>
    %574 = vector.extract_strided_slice %415 {offsets = [0, 26], sizes = [32, 1], strides = [1, 1]} : vector<32x32xf32> to vector<32x1xf32>
    %575 = vector.extract_strided_slice %414 {offsets = [26, 0], sizes = [1, 64], strides = [1, 1]} : vector<32x64xf32> to vector<1x64xf32>
    %576 = vector.broadcast %574 : vector<32x1xf32> to vector<32x64xf32>
    %577 = vector.broadcast %575 : vector<1x64xf32> to vector<32x64xf32>
    %578 = arith.mulf %576, %577 : vector<32x64xf32>
    %579 = arith.addf %573, %578 : vector<32x64xf32>
    %580 = vector.extract_strided_slice %415 {offsets = [0, 27], sizes = [32, 1], strides = [1, 1]} : vector<32x32xf32> to vector<32x1xf32>
    %581 = vector.extract_strided_slice %414 {offsets = [27, 0], sizes = [1, 64], strides = [1, 1]} : vector<32x64xf32> to vector<1x64xf32>
    %582 = vector.broadcast %580 : vector<32x1xf32> to vector<32x64xf32>
    %583 = vector.broadcast %581 : vector<1x64xf32> to vector<32x64xf32>
    %584 = arith.mulf %582, %583 : vector<32x64xf32>
    %585 = arith.addf %579, %584 : vector<32x64xf32>
    %586 = vector.extract_strided_slice %415 {offsets = [0, 28], sizes = [32, 1], strides = [1, 1]} : vector<32x32xf32> to vector<32x1xf32>
    %587 = vector.extract_strided_slice %414 {offsets = [28, 0], sizes = [1, 64], strides = [1, 1]} : vector<32x64xf32> to vector<1x64xf32>
    %588 = vector.broadcast %586 : vector<32x1xf32> to vector<32x64xf32>
    %589 = vector.broadcast %587 : vector<1x64xf32> to vector<32x64xf32>
    %590 = arith.mulf %588, %589 : vector<32x64xf32>
    %591 = arith.addf %585, %590 : vector<32x64xf32>
    %592 = vector.extract_strided_slice %415 {offsets = [0, 29], sizes = [32, 1], strides = [1, 1]} : vector<32x32xf32> to vector<32x1xf32>
    %593 = vector.extract_strided_slice %414 {offsets = [29, 0], sizes = [1, 64], strides = [1, 1]} : vector<32x64xf32> to vector<1x64xf32>
    %594 = vector.broadcast %592 : vector<32x1xf32> to vector<32x64xf32>
    %595 = vector.broadcast %593 : vector<1x64xf32> to vector<32x64xf32>
    %596 = arith.mulf %594, %595 : vector<32x64xf32>
    %597 = arith.addf %591, %596 : vector<32x64xf32>
    %598 = vector.extract_strided_slice %415 {offsets = [0, 30], sizes = [32, 1], strides = [1, 1]} : vector<32x32xf32> to vector<32x1xf32>
    %599 = vector.extract_strided_slice %414 {offsets = [30, 0], sizes = [1, 64], strides = [1, 1]} : vector<32x64xf32> to vector<1x64xf32>
    %600 = vector.broadcast %598 : vector<32x1xf32> to vector<32x64xf32>
    %601 = vector.broadcast %599 : vector<1x64xf32> to vector<32x64xf32>
    %602 = arith.mulf %600, %601 : vector<32x64xf32>
    %603 = arith.addf %597, %602 : vector<32x64xf32>
    %604 = vector.extract_strided_slice %415 {offsets = [0, 31], sizes = [32, 1], strides = [1, 1]} : vector<32x32xf32> to vector<32x1xf32>
    %605 = vector.extract_strided_slice %414 {offsets = [31, 0], sizes = [1, 64], strides = [1, 1]} : vector<32x64xf32> to vector<1x64xf32>
    %606 = vector.broadcast %604 : vector<32x1xf32> to vector<32x64xf32>
    %607 = vector.broadcast %605 : vector<1x64xf32> to vector<32x64xf32>
    %608 = arith.mulf %606, %607 : vector<32x64xf32>
    %609 = arith.addf %603, %608 : vector<32x64xf32>
    %610 = vector.broadcast %416 : vector<32x1xf32> to vector<32x64xf32>
    %611 = arith.addf %609, %610 : vector<32x64xf32>
    %c0_103 = arith.constant 0 : index
    %c0_104 = arith.constant 0 : index
    %c0_105 = arith.constant 0 : index
    %612 = vector.load %arg15[%c0_103, %c0_104, %c0_105] : memref<1x32x64xf32, #tpu.memory_space<vmem>>, vector<1x32x64xf32>
    %613 = vector.shape_cast %612 : vector<1x32x64xf32> to vector<32x64xf32>
    %614 = vector.shape_cast %611 : vector<32x64xf32> to vector<1x32x64xf32>
    tpu.vector_store %arg15[%c0_103, %c0_104, %c0_105], %614 {strides = array<i32>} : memref<1x32x64xf32, #tpu.memory_space<vmem>>, vector<1x32x64xf32>,
    return
  }
  func.func @transform_0(%arg0: i32) -> (i32, i32, i32) {
    %c0_i32 = arith.constant 0 : i32
    %c0_i32_0 = arith.constant 0 : i32
    %c0_i32_1 = arith.constant 0 : i32
    return %arg0, %c0_i32, %c0_i32_0 : i32, i32, i32
  }
  func.func @transform_1(%arg0: i32) -> (i32, i32) {
    %c0_i32 = arith.constant 0 : i32
    %c0_i32_0 = arith.constant 0 : i32
    %c0_i32_1 = arith.constant 0 : i32
    return %c0_i32, %c0_i32_0 : i32, i32
  }
  func.func @transform_2(%arg0: i32) -> (i32, i32) {
    %c0_i32 = arith.constant 0 : i32
    %c0_i32_0 = arith.constant 0 : i32
    %c0_i32_1 = arith.constant 0 : i32
    return %c0_i32, %c0_i32_0 : i32, i32
  }
  func.func @transform_3(%arg0: i32) -> (i32, i32) {
    %c0_i32 = arith.constant 0 : i32
    %c0_i32_0 = arith.constant 0 : i32
    %c0_i32_1 = arith.constant 0 : i32
    return %c0_i32, %c0_i32_0 : i32, i32
  }
  func.func @transform_4(%arg0: i32) -> (i32, i32) {
    %c0_i32 = arith.constant 0 : i32
    %c0_i32_0 = arith.constant 0 : i32
    %c0_i32_1 = arith.constant 0 : i32
    return %c0_i32, %c0_i32_0 : i32, i32
  }
  func.func @transform_5(%arg0: i32) -> (i32, i32) {
    %c0_i32 = arith.constant 0 : i32
    %c0_i32_0 = arith.constant 0 : i32
    %c0_i32_1 = arith.constant 0 : i32
    return %c0_i32, %c0_i32_0 : i32, i32
  }
  func.func @transform_6(%arg0: i32) -> (i32, i32) {
    %c0_i32 = arith.constant 0 : i32
    %c0_i32_0 = arith.constant 0 : i32
    %c0_i32_1 = arith.constant 0 : i32
    return %c0_i32, %c0_i32_0 : i32, i32
  }
  func.func @transform_7(%arg0: i32) -> (i32, i32) {
    %c0_i32 = arith.constant 0 : i32
    %c0_i32_0 = arith.constant 0 : i32
    %c0_i32_1 = arith.constant 0 : i32
    return %c0_i32, %c0_i32_0 : i32, i32
  }
  func.func @transform_8(%arg0: i32) -> (i32, i32) {
    %c0_i32 = arith.constant 0 : i32
    %c0_i32_0 = arith.constant 0 : i32
    %c0_i32_1 = arith.constant 0 : i32
    return %c0_i32, %c0_i32_0 : i32, i32
  }
  func.func @transform_9(%arg0: i32) -> (i32, i32) {
    %c0_i32 = arith.constant 0 : i32
    %c0_i32_0 = arith.constant 0 : i32
    %c0_i32_1 = arith.constant 0 : i32
    return %c0_i32, %c0_i32_0 : i32, i32
  }
  func.func @transform_10(%arg0: i32) -> (i32, i32) {
    %c0_i32 = arith.constant 0 : i32
    %c0_i32_0 = arith.constant 0 : i32
    %c0_i32_1 = arith.constant 0 : i32
    return %c0_i32, %c0_i32_0 : i32, i32
  }
  func.func @transform_11(%arg0: i32) -> (i32, i32) {
    %c0_i32 = arith.constant 0 : i32
    %c0_i32_0 = arith.constant 0 : i32
    %c0_i32_1 = arith.constant 0 : i32
    return %c0_i32, %c0_i32_0 : i32, i32
  }
  func.func @transform_12(%arg0: i32) -> (i32, i32) {
    %c0_i32 = arith.constant 0 : i32
    %c0_i32_0 = arith.constant 0 : i32
    %c0_i32_1 = arith.constant 0 : i32
    return %c0_i32, %c0_i32_0 : i32, i32
  }
  func.func @transform_13(%arg0: i32) -> (i32, i32) {
    %c0_i32 = arith.constant 0 : i32
    %c0_i32_0 = arith.constant 0 : i32
    %c0_i32_1 = arith.constant 0 : i32
    return %c0_i32, %c0_i32_0 : i32, i32
  }
  func.func @transform_14(%arg0: i32) -> (i32, i32, i32) {
    %c0_i32 = arith.constant 0 : i32
    %c0_i32_0 = arith.constant 0 : i32
    %c0_i32_1 = arith.constant 0 : i32
    return %arg0, %c0_i32, %c0_i32_0 : i32, i32, i32
  }
}

</mosaic_0001>

<bundles_post_ra>
// kernel: tpu_custom_call.1
= control target key start
LH: loop header
LB: loop body
LE: loop exit
PB: predicated region body
PF: predicated region fallthrough
CT: control target
= control target key end

     0   :  { %s5190_s0 = inlined_call_operand.vmem [shape: f32[2,4,256], index: 0, kind: input, shape index: {}]   ;;  %s5191_s1 = inlined_call_operand.vmem [shape: f32[16,4], index: 1, kind: input, shape index: {}]   ;;  %s5192_s2 = inlined_call_operand.vmem [shape: f32[16,1], index: 2, kind: input, shape index: {}]   ;;  %s5193_s3 = inlined_call_operand.vmem [shape: f32[16,9], index: 3, kind: input, shape index: {}]   ;;  %s5194_s4 = inlined_call_operand.vmem [shape: f32[16,1], index: 4, kind: input, shape index: {}]   ;;  %s5195_s5 = inlined_call_operand.vmem [shape: f32[256,64], index: 5, kind: input, shape index: {}]   ;;  %s5196_s6 = inlined_call_operand.vmem [shape: f32[8,16], index: 6, kind: input, shape index: {}]   ;;  %s5197_s7 = inlined_call_operand.vmem [shape: f32[8,1], index: 7, kind: input, shape index: {}]   ;;  %s5198_s8 = inlined_call_operand.vmem [shape: f32[32,8], index: 8, kind: input, shape index: {}]   ;;  %s5199_s9 = inlined_call_operand.vmem [shape: f32[32,1], index: 9, kind: input, shape index: {}]   ;;  %s5200_s10 = inlined_call_operand.vmem [shape: f32[32,9], index: 10, kind: input, shape index: {}]   ;;  %s5201_s11 = inlined_call_operand.vmem [shape: f32[32,1], index: 11, kind: input, shape index: {}]   ;;  %s5202_s12 = inlined_call_operand.vmem [shape: f32[32,32], index: 12, kind: input, shape index: {}]   ;;  %s5203_s13 = inlined_call_operand.vmem [shape: f32[32,1], index: 13, kind: input, shape index: {}]   ;;  %s5204_s14 = inlined_call_operand.hbm [shape: f32[2,32,64], index: 14, kind: output, shape index: {}]  }
   0x1   :  { %5270 = sst [smem:[#allocation25_spill]] %s5190_s0 }
   0x2   :  { %5271 = sst [smem:[#allocation26_spill]] %s5191_s1 }
   0x3   :  { %5272 = sst [smem:[#allocation27_spill]] %s5192_s2 }
   0x4   :  { %5273 = sst [smem:[#allocation28_spill]] %s5193_s3 }
   0x5   :  { %19 = vsyncpa [#allocation5], 0 }
   0x6   :  { %21 = vsyncpa [#allocation5 + $0x1], 0  ;;  %s3455_s29 = smov 0   ;;  %s3457_s30 = smov 0  }
   0x7   :  { %s3459_s15 = smov 0   ;;  %s3461_s16 = smov 0  }
   0x8 LB: > { %s3476_s17 = sadd.s32 4294967295, %s3330_s16   ;;  %s2898_s18 = sadd.s32 4294967294, %s3330_s16   ;;  %s3330_s16 = sphi %s3461_s16, %s5379_s16   ;;  %s3326_s15 = sphi %s3459_s15, %s5378_s15   ;;  %s3322_s30 = sphi %s3457_s30, %s5377_s30   ;;  %s3318_s29 = sphi %s3455_s29, %s5376_s29  }
   0x9   : > { %s3480_s19 = sadd.s32 1, %s3330_s16   ;;  %s333_s20 = sadd.s32 1, %s3326_s15 }
   0xa   : > { %s330_s21 = ssub.s32 %s3330_s16, %s3480_s19  ;;  %p343_p0 = scmp.ne.s32.totalorder %s3326_s15, %s3322_s30 }
   0xb   : > { %p331_p1 = scmp.eq.s32.totalorder %s330_s21, 0  ;;  %p344_p2 = scmp.eq.s32.totalorder %s3476_s17, 1 }
   0xc   : > { %p349_p3 = scmp.ne.s32.totalorder %s3322_s30, %s3318_s29  ;;  %p350_p4 = scmp.eq.s32.totalorder %s2898_s18, 1 }
   0xd   : > { %s3491_s22 = scalar_select %p331_p1, %s3326_s15, %s333_s20  }
   0xe   : > { %p3493_p5 = por %p344_p2, %p343_p0  ;;  %p3497_p6 = por %p350_p4, %p349_p3 }
   0xf   : > { %p2901_p7 = scmp.ge.s32.totalorder %s3330_s16, 1  ;;  %p415_p8 = scmp.lt.s32.totalorder %s3330_s16, 3 }
  0x11   : > { %p416_p9 = pnand %p2901_p7, %p415_p8 }
  0x13   : > { %419 = sbr.rel (%p416_p9) target bundleno = 1596 (0x63c), region = 76 }
  0x18   : > { %s5276_s1 = sld [smem:[#allocation26_spill]]  ;;  %v5237_v1 = vmov 1   ;;  %v5242_v2 = vmov 0   ;;  %v3334_v3 = vmov 0.0   ;;  %v5235_v4 = vmov 2   ;;  %s3337_s28 = smov 17  }
  0x19   : > { %3032 = vset.pattern.permute.xlu1 %v5237_v1  ;;  %3031 = vset.pattern.permute.xlu0 %v5242_v2  ;;  %1490 = vst [vmem:[#allocation3] sm:$0xff] %v3334_v3  ;;  %v5233_v6 = vmov 3   ;;  %s5277_s2 = sld [smem:[#allocation27_spill]]  ;;  %s5207_s18 = smov 15   ;;  %v5231_v11 = vmov 4   ;;  %v5229_v12 = vmov 5  }
  0x1a   : > { %3033 = vset.pattern.permute.xlu2 %v5235_v4  ;;  %1491 = vst [vmem:[#allocation3 + $0x8] sm:$0xff] %v3334_v3  ;;  %s5278_s3 = sld [smem:[#allocation28_spill]]  ;;  %s5205_s25 = smov 1   ;;  %vm657_vm0 = vcmask 138240   ;;  %vm751_vm1 = vcmask 121856   ;;  %vm720_vm4 = vcmask 130048  }
  0x1b   : > { %1495 = vst [vmem:[#allocation3 + $0x20] sm:$0xff] %v3334_v3  ;;  %s5209_s26 = smov 127   ;;  %p461_p10 = scmp.lt.s32.totalorder %s3476_s17, 1  ;;  %vm792_vm5 = vcmask 7168   ;;  %vm861_vm8 = vcmask 1039360   ;;  %vm902_vm9 = vcmask 924672  }
  0x1c   : > { %1498 = vst [vmem:[#allocation3 + $0x38] sm:$0xff] %v3334_v3  ;;  %s5279_s0 = sld [smem:[#allocation25_spill]]  ;;  %s3349_s21 = smov 111   ;;  %vm988_vm10 = vcmask 908288   ;;  %vm963_vm11 = vcmask 916480   ;;  %vm1492_vm12 = vcmask 523264  }
  0x1d   : > { %1501 = vst [vmem:[#allocation3 + $0x50] sm:$0xff] %v3334_v3  ;;  %s462_s27 = scalar_select %p461_p10, %s3476_s17, 1  ;;  %vm1554_vm13 = vcmask 72704   ;;  %vm1675_vm15 = vcmask 56320  }
  0x1e   : > { %v467_v0 = vld [vmem:[%s5276_s1] sm:$0xff]  ;;  %v468_v5 = vld [vmem:[%s5276_s1 + $0x8] sm:$0xff] }
  0x1f   : > { %497 = vperm.xlu1 %3032, %v467_v0   ;;  %473 = vperm.xlu0 %3031, %v467_v0   ;;  %v469_v7 = vld [vmem:[%s5277_s2] sm:$0xff]  ;;  %v470_v8 = vld [vmem:[%s5277_s2 + $0x8] sm:$0xff]  ;;  %s2910_s20 = sshll.u32 %s462_s27, 3  ;;  %s5283_s27 = smov 1  }
  0x20   : > { %519 = vperm.xlu2 %3033, %v467_v0   ;;  %v3529_v9 = vld [vmem:[%s5278_s3] sm:$0xff]  ;;  %v3542_v10 = vld [vmem:[%s5278_s3 + $0x8] sm:$0xff]  ;;  %s458_s2 = sand.u32 1, %s3322_s30  }
  0x21   : > { %s2902_s3 = sshll.u32 %s458_s2, 5 }
  0x27   : > { %501 = vperm.xlu1 %3032, %v468_v5   ;;  %478 = vperm.xlu0 %3031, %v468_v5  }
  0x28   : > { %523 = vperm.xlu2 %3033, %v468_v5  }
  0x2f   : > { %3035 = vset.pattern.permute.xlu1 %v5233_v6  ;;  %3034 = vset.pattern.permute.xlu0 %v5233_v6 }
  0x30   : > { %545 = vperm.xlu1 %3035, %v468_v5   ;;  %541 = vperm.xlu0 %3034, %v467_v0  }
  0x31   : > { %3036 = vset.pattern.permute.xlu2 %v5242_v2 }
  0x32   : > { %564 = vperm.xlu2 %3036, %v469_v7  }
  0x38   : > { %3037 = vset.pattern.permute.xlu1 %v5242_v2  ;;  %3043 = vset.pattern.permute.xlu0 %v5237_v1 }
  0x39   : > { %569 = vperm.xlu1 %3037, %v470_v8   ;;  %689 = vperm.xlu0 %3043, %v3529_v9  }
  0x3a   : > { %3039 = vrot.lane.b32.xlu2 %v3334_v3, %s3337_s28 }
  0x41   : > { %672 = vperm.xlu1 %3037, %v3529_v9   ;;  %3046 = vrot.lane.b32.xlu0 %v3334_v3, %s5207_s18  ;;  %s465_s18 = scalar_lea.vmem %s5279_s0, %s2910_s20  ;;  %s3347_s20 = smov 112  }
  0x42   : > { %3058 = vset.pattern.permute.xlu0 %v5231_v11  ;;  %677 = vperm.xlu2 %3036, %v3542_v10   ;;  %v466_v13 = vld [vmem:[%s465_s18] sm:$0xff]  ;;  %s3343_s18 = smov 16  }
  0x43   : > { %v505_v17 = vperm.slane %v466_v13, 5  ;;  %v483_v18 = vperm.slane %v466_v13, 4  ;;  %v504_v19 = vperm.slane %v466_v13, 1  ;;  %v482_v20 = vperm.slane %v466_v13, 0 }
  0x44   : > { %v527_v21 = vperm.slane %v466_v13, 6  ;;  %v526_v24 = vperm.slane %v466_v13, 2  ;;  %v548_v32 = vperm.slane %v466_v13, 3  ;;  %v549_v33 = vperm.slane %v466_v13, 7 }
  0x45   : > { %v509_v22 = vperm.slane %v505_v17, 1  ;;  %v487_v23 = vperm.slane %v483_v18, 0  ;;  %v508_v25 = vperm.slane %v504_v19, 1  ;;  %v486_v26 = vperm.slane %v482_v20, 0 }
  0x46   : > { %v531_v29 = vperm.slane %v527_v21, 2  ;;  %v530_v35 = vperm.slane %v526_v24, 2  ;;  %v552_v40 = vperm.slane %v548_v32, 3  ;;  %v553_v41 = vperm.slane %v549_v33, 3 }
  0x49   : > { %3044 = vset.pattern.permute.xlu1 %v5237_v1  ;;  %822 = vperm.xlu0 %3058, %v3529_v9  }
  0x4a   : > { %693 = vperm.xlu1 %3044, %v3542_v10   ;;  %3050 = vset.pattern.permute.xlu2 %v5235_v4 }
  0x4b   : > { %765 = vperm.xlu2 %3050, %v3529_v9  }
  0x52   : > { %3052 = vrot.lane.b32.xlu1 %v3334_v3, %s5205_s25  ;;  %s5281_s25 = smov 15  }
  0x53   : > { %3056 = vset.pattern.permute.xlu1 %v5233_v6  ;;  %3057 = vset.pattern.permute.xlu2 %v5233_v6 }
  0x54   : > { %810 = vperm.xlu2 %3057, %v3542_v10  }
  0x5a   : > { %806 = vperm.xlu1 %3056, %v3529_v9  }
  0x5c   : > { %3061 = vrot.lane.b32.xlu2 %v3334_v3, %s5209_s26 }
  0x5d   : > { %3065 = vset.pattern.permute.xlu2 %v5229_v12 }
  0x62   : > { %3059 = vset.pattern.permute.xlu1 %v5231_v11 }
  0x63   : > { %826 = vperm.xlu1 %3059, %v3542_v10  }
  0x64   : > { %875 = vperm.xlu2 %3065, %v3529_v9  }
  0x7a   : > { %v520_v16 = vpop.permute.xlu2 %519 }
  0x7b   : > { %v533_v38 = vmul.f32 %v531_v29, %v520_v16  ;;  %v532_v44 = vmul.f32 %v530_v35, %v520_v16 }
  0x82   : > { %v524_v34 = vpop.permute.xlu2 %523 }
  0x83   : > { %v534_v54 = vmul.f32 %v530_v35, %v524_v34  ;;  %v535_v16 = vmul.f32 %v531_v29, %v524_v34 }
  0x8c   : > { %v565_v55 = vpop.permute.xlu2 %564 }
  0x91   : > { %v498_v14 = vpop.permute.xlu1 %497  ;;  %v474_v15 = vpop.permute.xlu0 %473 }
  0x92   : > { %v511_v30 = vmul.f32 %v509_v22, %v498_v14  ;;  %v489_v31 = vmul.f32 %v487_v23, %v474_v15  ;;  %v510_v36 = vmul.f32 %v508_v25, %v498_v14  ;;  %v488_v37 = vmul.f32 %v486_v26, %v474_v15 }
  0x94   : > { %v515_v39 = vadd.f32 %v511_v30, %v489_v31  ;;  %v514_v45 = vadd.f32 %v510_v36, %v488_v37  ;;  %v5239_v30 = vmov 7   ;;  %v5223_v31 = vmov 6  }
  0x95   : > { %3073 = vset.pattern.permute.xlu0 %v5239_v30  ;;  %3071 = vset.pattern.permute.xlu1 %v5223_v31 }
  0x96   : > { %v537_v48 = vadd.f32 %v533_v38, %v515_v39  ;;  %v536_v52 = vadd.f32 %v532_v44, %v514_v45  ;;  %3072 = vset.pattern.permute.xlu2 %v5223_v31 }
  0x99   : > { %v502_v27 = vpop.permute.xlu1 %501  ;;  %v479_v28 = vpop.permute.xlu0 %478 }
  0x9a   : > { %v512_v42 = vmul.f32 %v508_v25, %v502_v27  ;;  %v490_v43 = vmul.f32 %v486_v26, %v479_v28  ;;  %v513_v57 = vmul.f32 %v509_v22, %v502_v27  ;;  %v491_v58 = vmul.f32 %v487_v23, %v479_v28 }
  0x9c   : > { %v516_v51 = vadd.f32 %v512_v42, %v490_v43  ;;  %v517_v0 = vadd.f32 %v513_v57, %v491_v58  ;;  %v3648_v43 = vpop.permute.xlu2 %3039 }
  0x9e   : > { %v538_v61 = vadd.f32 %v534_v54, %v516_v51  ;;  %v539_v19 = vadd.f32 %v535_v16, %v517_v0 }
  0xa2   : > { %v546_v46 = vpop.permute.xlu1 %545  ;;  %v542_v47 = vpop.permute.xlu0 %541 }
  0xa3   : > { %v554_v49 = vmul.f32 %v552_v40, %v542_v47  ;;  %v555_v50 = vmul.f32 %v553_v41, %v542_v47  ;;  %v556_v56 = vmul.f32 %v552_v40, %v546_v46  ;;  %v557_v17 = vmul.f32 %v553_v41, %v546_v46 }
  0xa4   : > { %v3656_v47 = vpop.permute.xlu2 %677 }
  0xa5   : > { %v559_v53 = vadd.f32 %v555_v50, %v537_v48  ;;  %v558_v59 = vadd.f32 %v554_v49, %v536_v52  ;;  %v560_v63 = vadd.f32 %v556_v56, %v538_v61  ;;  %v561_v21 = vadd.f32 %v557_v17, %v539_v19  ;;  %5287 = vst [vmem:[#allocation12_spill] sm:$0xff] %v3656_v47 }
  0xa6   : > { %v5309_v47 = vmov 1  }
  0xa7   : > { %v573_v60 = vadd.f32 %v565_v55, %v559_v53  ;;  %v572_v5 = vadd.f32 %v565_v55, %v558_v59 }
  0xa9   : > { %v577_v62 = vmax.f32 %v573_v60, 0.0  ;;  %v576_v18 = vmax.f32 %v572_v5, 0.0 }
  0xab   : > { %v3568_v7 = vmin.f32 %v577_v62, 6.0  ;;  %v570_v8 = vpop.permute.xlu1 %569  ;;  %v690_v13 = vpop.permute.xlu0 %689  ;;  %v3573_v22 = vmin.f32 %v576_v18, 6.0 }
  0xac   : > { %v574_v14 = vadd.f32 %v570_v8, %v560_v63  ;;  %v696_v15 = vmul.f32 0.0, %v690_v13  ;;  %v575_v23 = vadd.f32 %v570_v8, %v561_v21  ;;  %v3662_v50 = vpop.permute.xlu2 %765 }
  0xad   : > { %649 = vrot.lane.b32.xlu1 %v3568_v7, %s3337_s28  ;;  %v697_v32 = vmul.f32 %v690_v13, %v3573_v22  ;;  %v698_v33 = vmul.f32 %v690_v13, %v3568_v7 }
  0xae   : > { %708 = vrot.lane.b32.xlu2 %v696_v15, %s3343_s18  ;;  %v578_v20 = vmax.f32 %v574_v14, 0.0  ;;  %v579_v26 = vmax.f32 %v575_v23, 0.0  ;;  %v5221_v14 = vmov 8  }
  0xb0   : > { %v3577_v25 = vmin.f32 %v578_v20, 6.0  ;;  %v3583_v27 = vmin.f32 %v579_v26, 6.0 }
  0xb2   : > { %5280 = vst [vmem:[#allocation7_spill] sm:$0xff] %v3577_v25 }
  0xb3   : > { %v3575_v24 = vpop.permute.xlu1 %672  ;;  %5282 = vst [vmem:[#allocation8_spill] sm:$0xff] %v3583_v27  ;;  %v3640_v39 = vpop.permute.xlu0 %3046 }
  0xb4   : > { %v3670_v54 = vpop.permute.xlu2 %810 }
  0xb5   : > { %741 = vrot.lane.b32.xlu1 %v3573_v22, %s5281_s25  ;;  %5289 = vst [vmem:[#allocation14_spill] sm:$0xff] %v3670_v54 }
  0xb6   : > { %653 = vrot.lane.b32.xlu2 %v3577_v25, %s3337_s28 }
  0xbb   : > { %v3646_v42 = vpop.permute.xlu0 %822 }
  0xbc   : > { %v694_v28 = vpop.permute.xlu1 %693  ;;  %v3676_v57 = vpop.permute.xlu2 %3061 }
  0xbd   : > { %749 = vrot.lane.b32.xlu1 %v3583_v27, %s5281_s25  ;;  %v699_v29 = vmul.f32 0.0, %v694_v28  ;;  %v700_v34 = vmul.f32 %v694_v28, %v3577_v25  ;;  %v701_v35 = vmul.f32 %v694_v28, %v3583_v27 }
  0xbe   : > { %743 = vrot.lane.b32.xlu2 %v3568_v7, %s5281_s25 }
  0xbf   : > { %714 = vrot.lane.b32.xlu0 %v699_v29, %s3343_s18  ;;  %v586_v29 = vld [vmem:[%s5194_s4] sm:$0xff] }
  0xc4   : > { %v3631_v36 = vpop.permute.xlu1 %3052  ;;  %v3682_v60 = vpop.permute.xlu2 %875 }
  0xc5   : > { %784 = vrot.lane.b32.xlu1 %v3568_v7, %s5283_s27 }
  0xc6   : > { %782 = vrot.lane.b32.xlu2 %v3573_v22, %s5283_s27 }
  0xc7   : > { %647 = vrot.lane.b32.xlu0 %v3573_v22, %s3337_s28 }
  0xcc   : > { %v3635_v37 = vpop.permute.xlu1 %806 }
  0xcd   : > { %851 = vrot.lane.b32.xlu1 %v3568_v7, %s5209_s26 }
  0xce   : > { %788 = vrot.lane.b32.xlu2 %v3577_v25, %s5283_s27 }
  0xcf   : > { %655 = vrot.lane.b32.xlu0 %v3583_v27, %s3337_s28  ;;  %s3346_s28 = smov 113  }
  0xd5   : > { %857 = vrot.lane.b32.xlu1 %v3583_v27, %s5209_s26  ;;  %v3638_v38 = vpop.permute.xlu1 %826 }
  0xd6   : > { %849 = vrot.lane.b32.xlu2 %v3573_v22, %s5209_s26  ;;  %5284 = vst [vmem:[#allocation9_spill] sm:$0xff] %v3638_v38  ;;  %v3880_v38 = vld [vmem:[%s5195_s5 + $0x28] sm:$0xff] }
  0xd7   : > { %747 = vrot.lane.b32.xlu0 %v3577_v25, %s5281_s25  ;;  %s3359_s25 = smov 7  }
  0xdd   : > { %710 = vrot.lane.b32.xlu1 %v697_v32, %s3343_s18 }
  0xde   : > { %712 = vrot.lane.b32.xlu2 %v698_v33, %s3343_s18  ;;  %v5213_v33 = vmov 12  }
  0xdf   : > { %790 = vrot.lane.b32.xlu0 %v3583_v27, %s5283_s27 }
  0xe5   : > { %716 = vrot.lane.b32.xlu1 %v700_v34, %s3343_s18 }
  0xe6   : > { %718 = vrot.lane.b32.xlu2 %v701_v35, %s3343_s18  ;;  %s5269_s18 = smov 8  }
  0xe7   : > { %855 = vrot.lane.b32.xlu0 %v3577_v25, %s5209_s26  ;;  %s2911_s26 = sshll.u32 %s3476_s17, 5  ;;  %s2821_s17 = scalar_lea.sflag [#allocation5], %s458_s2 }
  0xed   : > { %890 = vrot.lane.b32.xlu1 %v3573_v22, %s3346_s28 }
  0xee   : > { %892 = vrot.lane.b32.xlu2 %v3568_v7, %s3346_s28 }
  0xef   : > { %898 = vrot.lane.b32.xlu0 %v3583_v27, %s3346_s28 }
  0xf5   : > { %3067 = vrot.lane.b32.xlu1 %v3334_v3, %s3346_s28 }
  0xf6   : > { %896 = vrot.lane.b32.xlu2 %v3577_v25, %s3346_s28  ;;  %s5353_s28 = smov 127  }
  0xf7   : > { %932 = vperm.xlu0 %3073, %v3529_v9  }
  0xfd   : > { %916 = vperm.xlu1 %3071, %v3529_v9  }
  0xfe   : > { %920 = vperm.xlu2 %3072, %v3542_v10  }
  0xff   : > { %3081 = vset.pattern.permute.xlu0 %v5221_v14 }
 0x105   : > { %3074 = vset.pattern.permute.xlu1 %v5239_v30  ;;  %v3857_v30 = vld [vmem:[%s5195_s5 + $0x38] sm:$0xff] }
 0x106   : > { %936 = vperm.xlu1 %3074, %v3542_v10   ;;  %3080 = vset.pattern.permute.xlu2 %v5221_v14 }
 0x108   : > { %v3690_v0 = vpop.permute.xlu2 %708 }
 0x10e   : > { %3082 = vset.pattern.permute.xlu1 %v5242_v2 }
 0x110   : > { %v3698_v17 = vpop.permute.xlu2 %653 }
 0x118   : > { %v3702_v23 = vpop.permute.xlu2 %743 }
 0x11f   : > { %v3642_v40 = vpop.permute.xlu1 %649 }
 0x120   : > { %v3707_v26 = vpop.permute.xlu2 %782 }
 0x127   : > { %v3644_v41 = vpop.permute.xlu1 %741 }
 0x128   : > { %v3712_v28 = vpop.permute.xlu2 %788 }
 0x129   : > { %5294 = vst [vmem:[#allocation19_spill] sm:$0xff] %v3712_v28 }
 0x12f   : > { %v3650_v44 = vpop.permute.xlu1 %749 }
 0x130   : > { %5285 = vst [vmem:[#allocation10_spill] sm:$0xff] %v3650_v44  ;;  %v3727_v32 = vpop.permute.xlu2 %849 }
 0x131   : > { %v3652_v45 = vpop.permute.xlu0 %714 }
 0x132   : > { %5286 = vst [vmem:[#allocation11_spill] sm:$0xff] %v3652_v45  ;;  %v3941_v45 = vld [vmem:[%s5195_s5 + $0x10] sm:$0xff] }
 0x137   : > { %v3654_v46 = vpop.permute.xlu1 %784 }
 0x138   : > { %v3735_v34 = vpop.permute.xlu2 %712 }
 0x139   : > { %v3658_v48 = vpop.permute.xlu0 %647 }
 0x13f   : > { %v3660_v49 = vpop.permute.xlu1 %851 }
 0x140   : > { %v3745_v35 = vpop.permute.xlu2 %718 }
 0x141   : > { %v3664_v51 = vpop.permute.xlu0 %655  ;;  %5295 = vst [vmem:[#allocation20_spill] sm:$0xff] %v3745_v35 }
 0x147   : > { %v3666_v52 = vpop.permute.xlu1 %857 }
 0x148   : > { %5288 = vst [vmem:[#allocation13_spill] sm:$0xff] %v3666_v52  ;;  %v3906_v52 = vld [vmem:[%s5195_s5 + $0xa0] sm:$0xff] }
 0x149   : > { %v3668_v53 = vpop.permute.xlu0 %747 }
 0x14f   : > { %v3672_v55 = vpop.permute.xlu1 %710 }
 0x151   : > { %v3674_v56 = vpop.permute.xlu0 %790 }
 0x152   : > { %5290 = vst [vmem:[#allocation15_spill] sm:$0xff] %v3674_v56  ;;  %v659_v56 = vsel %vm657_vm0, %v3658_v48, %v3642_v40  ;;  %v3957_v40 = vld [vmem:[%s5195_s5 + $0x88] sm:$0xff] }
 0x157   : > { %v3678_v58 = vpop.permute.xlu1 %716 }
 0x158   : > { %5291 = vst [vmem:[#allocation16_spill] sm:$0xff] %v3678_v58  ;;  %v3982_v58 = vld [vmem:[%s5195_s5 + $0x80] sm:$0xff] }
 0x159   : > { %v3680_v59 = vpop.permute.xlu0 %855 }
 0x15a   : > { %5292 = vst [vmem:[#allocation17_spill] sm:$0xff] %v3680_v59 }
 0x15f   : > { %v3684_v61 = vpop.permute.xlu1 %890 }
 0x161   : > { %v3686_v62 = vpop.permute.xlu0 %898 }
 0x162   : > { %5293 = vst [vmem:[#allocation18_spill] sm:$0xff] %v3686_v62 }
 0x167   : > { %v3688_v63 = vpop.permute.xlu1 %3067 }
 0x169   : > { %v933_v5 = vpop.permute.xlu0 %932 }
 0x16a   : > { %v939_v8 = vmul.f32 %v933_v5, %v3573_v22  ;;  %v940_v13 = vmul.f32 %v933_v5, %v3568_v7  ;;  %v941_v16 = vmul.f32 0.0, %v933_v5  ;;  %v3751_v5 = vld [vmem:[%s5198_s8 + $0x10] sm:$0xff] }
 0x16c   : > { %951 = vrot.lane.b32.xlu2 %v939_v8, %s3347_s20  ;;  %953 = vrot.lane.b32.xlu1 %v940_v13, %s3347_s20  ;;  %v3757_v8 = vpop.permute.xlu2 %892  ;;  %v5219_v13 = vmov 9  }
 0x16f   : > { %v3696_v15 = vpop.permute.xlu1 %916 }
 0x174   : > { %955 = vrot.lane.b32.xlu2 %v941_v16, %s3347_s20  ;;  %v5217_v16 = vmov 10  }
 0x178   : > { %v937_v18 = vpop.permute.xlu1 %936 }
 0x179   : > { %v943_v19 = vmul.f32 %v937_v18, %v3583_v27  ;;  %v942_v20 = vmul.f32 %v937_v18, %v3577_v25  ;;  %v944_v21 = vmul.f32 0.0, %v937_v18  ;;  %v3765_v18 = vpop.permute.xlu2 %896 }
 0x17a   : > { %5296 = vst [vmem:[#allocation21_spill] sm:$0xff] %v3765_v18  ;;  %v3924_v18 = vld [vmem:[%s5195_s5 + $0x98] sm:$0xff] }
 0x17b   : > { %959 = vrot.lane.b32.xlu1 %v943_v19, %s3347_s20  ;;  %957 = vrot.lane.b32.xlu0 %v942_v20, %s3347_s20  ;;  %v3770_v19 = vld [vmem:[%s5198_s8] sm:$0xff]  ;;  %v5215_v20 = vmov 11  }
 0x17c   : > { %961 = vrot.lane.b32.xlu2 %v944_v21, %s3347_s20  ;;  %v5211_v21 = vmov 13   ;;  %s3357_s20 = smov 9  }
 0x183   : > { %978 = vrot.lane.b32.xlu1 %v3568_v7, %s3349_s21  ;;  %976 = vrot.lane.b32.xlu0 %v3573_v22, %s3349_s21 }
 0x184   : > { %3076 = vrot.lane.b32.xlu2 %v3334_v3, %s3349_s21  ;;  %v587_v3 = vld [vmem:[%s5194_s4 + $0x8] sm:$0xff] }
 0x18b   : > { %984 = vrot.lane.b32.xlu1 %v3583_v27, %s3349_s21  ;;  %982 = vrot.lane.b32.xlu0 %v3577_v25, %s3349_s21  ;;  %v3875_v27 = vld [vmem:[%s5195_s5 + $0xb0] sm:$0xff]  ;;  %v3892_v25 = vld [vmem:[%s5195_s5 + $0xa8] sm:$0xff]  ;;  %s3362_s21 = smov 119  }
 0x18c   : > { %1002 = vperm.xlu2 %3080, %v3529_v9   ;;  %v3725_v9 = vld [vmem:[%s5196_s6] sm:$0xff] }
 0x193   : > { %1019 = vperm.xlu1 %3082, %v586_v29   ;;  %1006 = vperm.xlu0 %3081, %v3542_v10   ;;  %v1054_v29 = vld [vmem:[%s5195_s5 + $0x78] sm:$0xff] }
 0x194   : > { %3083 = vset.pattern.permute.xlu2 %v5242_v2  ;;  %1071 = vmatpush.msra.mxu0 %v1054_v29 }
 0x195   : > { %1024 = vperm.xlu2 %3083, %v587_v3   ;;  %v1070_v3 = vld [vmem:[%s5195_s5 + $0xf8] sm:$0xff]  ;;  %2912 = vmatpush.msra.mxu2 %v1054_v29  ;;  %v1068_v29 = vld [vmem:[%s5195_s5 + $0xe8] sm:$0xff] }
 0x196   : > { %1094 = vmatpush.msra.mxu1 %v1070_v3  ;;  %2928 = vmatpush.msra.mxu3 %v1070_v3  ;;  %v5225_v3 = vmov 15  }
 0x19b   : > { %1121 = vperm.xlu1 %3082, %v3725_v9   ;;  %3093 = vset.pattern.permute.xlu0 %v5213_v33  ;;  %v1069_v33 = vld [vmem:[%s5195_s5 + $0xf0] sm:$0xff] }
 0x19c   : > { %1205 = vperm.xlu0 %3093, %v3725_v9   ;;  %1095 = vmatpush.msra.mxu1 %v1069_v33 }
 0x19d   : > { %3084 = vset.pattern.permute.xlu2 %v5237_v1  ;;  %2929 = vmatpush.msra.mxu3 %v1069_v33  ;;  %v1064_v33 = vld [vmem:[%s5195_s5 + $0xc8] sm:$0xff] }
 0x19e   : > { %1128 = vperm.xlu2 %3084, %v3725_v9   ;;  %1096 = vmatpush.msra.mxu1 %v1068_v29 }
 0x19f   : > { %2930 = vmatpush.msra.mxu3 %v1068_v29  ;;  %v3846_v29 = vld [vmem:[%s5195_s5 + $0xc0] sm:$0xff] }
 0x1a3   : > { %3085 = vset.pattern.permute.xlu1 %v5233_v6  ;;  %v1065_v6 = vld [vmem:[%s5195_s5 + $0xd0] sm:$0xff] }
 0x1a4   : > { %1142 = vperm.xlu1 %3085, %v3725_v9   ;;  %3094 = vset.pattern.permute.xlu0 %v5235_v4  ;;  %v1048_v4 = vld [vmem:[%s5195_s5 + $0x48] sm:$0xff] }
 0x1a5   : > { %769 = vperm.xlu0 %3094, %v3542_v10  }
 0x1a6   : > { %3086 = vset.pattern.permute.xlu2 %v5231_v11  ;;  %v1049_v11 = vld [vmem:[%s5195_s5 + $0x50] sm:$0xff] }
 0x1a7   : > { %1149 = vperm.xlu2 %3086, %v3725_v9  }
 0x1ac   : > { %3087 = vset.pattern.permute.xlu1 %v5229_v12 }
 0x1ad   : > { %1156 = vperm.xlu1 %3087, %v3725_v9   ;;  %1135 = vperm.xlu0 %3094, %v3725_v9  }
 0x1af   : > { %3088 = vset.pattern.permute.xlu2 %v5223_v31 }
 0x1b0   : > { %1163 = vperm.xlu2 %3088, %v3725_v9  }
 0x1b5   : > { %3089 = vset.pattern.permute.xlu1 %v5221_v14  ;;  %1309 = vperm.xlu0 %3094, %v3751_v5   ;;  %v1067_v14 = vld [vmem:[%s5195_s5 + $0xe0] sm:$0xff] }
 0x1b6   : > { %1177 = vperm.xlu1 %3089, %v3725_v9   ;;  %1097 = vmatpush.msra.mxu1 %v1067_v14 }
 0x1b7   : > { %2931 = vmatpush.msra.mxu3 %v1067_v14  ;;  %v3041_v14 = vunpack.i.l.bf16 %v3648_v43 }
 0x1b8   : > { %3090 = vset.pattern.permute.xlu2 %v5219_v13  ;;  %v1051_v13 = vld [vmem:[%s5195_s5 + $0x60] sm:$0xff] }
 0x1b9   : > { %1184 = vperm.xlu2 %3090, %v3725_v9   ;;  %v658_v54 = vsel %vm657_vm0, %v3041_v14, %v3658_v48  ;;  %v3951_v14 = vld [vmem:[%s5195_s5 + $0x8] sm:$0xff] }
 0x1bd   : > { %3104 = vset.pattern.permute.xlu0 %v5229_v12  ;;  %v1066_v12 = vld [vmem:[%s5195_s5 + $0xd8] sm:$0xff] }
 0x1be   : > { %3091 = vset.pattern.permute.xlu1 %v5217_v16  ;;  %879 = vperm.xlu0 %3104, %v3542_v10   ;;  %v3777_v10 = vpop.permute.xlu2 %920  ;;  %v5227_v16 = vmov 14  }
 0x1bf   : > { %1191 = vperm.xlu1 %3091, %v3725_v9   ;;  %5297 = vst [vmem:[#allocation22_spill] sm:$0xff] %v3777_v10  ;;  %1098 = vmatpush.msra.mxu1 %v1066_v12  ;;  %v3862_v10 = vld [vmem:[%s5195_s5 + $0xb8] sm:$0xff] }
 0x1c0   : > { %2932 = vmatpush.msra.mxu3 %v1066_v12  ;;  %v3919_v12 = vld [vmem:[%s5195_s5 + $0x18] sm:$0xff] }
 0x1c1   : > { %3092 = vset.pattern.permute.xlu2 %v5215_v20  ;;  %v1052_v20 = vld [vmem:[%s5195_s5 + $0x68] sm:$0xff]  ;;  %1099 = vmatpush.msra.mxu1 %v1065_v6 }
 0x1c2   : > { %1198 = vperm.xlu2 %3092, %v3725_v9   ;;  %2933 = vmatpush.msra.mxu3 %v1065_v6  ;;  %v3946_v6 = vld [vmem:[%s5195_s5 + $0x90] sm:$0xff] }
 0x1c3   : > { %1100 = vmatpush.msra.mxu1 %v1064_v33 }
 0x1c4   : > { %2934 = vmatpush.msra.mxu3 %v1064_v33 }
 0x1c5   : > { %1101 = vmatpush.msra.mxu1 %v3846_v29 }
 0x1c6   : > { %1376 = vperm.xlu0 %3104, %v3770_v19   ;;  %2935 = vmatpush.msra.mxu3 %v3846_v29  ;;  %v3054_v29 = vunpack.i.l.bf16 %v3631_v36 }
 0x1c7   : > { %3095 = vset.pattern.permute.xlu1 %v5211_v21  ;;  %v1053_v21 = vld [vmem:[%s5195_s5 + $0x70] sm:$0xff]  ;;  %1102 = vmatpush.msra.mxu1 %v3862_v10 }
 0x1c8   : > { %1212 = vperm.xlu1 %3095, %v3725_v9   ;;  %1072 = vmatpush.msra.mxu0 %v1053_v21 }
 0x1c9   : > { %2913 = vmatpush.msra.mxu2 %v1053_v21  ;;  %v1118_v21 = vld [vmem:[%s5197_s7] sm:$0xff]  ;;  %1103 = vmatpush.msra.mxu1 %v3875_v27 }
 0x1ca   : > { %3096 = vset.pattern.permute.xlu2 %v5227_v16  ;;  %1073 = vmatpush.msra.mxu0 %v1052_v20  ;;  %v1050_v16 = vld [vmem:[%s5195_s5 + $0x58] sm:$0xff] }
 0x1cb   : > { %1219 = vperm.xlu2 %3096, %v3725_v9   ;;  %2914 = vmatpush.msra.mxu2 %v1052_v20  ;;  %v3841_v20 = vld [vmem:[%s5195_s5 + $0x40] sm:$0xff] }
 0x1cc   : > { %1074 = vmatpush.msra.mxu0 %v1051_v13  ;;  %1104 = vmatpush.msra.mxu1 %v3892_v25 }
 0x1cd   : > { %2915 = vmatpush.msra.mxu2 %v1051_v13  ;;  %v600_v13 = vlaneseq  ;;  %2936 = vmatpush.msra.mxu3 %v3862_v10 }
 0x1ce   : > { %3112 = vset.pattern.permute.xlu0 %v5223_v31  ;;  %v3807_v31 = vpop.permute.xlu2 %951  ;;  %1075 = vmatpush.msra.mxu0 %v1050_v16 }
 0x1cf   : > { %v3894_v59 = vand.u32 127, %v600_v13  ;;  %2916 = vmatpush.msra.mxu2 %v1050_v16  ;;  %1105 = vmatpush.msra.mxu1 %v3906_v52 }
 0x1d0   : > { %3097 = vset.pattern.permute.xlu1 %v5225_v3  ;;  %v3812_v3 = vld [vmem:[%s5198_s8 + $0x8] sm:$0xff]  ;;  %1076 = vmatpush.msra.mxu0 %v1049_v11 }
 0x1d1   : > { %1226 = vperm.xlu1 %3097, %v3725_v9   ;;  %1405 = vperm.xlu0 %3112, %v3812_v3   ;;  %5299 = vst [vmem:[#allocation23_spill] sm:$0xff] %v3894_v59  ;;  %v602_v13 = vadd.s32 128, %v3894_v59  ;;  %v607_v16 = vand.u32 15, %v3894_v59 }
 0x1d2   : > { %1077 = vmatpush.msra.mxu0 %v1048_v4  ;;  %2917 = vmatpush.msra.mxu2 %v1049_v11  ;;  %v3048_v11 = vunpack.i.l.bf16 %v3640_v39 }
 0x1d3   : > { %3098 = vset.pattern.permute.xlu2 %v5242_v2  ;;  %v614_v59 = vand.u32 15, %v602_v13  ;;  %1106 = vmatpush.msra.mxu1 %v3924_v18  ;;  %vm3959_vm2 = vcmp.ge.s32.totalorder %v607_v16, 1  ;;  %vm3985_vm6 = vcmp.le.s32.totalorder %v607_v16, 14  ;;  %v722_v16 = vsel %vm720_vm4, %v3672_v55, %v3735_v34  ;;  %v5331_v13 = vld [vmem:[#allocation22_spill] sm:$0xff] }
 0x1d4   : > { %1078 = vmatpush.msra.mxu0 %v3841_v20  ;;  %1234 = vperm.xlu2 %3098, %v1118_v21   ;;  %v3870_v21 = vld [vmem:[%s5195_s5 + $0x30] sm:$0xff]  ;;  %v666_v33 = vsel %vm3959_vm2, %v658_v54, 0.0  ;;  %v752_v54 = vsel %vm751_vm1, %v3048_v11, %v3644_v41  ;;  %v793_v11 = vsel %vm792_vm5, %v3054_v29, %v3707_v26 }
 0x1d5   : > { %2918 = vmatpush.msra.mxu2 %v1048_v4  ;;  %vm3963_vm3 = vcmp.ge.s32.totalorder %v614_v59, 1  ;;  %1107 = vmatpush.msra.mxu1 %v3946_v6  ;;  %v3971_v4 = vld [vmem:[%s5195_s5] sm:$0xff]  ;;  %vm3989_vm7 = vcmp.le.s32.totalorder %v614_v59, 14  ;;  %v721_v59 = vsel %vm720_vm4, %v3690_v0, %v3672_v55  ;;  %v760_v0 = vsel %vm3985_vm6, %v752_v54, 0.0 }
 0x1d6   : > { %v3851_v1 = vpop.permute.xlu2 %955  ;;  %1079 = vmatpush.msra.mxu0 %v3857_v30  ;;  %v772_v54 = vmul.f32 %v3662_v50, %v760_v0  ;;  %2937 = vmatpush.msra.mxu3 %v3875_v27 }
 0x1d7   : > { %2919 = vmatpush.msra.mxu2 %v3841_v20  ;;  %1108 = vmatpush.msra.mxu1 %v3957_v40 }
 0x1d8   : > { %1080 = vmatpush.msra.mxu0 %v3870_v21  ;;  %2938 = vmatpush.msra.mxu3 %v3892_v25 }
 0x1d9   : > { %3099 = vset.pattern.permute.xlu1 %v5242_v2  ;;  %v5298_v2 = vmov 7   ;;  %1109 = vmatpush.msra.mxu1 %v3982_v58 }
 0x1da   : > { %1253 = vperm.xlu1 %3099, %v3812_v3   ;;  %3113 = vset.pattern.permute.xlu0 %v5298_v2  ;;  %v3886_v2 = vld [vmem:[%s5198_s8 + $0x18] sm:$0xff] }
 0x1db   : > { %1170 = vperm.xlu0 %3113, %v3725_v9   ;;  %v3900_v9 = vld [vmem:[%s5195_s5 + $0x20] sm:$0xff]  ;;  %1081 = vmatpush.msra.mxu0 %v3880_v38 }
 0x1dc   : > { %1258 = vperm.xlu2 %3098, %v3751_v5   ;;  %2920 = vmatpush.msra.mxu2 %v3857_v30  ;;  %v801_v30 = vsel %vm3959_vm2, %v793_v11, 0.0 }
 0x1dd   : > { %1082 = vmatpush.msra.mxu0 %v3900_v9  ;;  %v813_v27 = vmul.f32 %v3635_v37, %v801_v30  ;;  %2939 = vmatpush.msra.mxu3 %v3906_v52  ;;  %v5311_v52 = vmov 0  }
 0x1de   : > { %v3926_v62 = vpop.permute.xlu1 %953  ;;  %v3935_v35 = vpop.permute.xlu2 %961  ;;  %2921 = vmatpush.msra.mxu2 %v3870_v21  ;;  %v5310_v21 = vmov 2  }
 0x1df   : > { %1083 = vmatpush.msra.mxu0 %v3919_v12  ;;  %5300 = vst [vmem:[#allocation24_spill] sm:$0xff] %v3935_v35  ;;  %v667_v35 = vsel %vm3963_vm3, %v659_v56, 0.0  ;;  %v753_v56 = vsel %vm751_vm1, %v3644_v41, %v3702_v23  ;;  %v680_v41 = vmul.f32 %v3575_v24, %v666_v33  ;;  %2940 = vmatpush.msra.mxu3 %v3924_v18 }
 0x1e0   : > { %v681_v23 = vmul.f32 %v3575_v24, %v667_v35  ;;  %v761_v55 = vsel %vm3989_vm7, %v753_v56, 0.0  ;;  %v794_v24 = vsel %vm792_vm5, %v3707_v26, %v3654_v46  ;;  %2922 = vmatpush.msra.mxu2 %v3880_v38  ;;  %v3063_v26 = vunpack.i.l.bf16 %v3676_v57 }
 0x1e1   : > { %1084 = vmatpush.msra.mxu0 %v3941_v45  ;;  %v729_v35 = vadd.f32 %v721_v59, %v680_v41  ;;  %v773_v56 = vmul.f32 %v3662_v50, %v761_v55  ;;  %v802_v46 = vsel %vm3963_vm3, %v794_v24, 0.0  ;;  %v862_v38 = vsel %vm861_vm8, %v3727_v32, %v3660_v49  ;;  %2941 = vmatpush.msra.mxu3 %v3946_v6 }
 0x1e2   : > { %1263 = vperm.xlu1 %3099, %v3886_v2   ;;  %v730_v33 = vadd.f32 %v722_v16, %v681_v23  ;;  %2923 = vmatpush.msra.mxu2 %v3900_v9  ;;  %v814_v50 = vmul.f32 %v3635_v37, %v802_v46  ;;  %v3069_v16 = vunpack.i.l.bf16 %v3688_v63  ;;  %v863_v37 = vsel %vm861_vm8, %v3660_v49, %v3063_v26 }
 0x1e3   : > { %1085 = vmatpush.msra.mxu0 %v3951_v14  ;;  %1434 = vperm.xlu0 %3113, %v3751_v5   ;;  %v776_v10 = vadd.f32 %v772_v54, %v729_v35  ;;  %v829_v32 = vmul.f32 %v3646_v42, %v3573_v22  ;;  %v870_v49 = vsel %vm3985_vm6, %v862_v38, 0.0  ;;  %v903_v18 = vsel %vm902_vm9, %v3684_v61, %v3757_v8 }
 0x1e4   : > { %3100 = vset.pattern.permute.xlu2 %v5309_v47  ;;  %v777_v59 = vadd.f32 %v773_v56, %v730_v33  ;;  %2924 = vmatpush.msra.mxu2 %v3919_v12  ;;  %v830_v12 = vmul.f32 %v3646_v42, %v3568_v7  ;;  %v904_v0 = vsel %vm902_vm9, %v3757_v8, %v3069_v16  ;;  %v871_v22 = vsel %vm3989_vm7, %v863_v37, 0.0 }
 0x1e5   : > { %1086 = vmatpush.msra.mxu0 %v3971_v4  ;;  %1276 = vperm.xlu2 %3100, %v3770_v19   ;;  %v817_v9 = vadd.f32 %v813_v27, %v776_v10  ;;  %v882_v61 = vmul.f32 %v3682_v60, %v870_v49  ;;  %v911_v8 = vsel %vm3959_vm2, %v903_v18, 0.0  ;;  %v912_v6 = vsel %vm3963_vm3, %v904_v0, 0.0 }
 0x1e6   : > { %v4028_v29 = vpop.permute.xlu2 %3076  ;;  %v818_v23 = vadd.f32 %v814_v50, %v777_v59  ;;  %2925 = vmatpush.msra.mxu2 %v3941_v45  ;;  %2942 = vmatpush.msra.mxu3 %v3957_v40  ;;  %v923_v35 = vmul.f32 %v3696_v15, %v911_v8  ;;  %v924_v33 = vmul.f32 %v3696_v15, %v912_v6  ;;  %v5312_v38 = vmov 3  }
 0x1e7   : > { %v3078_v11 = vunpack.i.l.bf16 %v4028_v29  ;;  %v833_v45 = vadd.f32 %v829_v32, %v817_v9  ;;  %v965_v15 = vsel %vm963_vm11, %v3926_v62, %v3851_v1  ;;  %v5313_v49 = vmov 4  }
 0x1e8   : > { %2926 = vmatpush.msra.mxu2 %v3951_v14  ;;  %v834_v7 = vadd.f32 %v830_v12, %v818_v23  ;;  %v883_v14 = vmul.f32 %v3682_v60, %v871_v22  ;;  %2943 = vmatpush.msra.mxu3 %v3982_v58  ;;  %v964_v58 = vsel %vm963_vm11, %v3807_v31, %v3926_v62  ;;  %v3049_v8 = vunpack.i.h.bf16 %v3640_v39 }
 0x1e9   : > { %v886_v60 = vadd.f32 %v882_v61, %v833_v45  ;;  %v5314_v61 = vmov 5   ;;  %v661_v6 = vsel %vm657_vm0, %v3698_v17, %v3664_v51 }
 0x1ea   : > { %3101 = vset.pattern.permute.xlu1 %v5309_v47  ;;  %2927 = vmatpush.msra.mxu2 %v3971_v4  ;;  %v887_v30 = vadd.f32 %v883_v14, %v834_v7  ;;  %v3042_v7 = vunpack.i.h.bf16 %v3648_v43  ;;  %v754_v39 = vsel %vm751_vm1, %v3049_v8, %v3668_v53 }
 0x1eb   : > { %1284 = vperm.xlu1 %3101, %v3751_v5   ;;  %3117 = vset.pattern.permute.xlu0 %v5311_v52  ;;  %v927_v46 = vadd.f32 %v923_v35, %v886_v60 }
 0x1ec   : > { %1248 = vperm.xlu0 %3117, %v3770_v19   ;;  %v928_v26 = vadd.f32 %v924_v33, %v887_v30  ;;  %v3055_v33 = vunpack.i.h.bf16 %v3631_v36  ;;  %v5317_v30 = vld [vmem:[#allocation19_spill] sm:$0xff]  ;;  %v5320_v36 = vld [vmem:[#allocation20_spill] sm:$0xff] }
 0x1ed   : > { %v4019_v34 = vpop.permute.xlu0 %957  ;;  %v4021_v44 = vpop.permute.xlu1 %959  ;;  %1288 = vperm.xlu2 %3100, %v3886_v2   ;;  %v972_v50 = vadd.f32 %v964_v58, %v927_v46  ;;  %v5319_v46 = vld [vmem:[#allocation11_spill] sm:$0xff] }
 0x1ee   : > { %v1003_v55 = vpop.permute.xlu2 %1002  ;;  %v973_v16 = vadd.f32 %v965_v15, %v928_v26  ;;  %v795_v58 = vsel %vm792_vm5, %v3055_v33, %v5317_v30  ;;  %v5318_v15 = vld [vmem:[#allocation16_spill] sm:$0xff] }
 0x1ef   : > { %v723_v26 = vsel %vm720_vm4, %v5319_v46, %v5318_v15 }
 0x1f3   : > { %3102 = vset.pattern.permute.xlu1 %v5310_v21 }
 0x1f4   : > { %1301 = vperm.xlu1 %3102, %v3770_v19  }
 0x1f5   : > { %v977_v25 = vpop.permute.xlu0 %976  ;;  %v979_v41 = vpop.permute.xlu1 %978  ;;  %3103 = vset.pattern.permute.xlu2 %v5310_v21 }
 0x1f6   : > { %v989_v42 = vsel %vm988_vm10, %v977_v25, %v979_v41  ;;  %v990_v24 = vsel %vm988_vm10, %v979_v41, %v3078_v11  ;;  %1305 = vperm.xlu2 %3103, %v3812_v3   ;;  %v4107_v27 = vpop.permute.xlu2 %1024 }
 0x1f7   : > { %v997_v40 = vsel %vm3985_vm6, %v989_v42, 0.0  ;;  %v998_v54 = vsel %vm3989_vm7, %v990_v24, 0.0  ;;  %v660_v24 = vsel %vm657_vm0, %v3042_v7, %v3698_v17  ;;  %v669_v17 = vsel %vm3963_vm3, %v661_v6, 0.0 }
 0x1f8   : > { %v1009_v10 = vmul.f32 %v1003_v55, %v997_v40  ;;  %v1010_v59 = vmul.f32 %v1003_v55, %v998_v54  ;;  %v668_v43 = vsel %vm3959_vm2, %v660_v24, 0.0  ;;  %v5315_v40 = vld [vmem:[#allocation10_spill] sm:$0xff]  ;;  %v5316_v54 = vld [vmem:[#allocation12_spill] sm:$0xff]  ;;  %v3070_v7 = vunpack.i.h.bf16 %v3688_v63 }
 0x1f9   : > { %v755_v51 = vsel %vm751_vm1, %v3668_v53, %v5315_v40  ;;  %v682_v60 = vmul.f32 %v5316_v54, %v668_v43  ;;  %v5322_v43 = vld [vmem:[#allocation14_spill] sm:$0xff]  ;;  %vm1643_vm1 = vcmask 64512  }
 0x1fa   : > { %v1013_v25 = vadd.f32 %v1009_v10, %v972_v50  ;;  %v1014_v41 = vadd.f32 %v1010_v59, %v973_v16  ;;  %v724_v10 = vsel %vm720_vm4, %v5318_v15, %v5320_v36  ;;  %v762_v59 = vsel %vm3985_vm6, %v754_v39, 0.0  ;;  %v5323_v40 = vld [vmem:[#allocation18_spill] sm:$0xff]  ;;  %v5328_v36 = vld [vmem:[#allocation9_spill] sm:$0xff] }
 0x1fb   : > { %v763_v53 = vsel %vm3989_vm7, %v755_v51, 0.0  ;;  %v683_v16 = vmul.f32 %v5316_v54, %v669_v17  ;;  %v5324_v51 = vld [vmem:[#allocation21_spill] sm:$0xff]  ;;  %v906_v63 = vsel %vm902_vm9, %v5323_v40, %v3070_v7 }
 0x1fc   : > { %1313 = vperm.xlu1 %3102, %v3886_v2   ;;  %v905_v17 = vsel %vm902_vm9, %v5324_v51, %v5323_v40 }
 0x1fd   : > { %v4095_v56 = vpop.permute.xlu0 %982  ;;  %v4097_v4 = vpop.permute.xlu1 %984 }
 0x1fe   : > { %3105 = vset.pattern.permute.xlu2 %v5312_v38  ;;  %v4115_v12 = vpop.permute.xlu2 %1128 }
 0x1ff   : > { %1326 = vperm.xlu2 %3105, %v3770_v19  }
 0x204   : > { %3106 = vset.pattern.permute.xlu1 %v5312_v38 }
 0x205   : > { %1330 = vperm.xlu1 %3106, %v3812_v3   ;;  %v1020_v37 = vpop.permute.xlu1 %1019  ;;  %v4111_v31 = vpop.permute.xlu0 %1006 }
 0x206   : > { %v1027_v9 = vadd.f32 %v1020_v37, %v1013_v25  ;;  %v1028_v23 = vadd.f32 %v1020_v37, %v1014_v41  ;;  %v4124_v55 = vpop.permute.xlu2 %1149  ;;  %v5321_v25 = vld [vmem:[#allocation15_spill] sm:$0xff] }
 0x207   : > { %1334 = vperm.xlu2 %3105, %v3751_v5   ;;  %v796_v41 = vsel %vm792_vm5, %v5317_v30, %v5321_v25  ;;  %v5326_v30 = vld [vmem:[#allocation17_spill] sm:$0xff]  ;;  %v914_v25 = vsel %vm3963_vm3, %v906_v63, 0.0  ;;  %v966_v63 = vsel %vm963_vm11, %v4019_v34, %v4021_v44 }
 0x208   : > { %v1031_v1 = vmax.f32 %v1027_v9, 0.0  ;;  %v1032_v62 = vmax.f32 %v1028_v23, 0.0  ;;  %v731_v23 = vadd.f32 %v723_v26, %v682_v60  ;;  %v5325_v60 = vld [vmem:[#allocation13_spill] sm:$0xff]  ;;  %v5327_v26 = vld [vmem:[#allocation7_spill] sm:$0xff] }
 0x20a   : > { %v1035_v11 = vmin.f32 %v1031_v1, 6.0  ;;  %v1036_v32 = vmin.f32 %v1032_v62, 6.0  ;;  %v732_v1 = vadd.f32 %v724_v10, %v683_v16  ;;  %v831_v10 = vmul.f32 %v5328_v36, %v5327_v26 }
 0x20b   : > { %v913_v16 = vsel %vm3959_vm2, %v905_v17, 0.0  ;;  %v5333_v26 = vmov 7  }
 0x20c   : > { %1087 = vmatmul.f32.vlgmr.msra.gmra.mxu0 %v1035_v11  ;;  %1110 = vmatmul.f32.vlgmr.msra.gmra.mxu1 %v1036_v32  ;;  %v803_v11 = vsel %vm3959_vm2, %v795_v58, 0.0  ;;  %v804_v32 = vsel %vm3963_vm3, %v796_v41, 0.0  ;;  %v864_v58 = vsel %vm861_vm8, %v5326_v30, %v5325_v60  ;;  %v3079_v41 = vunpack.i.h.bf16 %v4028_v29 }
 0x20d   : > { %3107 = vset.pattern.permute.xlu1 %v5313_v49  ;;  %v4118_v18 = vpop.permute.xlu1 %1121  ;;  %v815_v33 = vmul.f32 %v5322_v43, %v803_v11  ;;  %v816_v39 = vmul.f32 %v5322_v43, %v804_v32  ;;  %v925_v29 = vmul.f32 %v5331_v13, %v913_v16 }
 0x20e   : > { %1351 = vperm.xlu1 %3107, %v3770_v19   ;;  %v4121_v0 = vpop.permute.xlu0 %1205  ;;  %v4132_v42 = vpop.permute.xlu2 %1163  ;;  %v992_v43 = vsel %vm988_vm10, %v4097_v4, %v3079_v41  ;;  %v1243_v41 = vld [vmem:[%s5199_s9 + $0x8] sm:$0xff] }
 0x20f   : > { %3108 = vset.pattern.permute.xlu2 %v5313_v49 }
 0x210   : > { %1355 = vperm.xlu2 %3108, %v3812_v3  }
 0x216   : > { %1359 = vperm.xlu1 %3107, %v3751_v5   ;;  %v4127_v22 = vpop.permute.xlu1 %1142  ;;  %v4170_v50 = vpop.permute.xlu2 %1184 }
 0x217   : > { %v770_v45 = vpop.permute.xlu0 %769 }
 0x218   : > { %1363 = vperm.xlu2 %3108, %v3886_v2   ;;  %v774_v37 = vmul.f32 %v770_v45, %v762_v59  ;;  %v775_v9 = vmul.f32 %v770_v45, %v763_v53  ;;  %v3064_v45 = vunpack.i.h.bf16 %v3676_v57  ;;  %v5329_v59 = vld [vmem:[#allocation8_spill] sm:$0xff] }
 0x219   : > { %v832_v53 = vmul.f32 %v5328_v36, %v5329_v59 }
 0x21a   : > { %v778_v8 = vadd.f32 %v774_v37, %v731_v23  ;;  %v779_v6 = vadd.f32 %v775_v9, %v732_v1  ;;  %v865_v57 = vsel %vm861_vm8, %v5325_v60, %v3064_v45  ;;  %v5330_v37 = vmov 6   ;;  %v5332_v60 = vld [vmem:[#allocation24_spill] sm:$0xff] }
 0x21b   : > { %v872_v9 = vsel %vm3985_vm6, %v864_v58, 0.0  ;;  %v873_v23 = vsel %vm3989_vm7, %v865_v57, 0.0  ;;  %v967_v57 = vsel %vm963_vm11, %v4021_v44, %v5332_v60 }
 0x21c   : > { %v819_v15 = vadd.f32 %v815_v33, %v778_v8  ;;  %v820_v46 = vadd.f32 %v816_v39, %v779_v6  ;;  %v926_v8 = vmul.f32 %v5331_v13, %v914_v25  ;;  %v991_v6 = vsel %vm988_vm10, %v4095_v56, %v4097_v4 }
 0x21d   : > { %v999_v56 = vsel %vm3985_vm6, %v991_v6, 0.0  ;;  %v1000_v4 = vsel %vm3989_vm7, %v992_v43, 0.0  ;;  %v4324_v6 = vld [vmem:[%s5200_s10 + $0x18] sm:$0xff] }
 0x21e   : > { %3109 = vset.pattern.permute.xlu1 %v5314_v61  ;;  %v4196_v54 = vpop.permute.xlu2 %1198  ;;  %v835_v11 = vadd.f32 %v831_v10, %v819_v15  ;;  %v836_v32 = vadd.f32 %v832_v53, %v820_v46  ;;  %v1011_v30 = vmul.f32 %v4111_v31, %v999_v56  ;;  %v1012_v58 = vmul.f32 %v4111_v31, %v1000_v4 }
 0x21f   : > { %1380 = vperm.xlu1 %3109, %v3812_v3   ;;  %v4142_v14 = vpop.permute.xlu0 %1135  ;;  %v4144_v35 = vpop.permute.xlu1 %1156  ;;  %5336 = vst [vmem:[#allocation19_spill] sm:$0xff] %v4324_v6 }
 0x220   : > { %3110 = vset.pattern.permute.xlu2 %v5314_v61 }
 0x221   : > { %1384 = vperm.xlu2 %3110, %v3751_v5  }
 0x226   : > { %v4232_v40 = vpop.permute.xlu2 %1219 }
 0x227   : > { %1388 = vperm.xlu1 %3109, %v3886_v2   ;;  %v4177_v62 = vpop.permute.xlu0 %1309 }
 0x228   : > { %v4184_v24 = vpop.permute.xlu1 %1177 }
 0x229   : > { %3111 = vset.pattern.permute.xlu2 %v5330_v37 }
 0x22a   : > { %1401 = vperm.xlu2 %3111, %v3770_v19  }
 0x22e   : > { %v4255_v20 = vpop.permute.xlu2 %1234 }
 0x22f   : > { %3114 = vset.pattern.permute.xlu1 %v5330_v37 }
 0x230   : > { %1409 = vperm.xlu1 %3114, %v3751_v5   ;;  %v880_v1 = vpop.permute.xlu0 %879  ;;  %v1245_v5 = vld [vmem:[%s5199_s9 + $0x18] sm:$0xff] }
 0x231   : > { %v884_v48 = vmul.f32 %v880_v1, %v872_v9  ;;  %v885_v7 = vmul.f32 %v880_v1, %v873_v23  ;;  %v4218_v45 = vpop.permute.xlu1 %1191  ;;  %1467 = vperm.xlu0 %3117, %v1245_v5   ;;  %v1242_v9 = vld [vmem:[%s5199_s9] sm:$0xff] }
 0x232   : > { %1413 = vperm.xlu2 %3111, %v3886_v2   ;;  %v4284_v1 = vld [vmem:[#allocation3] sm:$0xff] }
 0x233   : > { %v888_v33 = vadd.f32 %v884_v48, %v835_v11  ;;  %v889_v39 = vadd.f32 %v885_v7, %v836_v32  ;;  %v4288_v11 = vpack.i.bf16 %v4284_v1, %v4284_v1  ;;  %v1244_v32 = vld [vmem:[%s5199_s9 + $0x10] sm:$0xff] }
 0x235   : > { %v929_v51 = vadd.f32 %v925_v29, %v888_v33  ;;  %v930_v17 = vadd.f32 %v926_v8, %v889_v39  ;;  %v4314_v8 = vld [vmem:[%s5200_s10 + $0x8] sm:$0xff] }
 0x236   : > { %v4268_v25 = vpop.permute.xlu2 %1258  ;;  %5335 = vst [vmem:[#allocation12_spill] sm:$0xff] %v4314_v8 }
 0x237   : > { %v974_v15 = vadd.f32 %v966_v63, %v929_v51  ;;  %v975_v46 = vadd.f32 %v967_v57, %v930_v17 }
 0x238   : > { %3115 = vset.pattern.permute.xlu1 %v5333_v26  ;;  %v4339_v17 = vpop.permute.xlu0 %1376 }
 0x239   : > { %1426 = vperm.xlu1 %3115, %v3770_v19   ;;  %v1015_v34 = vadd.f32 %v1011_v30, %v974_v15  ;;  %v1016_v36 = vadd.f32 %v1012_v58, %v975_v46  ;;  %3120 = vset.pattern.permute.xlu0 %v5309_v47 }
 0x23a   : > { %v4248_v10 = vpop.permute.xlu1 %1212  ;;  %1280 = vperm.xlu0 %3120, %v3812_v3   ;;  %3116 = vset.pattern.permute.xlu2 %v5333_v26 }
 0x23b   : > { %v1029_v44 = vadd.f32 %v4107_v27, %v1015_v34  ;;  %v1030_v28 = vadd.f32 %v4107_v27, %v1016_v36  ;;  %1430 = vperm.xlu2 %3116, %v3812_v3   ;;  %v4265_v27 = vld [vmem:[%s5200_s10] sm:$0xff] }
 0x23d   : > { %v1033_v31 = vmax.f32 %v1029_v44, 0.0  ;;  %v1034_v59 = vmax.f32 %v1030_v28, 0.0 }
 0x23f   : > { %v1037_v53 = vmin.f32 %v1033_v31, 6.0  ;;  %v1038_v19 = vmin.f32 %v1034_v59, 6.0  ;;  %v4281_v23 = vpop.permute.xlu2 %1276 }
 0x241   : > { %1438 = vperm.xlu1 %3115, %v3886_v2   ;;  %1090 = vmatmul.f32.vlgmr.msra.gmra.mxu2 %v1037_v53 }
 0x242   : > { %1113 = vmatmul.f32.vlgmr.msra.gmra.mxu3 %v1038_v19  ;;  %1596 = vperm.xlu0 %3120, %v4265_v27  }
 0x243   : > { %v4259_v16 = vpop.permute.xlu1 %1226  ;;  %3118 = vset.pattern.permute.xlu2 %v5311_v52  ;;  %v4346_v57 = vpop.permute.xlu0 %1405 }
 0x244   : > { %1452 = vperm.xlu2 %3118, %v1242_v9  }
 0x247   : > { %v4297_v7 = vpop.permute.xlu2 %1288 }
 0x249   : > { %3119 = vset.pattern.permute.xlu1 %v5311_v52 }
 0x24a   : > { %1457 = vperm.xlu1 %3119, %v1243_v41   ;;  %3131 = vset.pattern.permute.xlu0 %v5312_v38 }
 0x24b   : > { %1338 = vperm.xlu0 %3131, %v3886_v2   ;;  %v4302_v2 = vld [vmem:[%s5200_s10 + $0x10] sm:$0xff] }
 0x24c   : > { %v4278_v3 = vpop.permute.xlu1 %1253  ;;  %1462 = vperm.xlu2 %3118, %v1244_v32   ;;  %5334 = vst [vmem:[#allocation10_spill] sm:$0xff] %v4302_v2 }
 0x24d   : > { %v1171_v30 = vpop.permute.xlu0 %1170 }
 0x250   : > { %v4309_v29 = vpop.permute.xlu2 %1305 }
 0x252   : > { %3122 = vrot.lane.b32.xlu1 %v4288_v11, %s3357_s20 }
 0x254   : > { %v4295_v48 = vpop.permute.xlu1 %1263  ;;  %3127 = vrot.lane.b32.xlu2 %v4288_v11, %s3357_s20 }
 0x255   : > { %v4356_v46 = vpop.permute.xlu0 %1434 }
 0x259   : > { %v4326_v43 = vpop.permute.xlu2 %1326 }
 0x25a   : > { %1579 = vperm.xlu1 %3119, %v4302_v2  }
 0x25c   : > { %1569 = vperm.xlu2 %3118, %v4265_v27  }
 0x25d   : > { %v4307_v13 = vpop.permute.xlu1 %1284 }
 0x25e   : > { %v4362_v44 = vpop.permute.xlu0 %1248 }
 0x261   : > { %v4332_v39 = vpop.permute.xlu2 %1334 }
 0x262   : > { %3132 = vset.pattern.permute.xlu1 %v5309_v47 }
 0x263   : > { %1600 = vperm.xlu1 %3132, %v4314_v8  }
 0x264   : > { %1584 = vperm.xlu2 %3118, %v4324_v6  }
 0x266   : > { %v4319_v5 = vpop.permute.xlu1 %1301 }
 0x26a   : > { %v4341_v63 = vpop.permute.xlu2 %1355 }
 0x26b   : > { %1608 = vperm.xlu1 %3132, %v4324_v6  }
 0x26c   : > { %3133 = vset.pattern.permute.xlu2 %v5309_v47 }
 0x26d   : > { %1604 = vperm.xlu2 %3133, %v4302_v2  }
 0x26e   : > { %v4330_v33 = vpop.permute.xlu1 %1313 }
 0x272   : > { %v4348_v56 = vpop.permute.xlu2 %1363 }
 0x273   : > { %3144 = vset.pattern.permute.xlu1 %v5310_v21 }
 0x275   : > { %3145 = vset.pattern.permute.xlu2 %v5310_v21 }
 0x277   : > { %v4337_v51 = vpop.permute.xlu1 %1330 }
 0x27b   : > { %v4352_v58 = vpop.permute.xlu2 %1384 }
 0x280   : > { %v4344_v60 = vpop.permute.xlu1 %1351 }
 0x284   : > { %v4360_v36 = vpop.permute.xlu2 %1401 }
 0x288   : > { %v4350_v4 = vpop.permute.xlu1 %1359 }
 0x289   : > { %v1088_v31 = vpop.f32.mrf.mxu0  ;;  %v1111_v59 = vpop.f32.mrf.mxu1 }
 0x28a   : > { %v1112_v19 = vadd.f32 %v1111_v59, %v1088_v31 }
 0x28c   : > { %v4366_v53 = vpop.permute.xlu2 %1413  ;;  %v1124_v9 = vperm.slane %v1112_v19, 0  ;;  %v1131_v32 = vperm.slane %v1112_v19, 1  ;;  %v1138_v61 = vperm.slane %v1112_v19, 2  ;;  %v1145_v59 = vperm.slane %v1112_v19, 3 }
 0x28d   : > { %5337 = vst [vmem:[#allocation16_spill] sm:$0xff] %v4366_v53 }
 0x28e   : > { %v1125_v47 = vmul.f32 %v1124_v9, %v4118_v18  ;;  %v1132_v52 = vmul.f32 %v1131_v32, %v4115_v12  ;;  %v1139_v31 = vmul.f32 %v1138_v61, %v4142_v14  ;;  %v1146_v6 = vmul.f32 %v1145_v59, %v4127_v22 }
 0x28f   : > { %v1159_v9 = vperm.slane %v1112_v19, 5  ;;  %v1166_v14 = vperm.slane %v1112_v19, 6 }
 0x290   : > { %v1133_v49 = vadd.f32 %v1132_v52, %v1125_v47 }
 0x291   : > { %v4354_v15 = vpop.permute.xlu1 %1380 }
 0x292   : > { %v1140_v38 = vadd.f32 %v1139_v31, %v1133_v49  ;;  %v1160_v49 = vmul.f32 %v1159_v9, %v4144_v35 }
 0x294   : > { %v1147_v18 = vadd.f32 %v1146_v6, %v1140_v38  ;;  %v1173_v6 = vperm.slane %v1112_v19, 7 }
 0x295   : > { %v4374_v37 = vpop.permute.xlu2 %1430 }
 0x296   : > { %5339 = vst [vmem:[#allocation20_spill] sm:$0xff] %v4374_v37 }
 0x299   : > { %v4358_v34 = vpop.permute.xlu1 %1388 }
 0x29e   : > { %v4382_v53 = vpop.permute.xlu2 %1452 }
 0x2a2   : > { %v4364_v28 = vpop.permute.xlu1 %1409 }
 0x2a3   : > { %v4368_v41 = vpop.permute.xlu0 %1467 }
 0x2a4   : > { %5338 = vst [vmem:[#allocation11_spill] sm:$0xff] %v4368_v41  ;;  %v1152_v41 = vperm.slane %v1112_v19, 4 }
 0x2a6   : > { %v1153_v12 = vmul.f32 %v1152_v41, %v4124_v55  ;;  %v4393_v38 = vpop.permute.xlu2 %1462  ;;  %v1167_v55 = vmul.f32 %v1166_v14, %v4132_v42 }
 0x2a8   : > { %v1154_v52 = vadd.f32 %v1153_v12, %v1147_v18 }
 0x2aa   : > { %v1161_v22 = vadd.f32 %v1160_v49, %v1154_v52 }
 0x2ab   : > { %v4370_v21 = vpop.permute.xlu1 %1426 }
 0x2ac   : > { %v4378_v2 = vpop.permute.xlu0 %1280  ;;  %v1168_v18 = vadd.f32 %v1167_v55, %v1161_v22 }
 0x2ae   : > { %v4402_v42 = vpop.permute.xlu2 %3127 }
 0x2b3   : > { %v4376_v26 = vpop.permute.xlu1 %1438 }
 0x2b4   : > { %5340 = vst [vmem:[#allocation15_spill] sm:$0xff] %v4376_v26  ;;  %v4387_v47 = vpop.permute.xlu0 %1596 }
 0x2b5   : > { %5342 = vst [vmem:[#allocation18_spill] sm:$0xff] %v4387_v47  ;;  %v1611_v61 = vmul.f32 %v4284_v1, %v4387_v47 }
 0x2b7   : > { %1627 = vrot.lane.b32.xlu2 %v1611_v61, %s5269_s18 }
 0x2bc   : > { %v4385_v32 = vpop.permute.xlu1 %1457 }
 0x2bd   : > { %5341 = vst [vmem:[#allocation14_spill] sm:$0xff] %v4385_v32  ;;  %v1174_v32 = vmul.f32 %v1173_v6, %v1171_v30 }
 0x2bf   : > { %v1175_v35 = vadd.f32 %v1174_v32, %v1168_v18 }
 0x2c4   : > { %v1091_v41 = vpop.f32.mrf.mxu2  ;;  %v4396_v31 = vpop.permute.xlu1 %3122 }
 0x2c5   : > { %v1114_v59 = vpop.f32.mrf.mxu3 }
 0x2c6   : > { %v1115_v12 = vadd.f32 %v1114_v59, %v1091_v41 }
 0x2c8   : > { %v1180_v47 = vperm.slane %v1115_v12, 0  ;;  %v1187_v26 = vperm.slane %v1115_v12, 1  ;;  %v1194_v8 = vperm.slane %v1115_v12, 2  ;;  %v1201_v49 = vperm.slane %v1115_v12, 3 }
 0x2c9   : > { %v1208_v22 = vperm.slane %v1115_v12, 4  ;;  %v1215_v6 = vperm.slane %v1115_v12, 5 }
 0x2ca   : > { %v1181_v9 = vmul.f32 %v1180_v47, %v4184_v24  ;;  %v1188_v52 = vmul.f32 %v1187_v26, %v4170_v50  ;;  %v1195_v14 = vmul.f32 %v1194_v8, %v4218_v45  ;;  %v1202_v30 = vmul.f32 %v1201_v49, %v4196_v54  ;;  %v4413_v8 = vpop.permute.xlu2 %1569 }
 0x2cb   : > { %v1209_v24 = vmul.f32 %v1208_v22, %v4121_v0  ;;  %v1222_v47 = vperm.slane %v1115_v12, 6  ;;  %v1216_v50 = vmul.f32 %v1215_v6, %v4248_v10  ;;  %v1229_v26 = vperm.slane %v1115_v12, 7 }
 0x2cc   : > { %v1182_v61 = vadd.f32 %v1181_v9, %v1175_v35  ;;  %v4400_v37 = vpop.permute.xlu1 %1579 }
 0x2cd   : > { %v1223_v35 = vmul.f32 %v1222_v47, %v4232_v40  ;;  %v1230_v9 = vmul.f32 %v1229_v26, %v4259_v16 }
 0x2ce   : > { %v1189_v19 = vadd.f32 %v1188_v52, %v1182_v61 }
 0x2d0   : > { %v1196_v55 = vadd.f32 %v1195_v14, %v1189_v19 }
 0x2d2   : > { %v1203_v32 = vadd.f32 %v1202_v30, %v1196_v55  ;;  %v4424_v16 = vpop.permute.xlu2 %1584 }
 0x2d4   : > { %v1210_v41 = vadd.f32 %v1209_v24, %v1203_v32 }
 0x2d5   : > { %v4408_v59 = vpop.permute.xlu1 %1600 }
 0x2d6   : > { %v1217_v18 = vadd.f32 %v1216_v50, %v1210_v41  ;;  %v1613_v45 = vmul.f32 %v4284_v1, %v4408_v59 }
 0x2d8   : > { %v1224_v54 = vadd.f32 %v1223_v35, %v1217_v18  ;;  %1631 = vrot.lane.b32.xlu1 %v1613_v45, %s5269_s18 }
 0x2da   : > { %v1231_v0 = vadd.f32 %v1230_v9, %v1224_v54 }
 0x2dc   : > { %v1237_v61 = vadd.f32 %v4255_v20, %v1231_v0 }
 0x2dd   : > { %v4434_v50 = vpop.permute.xlu1 %1608 }
 0x2de   : > { %v1266_v10 = vperm.slane %v1237_v61, 0  ;;  %v1291_v12 = vperm.slane %v1237_v61, 1  ;;  %v1316_v52 = vperm.slane %v1237_v61, 2  ;;  %v1341_v49 = vperm.slane %v1237_v61, 3 }
 0x2df   : > { %v1366_v55 = vperm.slane %v1237_v61, 4  ;;  %v1391_v20 = vperm.slane %v1237_v61, 5  ;;  %v4428_v24 = vperm.slane %v1237_v61, 6 }
 0x2e0   : > { %v1267_v19 = vmul.f32 %v1266_v10, %v4362_v44  ;;  %v1269_v40 = vmul.f32 %v1266_v10, %v4268_v25  ;;  %v1292_v14 = vmul.f32 %v1291_v12, %v4281_v23  ;;  %v1294_v22 = vmul.f32 %v1291_v12, %v4307_v13  ;;  %3135 = vrot.lane.b32.xlu1 %v4288_v11, %s3359_s25 }
 0x2e1   : > { %v1317_v32 = vmul.f32 %v1316_v52, %v4319_v5  ;;  %v1319_v44 = vmul.f32 %v1316_v52, %v4177_v62  ;;  %v4430_v25 = vperm.slane %v1237_v61, 7  ;;  %v1342_v47 = vmul.f32 %v1341_v49, %v4326_v43 }
 0x2e2   : > { %v1296_v30 = vadd.f32 %v1292_v14, %v1267_v19  ;;  %v1298_v6 = vadd.f32 %v1294_v22, %v1269_v40  ;;  %v1344_v41 = vmul.f32 %v1341_v49, %v4332_v39  ;;  %v1367_v26 = vmul.f32 %v1366_v55, %v4344_v60  ;;  %v1339_v40 = vpop.permute.xlu0 %1338 }
 0x2e3   : > { %v1369_v18 = vmul.f32 %v1366_v55, %v4350_v4  ;;  %v1268_v5 = vmul.f32 %v1266_v10, %v4278_v3  ;;  %v1293_v62 = vmul.f32 %v1291_v12, %v4378_v2  ;;  %v1392_v54 = vmul.f32 %v1391_v20, %v4339_v17  ;;  %v4451_v17 = vpop.permute.xlu2 %1604 }
 0x2e4   : > { %v1321_v23 = vadd.f32 %v1317_v32, %v1296_v30  ;;  %v1323_v13 = vadd.f32 %v1319_v44, %v1298_v6  ;;  %v1394_v9 = vmul.f32 %v1391_v20, %v4352_v58  ;;  %v1417_v43 = vmul.f32 %v4428_v24, %v4360_v36 }
 0x2e5   : > { %v1297_v39 = vadd.f32 %v1293_v62, %v1268_v5  ;;  %v1318_v0 = vmul.f32 %v1316_v52, %v4309_v29  ;;  %v1617_v60 = vmul.f32 %v4284_v1, %v4434_v50  ;;  %v1270_v3 = vmul.f32 %v1266_v10, %v4295_v48  ;;  %v5344_v62 = vld [vmem:[#allocation12_spill] sm:$0xff] }
 0x2e6   : > { %v1346_v35 = vadd.f32 %v1342_v47, %v1321_v23  ;;  %v1348_v45 = vadd.f32 %v1344_v41, %v1323_v13  ;;  %v1295_v2 = vmul.f32 %v1291_v12, %v4297_v7  ;;  %v1419_v58 = vmul.f32 %v4428_v24, %v4364_v28 }
 0x2e7   : > { %v1442_v29 = vmul.f32 %v4430_v25, %v4370_v21  ;;  %v1322_v36 = vadd.f32 %v1318_v0, %v1297_v39  ;;  %v1343_v19 = vmul.f32 %v1341_v49, %v4337_v51  ;;  %1639 = vrot.lane.b32.xlu2 %v1617_v60, %s5269_s18  ;;  %v1320_v12 = vmul.f32 %v1316_v52, %v4330_v33 }
 0x2e8   : > { %v1371_v4 = vadd.f32 %v1367_v26, %v1346_v35  ;;  %v1373_v61 = vadd.f32 %v1369_v18, %v1348_v45  ;;  %3140 = vrot.lane.b32.xlu1 %v4288_v11, %s3359_s25  ;;  %v1299_v7 = vadd.f32 %v1295_v2, %v1270_v3  ;;  %v1444_v14 = vmul.f32 %v4430_v25, %v4356_v46  ;;  %v5343_v18 = vld [vmem:[#allocation20_spill] sm:$0xff]  ;;  %v5349_v3 = vld [vmem:[#allocation19_spill] sm:$0xff] }
 0x2e9   : > { %v1347_v22 = vadd.f32 %v1343_v19, %v1322_v36  ;;  %v1368_v28 = vmul.f32 %v1366_v55, %v4341_v63  ;;  %v1615_v21 = vmul.f32 %v4284_v1, %v4451_v17  ;;  %v1345_v32 = vmul.f32 %v1341_v49, %v1339_v40  ;;  %v5345_v45 = vld [vmem:[#allocation16_spill] sm:$0xff] }
 0x2ea   : > { %v1396_v48 = vadd.f32 %v1392_v54, %v1371_v4  ;;  %v1398_v10 = vadd.f32 %v1394_v9, %v1373_v61  ;;  %v1324_v51 = vadd.f32 %v1320_v12, %v1299_v7  ;;  %v1393_v23 = vmul.f32 %v1391_v20, %v4354_v15  ;;  %v5348_v4 = vld [vmem:[#allocation11_spill] sm:$0xff] }
 0x2eb   : > { %v1372_v44 = vadd.f32 %v1368_v28, %v1347_v22  ;;  %1635 = vrot.lane.b32.xlu0 %v1615_v21, %s5269_s18  ;;  %v1370_v46 = vmul.f32 %v1366_v55, %v4348_v56  ;;  %v1418_v63 = vmul.f32 %v4428_v24, %v4346_v57  ;;  %v1395_v49 = vmul.f32 %v1391_v20, %v4358_v34  ;;  %v5347_v20 = vld [vmem:[#allocation14_spill] sm:$0xff] }
 0x2ec   : > { %v1421_v30 = vadd.f32 %v1417_v43, %v1396_v48  ;;  %v1423_v6 = vadd.f32 %v1419_v58, %v1398_v10  ;;  %v1349_v52 = vadd.f32 %v1345_v32, %v1324_v51  ;;  %v1443_v5 = vmul.f32 %v4430_v25, %v5343_v18  ;;  %v5346_v43 = vld [vmem:[#allocation15_spill] sm:$0xff]  ;;  %v5351_v10 = vld [vmem:[#allocation18_spill] sm:$0xff] }
 0x2ed   : > { %v1397_v47 = vadd.f32 %v1393_v23, %v1372_v44  ;;  %v1420_v57 = vmul.f32 %v4428_v24, %v5345_v45  ;;  %v1445_v34 = vmul.f32 %v4430_v25, %v5346_v43  ;;  %v5350_v58 = vmov 3  }
 0x2ee   : > { %v1446_v13 = vadd.f32 %v1442_v29, %v1421_v30  ;;  %v1448_v33 = vadd.f32 %v1444_v14, %v1423_v6  ;;  %v1374_v26 = vadd.f32 %v1370_v46, %v1349_v52  ;;  %v5356_v28 = vmov 5  }
 0x2ef   : > { %v1422_v15 = vadd.f32 %v1418_v63, %v1397_v47  ;;  %1693 = vperm.xlu2 %3145, %v5344_v62   ;;  %v5357_v6 = vmov 8  }
 0x2f0   : > { %v1470_v1 = vadd.f32 %v4382_v53, %v1446_v13  ;;  %v1472_v41 = vadd.f32 %v4393_v38, %v1448_v33  ;;  %1689 = vperm.xlu1 %3144, %v4265_v27   ;;  %v1399_v35 = vadd.f32 %v1395_v49, %v1374_v26  ;;  %v5358_v13 = vmov 6  }
 0x2f1   : > { %v1447_v53 = vadd.f32 %v1443_v5, %v1422_v15  ;;  %v3129_v26 = vunpack.i.l.bf16 %v4402_v42 }
 0x2f2   : > { %v1474_v56 = vmax.f32 %v1470_v1, 0.0  ;;  %v1476_v55 = vmax.f32 %v1472_v41, 0.0  ;;  %v1424_v9 = vadd.f32 %v1420_v57, %v1399_v35  ;;  %v5359_v1 = vld [vmem:[#allocation23_spill] sm:$0xff] }
 0x2f3   : > { %v1471_v39 = vadd.f32 %v5347_v20, %v1447_v53  ;;  %v1511_v41 = vand.u32 7, %v5359_v1 }
 0x2f4   : > { %v1478_v54 = vmin.f32 %v1474_v56, 6.0  ;;  %v1480_v38 = vmin.f32 %v1476_v55, 6.0  ;;  %v1449_v0 = vadd.f32 %v1445_v34, %v1424_v9  ;;  %v3124_v34 = vunpack.i.l.bf16 %v4396_v31 }
 0x2f5   : > { %v1475_v60 = vmax.f32 %v1471_v39, 0.0  ;;  %vm4589_vm14 = vcmp.ge.s32.totalorder %v1511_v41, 1  ;;  %vm4603_vm0 = vcmp.le.s32.totalorder %v1511_v41, 6 }
 0x2f6   : > { %1503 = vst.msk [vmem:[#allocation3 + $0x8] sm:$0xff] %vm1492_vm12, %v1478_v54  ;;  %v1473_v61 = vadd.f32 %v5348_v4, %v1449_v0 }
 0x2f7   : > { %1505 = vst.msk [vmem:[#allocation3 + $0x38] sm:$0xff] %vm1492_vm12, %v1480_v38  ;;  %v1479_v24 = vmin.f32 %v1475_v60, 6.0  ;;  %3147 = vrot.lane.b32.xlu2 %v4288_v11, %s5283_s27 }
 0x2f8   : > { %1701 = vperm.xlu1 %3144, %v5349_v3   ;;  %v1477_v2 = vmax.f32 %v1473_v61, 0.0  ;;  %3157 = vset.pattern.permute.xlu2 %v5350_v58 }
 0x2f9   : > { %1504 = vst.msk [vmem:[#allocation3 + $0x20] sm:$0xff] %vm1492_vm12, %v1479_v24 }
 0x2fa   : > { %v1481_v25 = vmin.f32 %v1477_v2, 6.0 }
 0x2fc   : > { %1506 = vst.msk [vmem:[#allocation3 + $0x50] sm:$0xff] %vm1492_vm12, %v1481_v25 }
 0x2fd   : > { %v4490_v29 = vld [vmem:[#allocation3 + $0x8] sm:$0xff] }
 0x2fe   : > { %v4493_v36 = vld [vmem:[#allocation3 + $0x38] sm:$0xff]  ;;  %v1612_v7 = vmul.f32 %v5351_v10, %v4490_v29 }
 0x2ff   : > { %1548 = vrot.lane.b32.xlu0 %v4493_v36, %s3357_s20  ;;  %1540 = vrot.lane.b32.xlu2 %v4490_v29, %s3357_s20  ;;  %v1616_v48 = vmul.f32 %v4451_v17, %v4493_v36 }
 0x300   : > { %3156 = vset.pattern.permute.xlu1 %v5350_v58  ;;  %v4500_v19 = vld [vmem:[#allocation3 + $0x20] sm:$0xff] }
 0x301   : > { %1544 = vrot.lane.b32.xlu1 %v4500_v19, %s3357_s20  ;;  %v1614_v12 = vmul.f32 %v4408_v59, %v4500_v19  ;;  %v5352_v59 = vld [vmem:[#allocation10_spill] sm:$0xff] }
 0x303   : > { %v4508_v40 = vld [vmem:[#allocation3 + $0x50] sm:$0xff] }
 0x304   : > { %v1618_v17 = vmul.f32 %v4434_v50, %v4508_v40  ;;  %v5355_v50 = vmov 4  }
 0x307   : > { %1665 = vrot.lane.b32.xlu0 %v4500_v19, %s3359_s25  ;;  %1661 = vrot.lane.b32.xlu2 %v4490_v29, %s3359_s25 }
 0x309   : > { %1552 = vrot.lane.b32.xlu1 %v4508_v40, %s3357_s20  ;;  %s3361_s20 = smov 120  }
 0x30f   : > { %1673 = vrot.lane.b32.xlu0 %v4508_v40, %s3359_s25  ;;  %1669 = vrot.lane.b32.xlu2 %v4493_v36, %s3359_s25  ;;  %s460_s25 = scalar_lea.vmem [#allocation4], %s2902_s3 }
 0x311   : > { %1637 = vrot.lane.b32.xlu1 %v1616_v48, %s5269_s18  ;;  %v4545_v14 = vpop.permute.xlu2 %1627 }
 0x317   : > { %1629 = vrot.lane.b32.xlu0 %v1612_v7, %s5269_s18  ;;  %1633 = vrot.lane.b32.xlu2 %v1614_v12, %s5269_s18 }
 0x319   : > { %1714 = vrot.lane.b32.xlu1 %v4490_v29, %s5283_s27 }
 0x31f   : > { %3152 = vrot.lane.b32.xlu0 %v4288_v11, %s5283_s27  ;;  %1718 = vrot.lane.b32.xlu2 %v4500_v19, %s5283_s27  ;;  %v5354_v11 = vmov 7  }
 0x321   : > { %1722 = vrot.lane.b32.xlu1 %v4493_v36, %s5283_s27 }
 0x327   : > { %1641 = vrot.lane.b32.xlu0 %v1618_v17, %s5269_s18  ;;  %1726 = vrot.lane.b32.xlu2 %v4508_v40, %s5283_s27  ;;  %s3360_s27 = smov 121  }
 0x329   : > { %1745 = vperm.xlu1 %3156, %v5344_v62  }
 0x32f   : > { %1741 = vperm.xlu0 %3131, %v4265_v27   ;;  %1749 = vperm.xlu2 %3157, %v5352_v59  }
 0x331   : > { %1753 = vperm.xlu1 %3156, %v5349_v3  }
 0x337   : > { %1792 = vrot.lane.b32.xlu0 %v4493_v36, %s5353_s28  ;;  %3158 = vset.pattern.permute.xlu2 %v5355_v50 }
 0x338   : > { %3166 = vset.pattern.permute.xlu0 %v5354_v11  ;;  %1765 = vperm.xlu2 %3158, %v4265_v27  }
 0x339   : > { %3159 = vset.pattern.permute.xlu1 %v5355_v50 }
 0x33a   : > { %1773 = vperm.xlu1 %3159, %v5352_v59  }
 0x33f   : > { %1832 = vrot.lane.b32.xlu0 %v4493_v36, %s3360_s27 }
 0x340   : > { %1777 = vperm.xlu2 %3158, %v5349_v3  }
 0x341   : > { %v4553_v22 = vpop.permute.xlu2 %1639 }
 0x342   : > { %1788 = vrot.lane.b32.xlu1 %v4490_v29, %s5353_s28 }
 0x343   : > { %3161 = vset.pattern.permute.xlu1 %v5356_v28 }
 0x347   : > { %1877 = vperm.xlu0 %3166, %v5352_v59  }
 0x348   : > { %1790 = vrot.lane.b32.xlu2 %v4500_v19, %s5353_s28 }
 0x349   : > { %v4563_v30 = vpop.permute.xlu2 %1693  ;;  %3160 = vset.pattern.permute.xlu2 %v5356_v28 }
 0x34a   : > { %v4561_v21 = vpop.permute.xlu1 %1631  ;;  %1794 = vrot.lane.b32.xlu1 %v4508_v40, %s5353_s28 }
 0x34f   : > { %3168 = vset.pattern.permute.xlu0 %v5357_v6 }
 0x350   : > { %1805 = vperm.xlu2 %3160, %v4265_v27  }
 0x351   : > { %v4570_v32 = vpop.permute.xlu2 %3147 }
 0x352   : > { %v3136_v51 = vpop.permute.xlu1 %3135  ;;  %1813 = vperm.xlu1 %3161, %v5352_v59  }
 0x353   : > { %v3138_v35 = vunpack.i.h.bf16 %v3136_v51  ;;  %v3137_v0 = vunpack.i.l.bf16 %v3136_v51 }
 0x358   : > { %1817 = vperm.xlu2 %3160, %v5349_v3  }
 0x359   : > { %v1541_v23 = vpop.permute.xlu2 %1540 }
 0x35a   : > { %v4574_v44 = vpop.permute.xlu1 %3140  ;;  %1828 = vrot.lane.b32.xlu1 %v4490_v29, %s3360_s27  ;;  %v1555_v60 = vsel %vm1554_vm13, %v3124_v34, %v1541_v23 }
 0x35b   : > { %3163 = vset.pattern.permute.xlu1 %v5358_v13  ;;  %v3143_v43 = vunpack.i.h.bf16 %v4574_v44  ;;  %v1563_v48 = vsel %vm4589_vm14, %v1555_v60, 0.0 }
 0x35c   : > { %v1587_v17 = vmul.f32 %v4413_v8, %v1563_v48 }
 0x35d   : > { %v1636_v46 = vpop.permute.xlu0 %1635 }
 0x360   : > { %1830 = vrot.lane.b32.xlu2 %v4500_v19, %s3360_s27 }
 0x361   : > { %v1662_v52 = vpop.permute.xlu2 %1661  ;;  %3162 = vset.pattern.permute.xlu2 %v5358_v13 }
 0x362   : > { %v1690_v33 = vpop.permute.xlu1 %1689  ;;  %1834 = vrot.lane.b32.xlu1 %v4508_v40, %s3360_s27  ;;  %v1676_v24 = vsel %vm1675_vm15, %v3137_v0, %v1662_v52  ;;  %s3288_s27 = scalar_lea.hbm %s5204_s14, 64 }
 0x363   : > { %v1684_v12 = vsel %vm4603_vm0, %v1676_v24, 0.0 }
 0x364   : > { %v1704_v23 = vmul.f32 %v1690_v33, %v1684_v12 }
 0x368   : > { %1845 = vperm.xlu2 %3162, %v4265_v27  }
 0x369   : > { %v4582_v47 = vpop.permute.xlu2 %1669 }
 0x36a   : > { %v4584_v63 = vpop.permute.xlu1 %1701  ;;  %1853 = vperm.xlu1 %3163, %v5352_v59  }
 0x370   : > { %1857 = vperm.xlu2 %3162, %v5349_v3  }
 0x371   : > { %v1549_v49 = vpop.permute.xlu0 %1548  ;;  %v4597_v56 = vpop.permute.xlu2 %1633 }
 0x372   : > { %v1557_v18 = vsel %vm1554_vm13, %v3129_v26, %v1549_v49  ;;  %3164 = vset.pattern.permute.xlu1 %v5354_v11  ;;  %v3130_v49 = vunpack.i.h.bf16 %v4402_v42 }
 0x373   : > { %v1565_v5 = vsel %vm4589_vm14, %v1557_v18, 0.0  ;;  %v4600_v55 = vpop.permute.xlu1 %1544  ;;  %1869 = vperm.xlu1 %3164, %v4265_v27  }
 0x374   : > { %v1589_v2 = vmul.f32 %v4400_v37, %v1565_v5 }
 0x378   : > { %3165 = vset.pattern.permute.xlu2 %v5354_v11 }
 0x379   : > { %v1666_v45 = vpop.permute.xlu0 %1665  ;;  %1873 = vperm.xlu2 %3165, %v5344_v62   ;;  %v4615_v38 = vpop.permute.xlu2 %1718 }
 0x37a   : > { %v4609_v53 = vsel %vm1675_vm15, %v3138_v35, %v1666_v45 }
 0x37b   : > { %v1685_v54 = vsel %vm4603_vm0, %v4609_v53, 0.0  ;;  %v1553_v9 = vpop.permute.xlu1 %1552  ;;  %1881 = vperm.xlu1 %3164, %v5349_v3  }
 0x37c   : > { %v1558_v35 = vsel %vm1554_vm13, %v3130_v49, %v1553_v9 }
 0x37d   : > { %v1566_v33 = vsel %vm4589_vm14, %v1558_v35, 0.0 }
 0x381   : > { %v1674_v20 = vpop.permute.xlu0 %1673  ;;  %v1727_v61 = vpop.permute.xlu2 %1726  ;;  %3167 = vset.pattern.permute.xlu2 %v5357_v6 }
 0x382   : > { %v1679_v39 = vsel %vm1675_vm15, %v3143_v43, %v1674_v20  ;;  %v1590_v20 = vmul.f32 %v4424_v16, %v1566_v33 }
 0x383   : > { %v1687_v4 = vsel %vm4603_vm0, %v1679_v39, 0.0  ;;  %v1638_v25 = vpop.permute.xlu1 %1637  ;;  %3170 = vset.pattern.permute.xlu1 %v5357_v6 }
 0x384   : > { %v1646_v10 = vsel %vm1643_vm1, %v1636_v46, %v1638_v25  ;;  %v1707_v0 = vmul.f32 %v4584_v63, %v1687_v4 }
 0x385   : > { %v4631_v7 = vadd.f32 %v1646_v10, %v1589_v2 }
 0x389   : > { %v1630_v51 = vpop.permute.xlu0 %1629  ;;  %v4638_v1 = vpop.permute.xlu2 %1749 }
 0x38a   : > { %v1644_v37 = vsel %vm1643_vm1, %v4545_v14, %v1630_v51 }
 0x38b   : > { %v1652_v52 = vadd.f32 %v1644_v37, %v1587_v17  ;;  %v1715_v41 = vpop.permute.xlu1 %1714 }
 0x38d   : > { %v1708_v26 = vadd.f32 %v1704_v23, %v1652_v52 }
 0x391   : > { %v3153_v46 = vpop.permute.xlu0 %3152 }
 0x392   : > { %v3155_v18 = vunpack.i.h.bf16 %v3153_v46  ;;  %v3154_v5 = vunpack.i.l.bf16 %v3153_v46  ;;  %v1766_v45 = vpop.permute.xlu2 %1765 }
 0x393   : > { %v1723_v43 = vpop.permute.xlu1 %1722 }
 0x394   : > { %v1731_v8 = vsel %vm792_vm5, %v3155_v18, %v1727_v61  ;;  %v4648_v34 = vsel %vm792_vm5, %v3154_v5, %v1723_v43  ;;  %v3149_v61 = vunpack.i.l.bf16 %v4570_v32  ;;  %v1780_v18 = vmul.f32 %v1766_v45, %v4490_v29 }
 0x395   : > { %v1739_v14 = vsel %vm4589_vm14, %v1731_v8, 0.0  ;;  %v1738_v42 = vsel %vm4589_vm14, %v4648_v34, 0.0 }
 0x396   : > { %v1728_v48 = vsel %vm792_vm5, %v3149_v61, %v1715_v41 }
 0x397   : > { %v1736_v10 = vsel %vm4589_vm14, %v1728_v48, 0.0 }
 0x399   : > { %v1642_v9 = vpop.permute.xlu0 %1641 }
 0x39a   : > { %v1647_v39 = vsel %vm1643_vm1, %v4553_v22, %v1642_v9  ;;  %v1778_v24 = vpop.permute.xlu2 %1777 }
 0x39b   : > { %v1655_v60 = vadd.f32 %v1647_v39, %v1590_v20  ;;  %v4658_v25 = vpop.permute.xlu1 %1745  ;;  %v1783_v20 = vmul.f32 %v1778_v24, %v4508_v40 }
 0x39d   : > { %v1711_v2 = vadd.f32 %v1707_v0, %v1655_v60 }
 0x3a1   : > { %v1742_v12 = vpop.permute.xlu0 %1741 }
 0x3a2   : > { %v1756_v16 = vmul.f32 %v1742_v12, %v1736_v10  ;;  %v4663_v51 = vpop.permute.xlu2 %1790 }
 0x3a3   : > { %v1754_v22 = vpop.permute.xlu1 %1753 }
 0x3a4   : > { %v1760_v17 = vadd.f32 %v1756_v16, %v1708_v26  ;;  %v1759_v37 = vmul.f32 %v1754_v22, %v1739_v14 }
 0x3a6   : > { %v1763_v63 = vadd.f32 %v1759_v37, %v1711_v2  ;;  %v1784_v8 = vadd.f32 %v1780_v18, %v1760_v17 }
 0x3a8   : > { %v1787_v0 = vadd.f32 %v1783_v20, %v1763_v63 }
 0x3a9   : > { %v4665_v4 = vpop.permute.xlu0 %1792 }
 0x3aa   : > { %v1802_v23 = vsel %vm4603_vm0, %v4665_v4, 0.0  ;;  %v1806_v52 = vpop.permute.xlu2 %1805 }
 0x3ac   : > { %v4670_v49 = vpop.permute.xlu1 %1773 }
 0x3b1   : > { %v4672_v41 = vpop.permute.xlu0 %1832 }
 0x3b2   : > { %v1842_v26 = vsel %vm4589_vm14, %v4672_v41, 0.0  ;;  %v1818_v46 = vpop.permute.xlu2 %1817 }
 0x3b4   : > { %v1789_v5 = vpop.permute.xlu1 %1788 }
 0x3b5   : > { %v1800_v35 = vsel %vm4603_vm0, %v1789_v5, 0.0 }
 0x3b6   : > { %v1820_v43 = vmul.f32 %v1806_v52, %v1800_v35 }
 0x3b8   : > { %v1824_v14 = vadd.f32 %v1820_v43, %v1784_v8 }
 0x3b9   : > { %v1878_v8 = vpop.permute.xlu0 %1877 }
 0x3ba   : > { %v4680_v33 = vpop.permute.xlu2 %1830 }
 0x3bc   : > { %v1795_v9 = vpop.permute.xlu1 %1794 }
 0x3bd   : > { %v1803_v39 = vsel %vm4603_vm0, %v1795_v9, 0.0  ;;  %v1486_v9 = vld [vmem:[%s5201_s11] sm:$0xff] }
 0x3be   : > { %v1823_v60 = vmul.f32 %v1818_v46, %v1803_v39  ;;  %v5364_v39 = vmov 0  }
 0x3c0   : > { %v1827_v61 = vadd.f32 %v1823_v60, %v1787_v0  ;;  %v4727_v0 = vld [vmem:[%s5202_s12] sm:$0xff]  ;;  %v1487_v60 = vld [vmem:[%s5201_s11 + $0x8] sm:$0xff] }
 0x3c2   : > { %v1846_v2 = vpop.permute.xlu2 %1845 }
 0x3c4   : > { %v4685_v45 = vpop.permute.xlu1 %1813 }
 0x3c5   : > { %v1822_v34 = vmul.f32 %v4685_v45, %v1802_v23 }
 0x3ca   : > { %v1858_v48 = vpop.permute.xlu2 %1857 }
 0x3cc   : > { %v1829_v10 = vpop.permute.xlu1 %1828 }
 0x3cd   : > { %v1840_v12 = vsel %vm4589_vm14, %v1829_v10, 0.0 }
 0x3ce   : > { %v1860_v16 = vmul.f32 %v1846_v2, %v1840_v12  ;;  %v4749_v2 = vld [vmem:[%s5202_s12 + $0x10] sm:$0xff] }
 0x3d0   : > { %v4689_v17 = vadd.f32 %v1860_v16, %v1824_v14  ;;  %v1886_v14 = vmul.f32 %v1878_v8, %v4493_v36 }
 0x3d3   : > { %v1874_v22 = vpop.permute.xlu2 %1873 }
 0x3d4   : > { %v1885_v24 = vmul.f32 %v1874_v22, %v4500_v19  ;;  %v1835_v37 = vpop.permute.xlu1 %1834 }
 0x3d5   : > { %v1843_v63 = vsel %vm4589_vm14, %v1835_v37, 0.0 }
 0x3d6   : > { %v1863_v52 = vmul.f32 %v1858_v48, %v1843_v63  ;;  %1894 = vrot.lane.b32.xlu1 %v1885_v24, %s3361_s20  ;;  %v5366_v48 = vmov 2  }
 0x3d8   : > { %v4694_v46 = vadd.f32 %v1863_v52, %v1827_v61  ;;  %v5365_v61 = vmov 1  }
 0x3dc   : > { %v4696_v18 = vpop.permute.xlu1 %1853 }
 0x3de   : > { %1908 = vrot.lane.b32.xlu1 %v4490_v29, %s3362_s21 }
 0x3e5   : > { %v1870_v5 = vpop.permute.xlu1 %1869 }
 0x3e6   : > { %v1884_v35 = vmul.f32 %v1870_v5, %v4490_v29  ;;  %1914 = vrot.lane.b32.xlu1 %v4508_v40, %s3362_s21  ;;  %v1489_v29 = vld [vmem:[%s5201_s11 + $0x18] sm:$0xff] }
 0x3e8   : > { %1892 = vrot.lane.b32.xlu2 %v1884_v35, %s3361_s20 }
 0x3ed   : > { %v1882_v43 = vpop.permute.xlu1 %1881 }
 0x3ee   : > { %v1887_v20 = vmul.f32 %v1882_v43, %v4508_v40  ;;  %1933 = vperm.xlu1 %3170, %v5352_v59   ;;  %v4718_v40 = vld [vmem:[%s5202_s12 + $0x8] sm:$0xff] }
 0x3f0   : > { %1898 = vrot.lane.b32.xlu0 %v1887_v20, %s3361_s20  ;;  %1896 = vrot.lane.b32.xlu2 %v1886_v14, %s3361_s20  ;;  %s2832_s20 = scalar_lea.hbm %s5204_s14, %s2911_s26 }
 0x3f1   : > { %s2835_s0 = sshll.u32 %s2832_s20, 4  ;;  %s2836_s0 = int_to_ptr.hbm [resolvable:$true] %s2835_s0 }
 0x3f2   : > { %s3282_s1 = sshra.s32 %s2836_s0, 4  ;;  %s3283_s1 = int_to_ptr.hbm [resolvable:$true] %s3282_s1 }
 0x3f3   : > { %s3284_s3 = scalar_lea.hbm %s3283_s1, 32  ;;  %p3289_p0 = scmp.lt.s32.totalorder %s3283_s1, %s5204_s14 }
 0x3f4   : > { %p3285_p11 = scmp.ne.s32.totalorder %s3283_s1, %s3284_s3  ;;  %p3290_p1 = scmp.lt.s32.totalorder %s3288_s27, %s3284_s3 }
 0x3f6   : > { %3171 = vset.pattern.permute.xlu1 %v5364_v39  ;;  %p3286_p12 = pnand %p3285_p11, %p3493_p5  ;;  %p3291_p2 = por %p3290_p1, %p3289_p0 }
 0x3f7   : > { %1950 = vperm.xlu1 %3171, %v1486_v9  }
 0x3f8   : > { %1912 = vrot.lane.b32.xlu0 %v4493_v36, %s3362_s21  ;;  %1910 = vrot.lane.b32.xlu2 %v4500_v19, %s3362_s21  ;;  %s2833_s21 = sshll.u32 %s460_s25, 4  ;;  %p3287_p13 = pneg %p3286_p12  ;;  %s2834_s21 = int_to_ptr.vmem [resolvable:$true] %s2833_s21 }
 0x3fa   : > { %p3292_p3 = pnand %p3291_p2, %p3287_p13 }
 0x3ff   : > { %1965 = vperm.xlu1 %3171, %v1489_v29  }
 0x400   : > { %1929 = vperm.xlu0 %3168, %v5344_v62   ;;  %1925 = vperm.xlu2 %3167, %v4265_v27   ;;  %v1488_v27 = vld [vmem:[%s5201_s11 + $0x10] sm:$0xff] }
 0x407   : > { %1995 = vperm.xlu1 %3171, %v4718_v40  }
 0x408   : > { %3169 = vset.pattern.permute.xlu0 %v5364_v39  ;;  %1937 = vperm.xlu2 %3167, %v5349_v3   ;;  %v4741_v3 = vld [vmem:[%s5202_s12 + $0x18] sm:$0xff] }
 0x409   : > { %1574 = vperm.xlu0 %3169, %v5344_v62  }
 0x40f   : > { %3173 = vset.pattern.permute.xlu1 %v5365_v61 }
 0x410   : > { %2018 = vperm.xlu1 %3173, %v4727_v0   ;;  %3172 = vset.pattern.permute.xlu2 %v5364_v39 }
 0x411   : > { %1960 = vperm.xlu0 %3169, %v1488_v27   ;;  %1955 = vperm.xlu2 %3172, %v1487_v60  }
 0x418   : > { %2030 = vperm.xlu1 %3173, %v4741_v3  }
 0x419   : > { %2005 = vperm.xlu0 %3169, %v4741_v3   ;;  %1990 = vperm.xlu2 %3172, %v4727_v0  }
 0x420   : > { %3178 = vset.pattern.permute.xlu1 %v5366_v48 }
 0x421   : > { %2047 = vperm.xlu1 %3178, %v4718_v40   ;;  %3175 = vset.pattern.permute.xlu0 %v5365_v61 }
 0x422   : > { %2000 = vperm.xlu2 %3172, %v4749_v2   ;;  %2026 = vperm.xlu0 %3175, %v4749_v2  }
 0x429   : > { %3180 = vset.pattern.permute.xlu1 %v5350_v58 }
 0x42a   : > { %2068 = vperm.xlu1 %3180, %v4727_v0   ;;  %3174 = vset.pattern.permute.xlu2 %v5365_v61 }
 0x42b   : > { %3176 = vset.pattern.permute.xlu0 %v5366_v48  ;;  %2022 = vperm.xlu2 %3174, %v4718_v40  }
 0x42c   : > { %1697 = vperm.xlu0 %3176, %v5352_v59  }
 0x432   : > { %2076 = vperm.xlu1 %3180, %v4749_v2  }
 0x433   : > { %3177 = vset.pattern.permute.xlu2 %v5366_v48 }
 0x434   : > { %2055 = vperm.xlu0 %3176, %v4741_v3   ;;  %2043 = vperm.xlu2 %3177, %v4727_v0  }
 0x43a   : > { %3183 = vset.pattern.permute.xlu1 %v5355_v50 }
 0x43b   : > { %2097 = vperm.xlu1 %3183, %v4718_v40  }
 0x43c   : > { %3179 = vset.pattern.permute.xlu0 %v5355_v50  ;;  %2051 = vperm.xlu2 %3177, %v4749_v2  }
 0x43d   : > { %1769 = vperm.xlu0 %3179, %v5344_v62  }
 0x442   : > { %v1893_v10 = vpop.permute.xlu2 %1892 }
 0x443   : > { %2105 = vperm.xlu1 %3183, %v4741_v3   ;;  %v1904_v63 = vadd.f32 %v1893_v10, %v4689_v17  ;;  %v3125_v10 = vunpack.i.h.bf16 %v4396_v31 }
 0x444   : > { %3181 = vset.pattern.permute.xlu2 %v5350_v58 }
 0x445   : > { %2093 = vperm.xlu0 %3179, %v4727_v0   ;;  %2072 = vperm.xlu2 %3181, %v4718_v40  }
 0x448   : > { %v4775_v59 = vpop.permute.xlu1 %1894 }
 0x44a   : > { %v4777_v12 = vpop.permute.xlu2 %1896 }
 0x44b   : > { %3187 = vset.pattern.permute.xlu1 %v5356_v28 }
 0x44c   : > { %2126 = vperm.xlu1 %3187, %v4749_v2  }
 0x44d   : > { %3182 = vset.pattern.permute.xlu0 %v5356_v28  ;;  %2080 = vperm.xlu2 %3181, %v4741_v3  }
 0x44e   : > { %1809 = vperm.xlu0 %3182, %v5344_v62  }
 0x450   : > { %v1909_v16 = vpop.permute.xlu1 %1908 }
 0x451   : > { %v1920_v24 = vsel %vm4603_vm0, %v1909_v16, 0.0  ;;  %v5367_v16 = vmov 9  }
 0x452   : > { %v1911_v58 = vpop.permute.xlu2 %1910 }
 0x453   : > { %v1921_v27 = vsel %vm4603_vm0, %v1911_v58, 0.0  ;;  %v3150_v58 = vunpack.i.h.bf16 %v4570_v32  ;;  %v1705_v32 = vmul.f32 %v4563_v30, %v1685_v54 }
 0x454   : > { %3188 = vset.pattern.permute.xlu1 %v5358_v13 }
 0x455   : > { %2143 = vperm.xlu1 %3188, %v4727_v0   ;;  %3184 = vset.pattern.permute.xlu2 %v5355_v50 }
 0x456   : > { %2122 = vperm.xlu0 %3182, %v4718_v40   ;;  %2101 = vperm.xlu2 %3184, %v4749_v2  }
 0x458   : > { %v1915_v22 = vpop.permute.xlu1 %1914 }
 0x459   : > { %v1923_v35 = vsel %vm4603_vm0, %v1915_v22, 0.0 }
 0x45a   : > { %v1926_v37 = vpop.permute.xlu2 %1925 }
 0x45b   : > { %v1940_v52 = vmul.f32 %v1926_v37, %v1920_v24  ;;  %v1729_v37 = vsel %vm792_vm5, %v3150_v58, %v4615_v38 }
 0x45d   : > { %2155 = vperm.xlu1 %3188, %v4741_v3   ;;  %v1944_v5 = vadd.f32 %v1940_v52, %v1904_v63 }
 0x45e   : > { %3186 = vset.pattern.permute.xlu0 %v5358_v13  ;;  %3185 = vset.pattern.permute.xlu2 %v5356_v28 }
 0x45f   : > { %1849 = vperm.xlu0 %3186, %v5344_v62   ;;  %2118 = vperm.xlu2 %3185, %v4727_v0  }
 0x460   : > { %v4797_v50 = vpop.permute.xlu1 %1933 }
 0x462   : > { %v1938_v8 = vpop.permute.xlu2 %1937  ;;  %v1899_v43 = vpop.permute.xlu0 %1898 }
 0x463   : > { %v1943_v17 = vmul.f32 %v1938_v8, %v1923_v35  ;;  %v1907_v14 = vadd.f32 %v1899_v43, %v4694_v46  ;;  %v1737_v8 = vsel %vm4589_vm14, %v1729_v37, 0.0 }
 0x464   : > { %v1757_v38 = vmul.f32 %v4658_v25, %v1737_v8 }
 0x465   : > { %v4802_v20 = vadd.f32 %v1943_v17, %v1907_v14  ;;  %3191 = vset.pattern.permute.xlu1 %v5354_v11  ;;  %v5368_v17 = vmov 10  }
 0x466   : > { %2172 = vperm.xlu1 %3191, %v4718_v40  }
 0x467   : > { %2151 = vperm.xlu0 %3186, %v4749_v2   ;;  %2130 = vperm.xlu2 %3185, %v4741_v3  }
 0x469   : > { %v1951_v62 = vpop.permute.xlu1 %1950 }
 0x46a   : > { %v4808_v28 = vpop.permute.xlu0 %1912  ;;  %v1968_v52 = vadd.f32 %v1951_v62, %v1944_v5 }
 0x46b   : > { %v4813_v29 = vpop.permute.xlu2 %1955 }
 0x46e   : > { %3193 = vset.pattern.permute.xlu1 %v5357_v6 }
 0x46f   : > { %2193 = vperm.xlu1 %3193, %v4727_v0   ;;  %3192 = vset.pattern.permute.xlu0 %v5354_v11 }
 0x470   : > { %3189 = vset.pattern.permute.xlu2 %v5358_v13  ;;  %2180 = vperm.xlu0 %3192, %v4741_v3   ;;  %v1556_v13 = vsel %vm1554_vm13, %v3125_v10, %v4600_v55 }
 0x471   : > { %2147 = vperm.xlu2 %3189, %v4718_v40   ;;  %v4821_v46 = vpop.permute.xlu1 %1965  ;;  %v1564_v24 = vsel %vm4589_vm14, %v1556_v13, 0.0 }
 0x472   : > { %v1930_v60 = vpop.permute.xlu0 %1929 }
 0x473   : > { %v4825_v61 = vmul.f32 %v1930_v60, %v1921_v27  ;;  %v4827_v48 = vpop.permute.xlu2 %1990  ;;  %v5369_v27 = vmov 11  }
 0x477   : > { %2201 = vperm.xlu1 %3193, %v4749_v2  }
 0x478   : > { %3195 = vset.pattern.permute.xlu0 %v5367_v16 }
 0x479   : > { %3190 = vset.pattern.permute.xlu2 %v5354_v11  ;;  %v1996_v22 = vpop.permute.xlu1 %1995  ;;  %2218 = vperm.xlu0 %3195, %v4727_v0   ;;  %v1645_v11 = vsel %vm1643_vm1, %v4561_v21, %v4597_v56  ;;  %v1972_v21 = vmax.f32 %v1968_v52, 0.0 }
 0x47a   : > { %2168 = vperm.xlu2 %3190, %v4727_v0  }
 0x47b   : > { %v1575_v31 = vpop.permute.xlu0 %1574  ;;  %v4862_v5 = vmin.f32 %v1972_v21, 6.0 }
 0x47c   : > { %v2001_v63 = vpop.permute.xlu2 %2000  ;;  %v1588_v55 = vmul.f32 %v1575_v31, %v1564_v24 }
 0x47d   : > { %v2008_v25 = vperm.slane %v4862_v5, 0  ;;  %v2033_v14 = vperm.slane %v4862_v5, 1 }
 0x47e   : > { %v1653_v35 = vadd.f32 %v1645_v11, %v1588_v55  ;;  %v5370_v11 = vmov 12  }
 0x47f   : > { %3196 = vset.pattern.permute.xlu1 %v5367_v16  ;;  %v2010_v37 = vmul.f32 %v2008_v25, %v1996_v22  ;;  %v2011_v8 = vmul.f32 %v2008_v25, %v2001_v63  ;;  %v3142_v22 = vunpack.i.l.bf16 %v4574_v44  ;;  %v5371_v44 = vmov 14  }
 0x480   : > { %v1709_v43 = vadd.f32 %v1705_v32, %v1653_v35  ;;  %2222 = vperm.xlu1 %3196, %v4718_v40  }
 0x481   : > { %3199 = vset.pattern.permute.xlu0 %v5368_v17 }
 0x482   : > { %2176 = vperm.xlu2 %3190, %v4749_v2   ;;  %v2019_v56 = vpop.permute.xlu1 %2018  ;;  %2247 = vperm.xlu0 %3199, %v4718_v40   ;;  %v4858_v30 = vadd.f32 %v1757_v38, %v1709_v43 }
 0x483   : > { %v4860_v53 = vpop.permute.xlu0 %1960 }
 0x485   : > { %v2023_v54 = vpop.permute.xlu2 %2022 }
 0x486   : > { %v2035_v31 = vmul.f32 %v2033_v14, %v2023_v54  ;;  %v2034_v54 = vmul.f32 %v2033_v14, %v2019_v56  ;;  %v2083_v56 = vperm.slane %v4862_v5, 3 }
 0x488   : > { %2230 = vperm.xlu1 %3196, %v4741_v3   ;;  %v2039_v32 = vadd.f32 %v2035_v31, %v2010_v37  ;;  %v1678_v31 = vsel %vm1675_vm15, %v3142_v22, %v4582_v47  ;;  %v5373_v22 = vsel %vm4603_vm0, %v4808_v28, 0.0 }
 0x48a   : > { %3194 = vset.pattern.permute.xlu2 %v5357_v6  ;;  %v2031_v62 = vpop.permute.xlu1 %2030  ;;  %3203 = vset.pattern.permute.xlu0 %v5369_v27  ;;  %v2058_v6 = vperm.slane %v4862_v5, 2 }
 0x48b   : > { %2197 = vperm.xlu2 %3194, %v4718_v40   ;;  %2276 = vperm.xlu0 %3203, %v4749_v2   ;;  %v2006_v60 = vpop.permute.xlu0 %2005  ;;  %v2037_v10 = vmul.f32 %v2033_v14, %v2031_v62 }
 0x48c   : > { %v2012_v13 = vmul.f32 %v2008_v25, %v2006_v60 }
 0x48e   : > { %v4871_v58 = vadd.f32 %v2037_v10, %v2012_v13  ;;  %v2044_v24 = vpop.permute.xlu2 %2043  ;;  %v2009_v10 = vmul.f32 %v2008_v25, %v4827_v48 }
 0x48f   : > { %v2059_v13 = vmul.f32 %v2058_v6, %v2044_v24  ;;  %v1686_v24 = vsel %vm4603_vm0, %v1678_v31, 0.0 }
 0x490   : > { %3200 = vset.pattern.permute.xlu1 %v5368_v17  ;;  %v2038_v63 = vadd.f32 %v2034_v54, %v2009_v10  ;;  %v1942_v10 = vmul.f32 %v4797_v50, %v5373_v22 }
 0x491   : > { %2251 = vperm.xlu1 %3200, %v4749_v2  }
 0x492   : > { %v2063_v48 = vadd.f32 %v2059_v13, %v2038_v63 }
 0x493   : > { %2205 = vperm.xlu2 %3194, %v4741_v3   ;;  %v2048_v55 = vpop.permute.xlu1 %2047  ;;  %3206 = vset.pattern.permute.xlu0 %v5370_v11 }
 0x494   : > { %v2060_v52 = vmul.f32 %v2058_v6, %v2048_v55  ;;  %2305 = vperm.xlu0 %3206, %v4741_v3   ;;  %v2027_v35 = vpop.permute.xlu0 %2026 }
 0x495   : > { %v2036_v38 = vmul.f32 %v2033_v14, %v2027_v35 }
 0x496   : > { %v2064_v43 = vadd.f32 %v2060_v52, %v2039_v32  ;;  %v2052_v21 = vpop.permute.xlu2 %2051 }
 0x497   : > { %v2040_v62 = vadd.f32 %v2036_v38, %v2011_v8  ;;  %v2061_v60 = vmul.f32 %v2058_v6, %v2052_v21  ;;  %v1782_v38 = vmul.f32 %v4670_v49, %v4493_v36  ;;  %v1862_v36 = vmul.f32 %v4696_v18, %v1842_v26 }
 0x498   : > { %v2108_v26 = vperm.slane %v4862_v5, 4 }
 0x499   : > { %v2065_v9 = vadd.f32 %v2061_v60, %v2040_v62  ;;  %3201 = vset.pattern.permute.xlu1 %v5369_v27 }
 0x49a   : > { %2268 = vperm.xlu1 %3201, %v4727_v0  }
 0x49b   : > { %3197 = vset.pattern.permute.xlu2 %v5367_v16  ;;  %v1758_v16 = vmul.f32 %v4638_v1, %v1738_v42 }
 0x49c   : > { %2226 = vperm.xlu2 %3197, %v4749_v2   ;;  %v2069_v14 = vpop.permute.xlu1 %2068  ;;  %3209 = vset.pattern.permute.xlu0 %v5371_v44 }
 0x49d   : > { %v2084_v25 = vmul.f32 %v2083_v56, %v2069_v14  ;;  %2343 = vperm.xlu0 %3209, %v4727_v0  }
 0x49e   : > { %v1698_v37 = vpop.permute.xlu0 %1697 }
 0x49f   : > { %v2088_v55 = vadd.f32 %v2084_v25, %v2063_v48  ;;  %v1706_v47 = vmul.f32 %v1698_v37, %v1686_v24  ;;  %v2073_v32 = vpop.permute.xlu2 %2072  ;;  %v5374_v25 = vmov 13   ;;  %v3364_v37 = vmov 17  }
 0x4a0   : > { %v2085_v52 = vmul.f32 %v2083_v56, %v2073_v32 }
 0x4a1   : > { %v1710_v35 = vadd.f32 %v1706_v47, %v4631_v7  ;;  %v5372_v7 = vmov 15  }
 0x4a2   : > { %v2089_v8 = vadd.f32 %v2085_v52, %v2064_v43  ;;  %2280 = vperm.xlu1 %3201, %v4741_v3  }
 0x4a3   : > { %v1762_v21 = vadd.f32 %v1758_v16, %v1710_v35 }
 0x4a4   : > { %3198 = vset.pattern.permute.xlu2 %v5368_v17  ;;  %v2077_v54 = vpop.permute.xlu1 %2076 }
 0x4a5   : > { %v1786_v62 = vadd.f32 %v1782_v38, %v1762_v21  ;;  %v2086_v1 = vmul.f32 %v2083_v56, %v2077_v54  ;;  %2243 = vperm.xlu2 %3198, %v4727_v0   ;;  %3213 = vset.pattern.permute.xlu0 %v5372_v7  ;;  %v3365_v21 = vmov 19   ;;  %v1801_v54 = vsel %vm4603_vm0, %v4663_v51, 0.0 }
 0x4a6   : > { %2372 = vperm.xlu0 %3213, %v4718_v40   ;;  %v2056_v42 = vpop.permute.xlu0 %2055 }
 0x4a7   : > { %v1826_v49 = vadd.f32 %v1822_v34, %v1786_v62  ;;  %v2090_v17 = vadd.f32 %v2086_v1, %v2065_v9  ;;  %v2062_v4 = vmul.f32 %v2058_v6, %v2056_v42  ;;  %v2081_v43 = vpop.permute.xlu2 %2080  ;;  %v3363_v6 = vmov 16  }
 0x4a8   : > { %v2087_v23 = vmul.f32 %v2083_v56, %v2081_v43  ;;  %v3366_v43 = vmov 20  }
 0x4a9   : > { %v1866_v45 = vadd.f32 %v1862_v36, %v1826_v49  ;;  %v2066_v60 = vadd.f32 %v2062_v4, %v4871_v58  ;;  %v2158_v49 = vperm.slane %v4862_v5, 6 }
 0x4aa   : > { %3205 = vset.pattern.permute.xlu1 %v5370_v11 }
 0x4ab   : > { %v1906_v41 = vadd.f32 %v4777_v12, %v1866_v45  ;;  %v2091_v13 = vadd.f32 %v2087_v23, %v2066_v60  ;;  %2297 = vperm.xlu1 %3205, %v4718_v40  }
 0x4ad   : > { %v1946_v18 = vadd.f32 %v1942_v10, %v1906_v41  ;;  %2255 = vperm.xlu2 %3198, %v4741_v3   ;;  %v2098_v9 = vpop.permute.xlu1 %2097 }
 0x4ae   : > { %v2110_v58 = vmul.f32 %v2108_v26, %v2098_v9  ;;  %3217 = vset.pattern.permute.xlu0 %v3363_v6 }
 0x4af   : > { %v4928_v31 = vadd.f32 %v4860_v53, %v1946_v18  ;;  %2401 = vperm.xlu0 %3217, %v4749_v2   ;;  %v1770_v50 = vpop.permute.xlu0 %1769 }
 0x4b0   : > { %v2114_v12 = vadd.f32 %v2110_v58, %v2089_v8  ;;  %v1781_v28 = vmul.f32 %v1770_v50, %v4500_v19  ;;  %v2102_v63 = vpop.permute.xlu2 %2101  ;;  %v3367_v50 = vmov 21  }
 0x4b1   : > { %v2111_v56 = vmul.f32 %v2108_v26, %v2102_v63 }
 0x4b2   : > { %v1785_v14 = vadd.f32 %v1781_v28, %v4858_v30  ;;  %v2133_v30 = vperm.slane %v4862_v5, 5 }
 0x4b3   : > { %v2115_v48 = vadd.f32 %v2111_v56, %v2090_v17  ;;  %3207 = vset.pattern.permute.xlu1 %v5374_v25 }
 0x4b4   : > { %2318 = vperm.xlu1 %3207, %v4727_v0  }
 0x4b5   : > { %3202 = vset.pattern.permute.xlu2 %v5369_v27  ;;  %v2106_v24 = vpop.permute.xlu1 %2105 }
 0x4b6   : > { %v2112_v53 = vmul.f32 %v2108_v26, %v2106_v24  ;;  %2272 = vperm.xlu2 %3202, %v4718_v40  }
 0x4b7   : > { %3220 = vset.pattern.permute.xlu0 %v3364_v37  ;;  %v2094_v47 = vpop.permute.xlu0 %2093 }
 0x4b8   : > { %v2116_v19 = vadd.f32 %v2112_v53, %v2091_v13  ;;  %v2109_v32 = vmul.f32 %v2108_v26, %v2094_v47  ;;  %2430 = vperm.xlu0 %3220, %v4741_v3   ;;  %v1841_v26 = vsel %vm4589_vm14, %v4680_v33, 0.0 }
 0x4b9   : > { %v2119_v52 = vpop.permute.xlu2 %2118 }
 0x4ba   : > { %v2113_v16 = vadd.f32 %v2109_v32, %v2088_v55  ;;  %v2134_v35 = vmul.f32 %v2133_v30, %v2119_v52 }
 0x4bc   : > { %v2138_v8 = vadd.f32 %v2134_v35, %v2113_v16  ;;  %2326 = vperm.xlu1 %3207, %v4749_v2  }
 0x4be   : > { %3204 = vset.pattern.permute.xlu2 %v5370_v11  ;;  %v2127_v27 = vpop.permute.xlu1 %2126 }
 0x4bf   : > { %v2136_v38 = vmul.f32 %v2133_v30, %v2127_v27  ;;  %2293 = vperm.xlu2 %3204, %v4727_v0  }
 0x4c0   : > { %3223 = vset.pattern.permute.xlu0 %v3365_v21  ;;  %v1810_v34 = vpop.permute.xlu0 %1809 }
 0x4c1   : > { %v2140_v62 = vadd.f32 %v2136_v38, %v2115_v48  ;;  %v1821_v55 = vmul.f32 %v1810_v34, %v1801_v54  ;;  %2468 = vperm.xlu0 %3223, %v4727_v0   ;;  %v2131_v1 = vpop.permute.xlu2 %2130  ;;  %v3369_v34 = vmov 24  }
 0x4c2   : > { %v2137_v42 = vmul.f32 %v2133_v30, %v2131_v1 }
 0x4c3   : > { %v1825_v36 = vadd.f32 %v1821_v55, %v1785_v14 }
 0x4c4   : > { %v2141_v11 = vadd.f32 %v2137_v42, %v2116_v19  ;;  %3210 = vset.pattern.permute.xlu1 %v5371_v44  ;;  %v3368_v19 = vmov 22  }
 0x4c5   : > { %2347 = vperm.xlu1 %3210, %v4718_v40  }
 0x4c7   : > { %2301 = vperm.xlu2 %3204, %v4749_v2   ;;  %v2144_v17 = vpop.permute.xlu1 %2143 }
 0x4c8   : > { %v2159_v57 = vmul.f32 %v2158_v49, %v2144_v17  ;;  %v2123_v51 = vpop.permute.xlu0 %2122 }
 0x4c9   : > { %v2135_v4 = vmul.f32 %v2133_v30, %v2123_v51  ;;  %3227 = vset.pattern.permute.xlu0 %v3366_v43 }
 0x4ca   : > { %v2163_v23 = vadd.f32 %v2159_v57, %v2138_v8  ;;  %2497 = vperm.xlu0 %3227, %v4718_v40  }
 0x4cb   : > { %v2139_v45 = vadd.f32 %v2135_v4, %v2114_v12  ;;  %v2148_v60 = vpop.permute.xlu2 %2147  ;;  %v2183_v12 = vperm.slane %v4862_v5, 7  ;;  %v3370_v4 = vmov 25  }
 0x4cc   : > { %v2160_v22 = vmul.f32 %v2158_v49, %v2148_v60 }
 0x4cd   : > { %2355 = vperm.xlu1 %3210, %v4741_v3  }
 0x4ce   : > { %v2164_v10 = vadd.f32 %v2160_v22, %v2139_v45 }
 0x4cf   : > { %3208 = vset.pattern.permute.xlu2 %v5374_v25  ;;  %v2156_v41 = vpop.permute.xlu1 %2155 }
 0x4d0   : > { %v2162_v13 = vmul.f32 %v2158_v49, %v2156_v41  ;;  %2322 = vperm.xlu2 %3208, %v4718_v40  }
 0x4d1   : > { %v1850_v18 = vpop.permute.xlu0 %1849 }
 0x4d2   : > { %v2166_v9 = vadd.f32 %v2162_v13, %v2141_v11  ;;  %v1861_v58 = vmul.f32 %v1850_v18, %v1841_v26  ;;  %3231 = vset.pattern.permute.xlu0 %v3367_v50 }
 0x4d3   : > { %2526 = vperm.xlu0 %3231, %v4749_v2  }
 0x4d4   : > { %v1865_v28 = vadd.f32 %v1861_v58, %v1825_v36  ;;  %v2169_v63 = vpop.permute.xlu2 %2168 }
 0x4d5   : > { %v2184_v56 = vmul.f32 %v2183_v12, %v2169_v63  ;;  %3214 = vset.pattern.permute.xlu1 %v5372_v7 }
 0x4d6   : > { %v1905_v14 = vadd.f32 %v4775_v59, %v1865_v28  ;;  %2376 = vperm.xlu1 %3214, %v4749_v2   ;;  %v3372_v28 = vmov 18  }
 0x4d7   : > { %v2188_v15 = vadd.f32 %v2184_v56, %v2163_v23 }
 0x4d8   : > { %v1945_v33 = vadd.f32 %v4825_v61, %v1905_v14  ;;  %2330 = vperm.xlu2 %3208, %v4741_v3   ;;  %v2173_v48 = vpop.permute.xlu1 %2172 }
 0x4d9   : > { %v2185_v25 = vmul.f32 %v2183_v12, %v2173_v48  ;;  %v2152_v24 = vpop.permute.xlu0 %2151 }
 0x4da   : > { %v1969_v53 = vadd.f32 %v4813_v29, %v1945_v33  ;;  %v2161_v5 = vmul.f32 %v2158_v49, %v2152_v24 }
 0x4db   : > { %v2189_v47 = vadd.f32 %v2185_v25, %v2164_v10  ;;  %3234 = vset.pattern.permute.xlu0 %v3368_v19 }
 0x4dc   : > { %v1973_v32 = vmax.f32 %v1969_v53, 0.0  ;;  %v2165_v30 = vadd.f32 %v2161_v5, %v2140_v62  ;;  %v2177_v59 = vpop.permute.xlu2 %2176  ;;  %2555 = vperm.xlu0 %3234, %v4741_v3   ;;  %v3373_v53 = vmov 27  }
 0x4dd   : > { %v2186_v52 = vmul.f32 %v2183_v12, %v2177_v59 }
 0x4de   : > { %v4971_v16 = vmin.f32 %v1973_v32, 6.0  ;;  %3215 = vset.pattern.permute.xlu1 %v3363_v6 }
 0x4df   : > { %v2190_v61 = vadd.f32 %v2186_v52, %v2165_v30  ;;  %2393 = vperm.xlu1 %3215, %v4727_v0  }
 0x4e0   : > { %3211 = vset.pattern.permute.xlu2 %v5371_v44  ;;  %v2208_v29 = vperm.slane %v4971_v16, 0  ;;  %v2233_v11 = vperm.slane %v4971_v16, 1  ;;  %v2258_v10 = vperm.slane %v4971_v16, 2  ;;  %v2308_v30 = vperm.slane %v4971_v16, 4 }
 0x4e1   : > { %2351 = vperm.xlu2 %3211, %v4749_v2   ;;  %v2194_v35 = vpop.permute.xlu1 %2193 }
 0x4e2   : > { %v2209_v8 = vmul.f32 %v2208_v29, %v2194_v35  ;;  %v2181_v27 = vpop.permute.xlu0 %2180 }
 0x4e3   : > { %v2187_v38 = vmul.f32 %v2183_v12, %v2181_v27 }
 0x4e4   : > { %v2213_v54 = vadd.f32 %v2209_v8, %v2188_v15  ;;  %3237 = vset.pattern.permute.xlu0 %v3369_v34  ;;  %v2283_v15 = vperm.slane %v4971_v16, 3  ;;  %v3374_v8 = vmov 29  }
 0x4e5   : > { %v2191_v62 = vadd.f32 %v2187_v38, %v2166_v9  ;;  %v2198_v55 = vpop.permute.xlu2 %2197  ;;  %2593 = vperm.xlu0 %3237, %v4727_v0   ;;  %v3371_v9 = vmov 26  }
 0x4e6   : > { %v2210_v1 = vmul.f32 %v2208_v29, %v2198_v55 }
 0x4e7   : > { %2405 = vperm.xlu1 %3215, %v4741_v3  }
 0x4e8   : > { %v2214_v44 = vadd.f32 %v2210_v1, %v2189_v47 }
 0x4e9   : > { %3212 = vset.pattern.permute.xlu2 %v5372_v7  ;;  %v2202_v42 = vpop.permute.xlu1 %2201 }
 0x4ea   : > { %v2211_v36 = vmul.f32 %v2208_v29, %v2202_v42  ;;  %2368 = vperm.xlu2 %3212, %v4727_v0  }
 0x4eb   : > { %v2219_v49 = vpop.permute.xlu0 %2218 }
 0x4ec   : > { %v2215_v17 = vadd.f32 %v2211_v36, %v2190_v61  ;;  %v2234_v57 = vmul.f32 %v2233_v11, %v2219_v49 }
 0x4ed   : > { %v2206_v51 = vpop.permute.xlu2 %2205  ;;  %3241 = vset.pattern.permute.xlu0 %v3370_v4 }
 0x4ee   : > { %v2238_v23 = vadd.f32 %v2234_v57, %v2213_v54  ;;  %v2212_v45 = vmul.f32 %v2208_v29, %v2206_v51  ;;  %2622 = vperm.xlu0 %3241, %v4718_v40  }
 0x4ef   : > { %3219 = vset.pattern.permute.xlu1 %v3364_v37 }
 0x4f0   : > { %v2216_v7 = vadd.f32 %v2212_v45, %v2191_v62  ;;  %2422 = vperm.xlu1 %3219, %v4718_v40   ;;  %v5008_v62 = vperm.slane %v4971_v16, 6  ;;  %v1974_v45 = vmax.f32 %v4928_v31, 0.0 }
 0x4f2   : > { %2380 = vperm.xlu2 %3212, %v4741_v3   ;;  %v2223_v60 = vpop.permute.xlu1 %2222 }
 0x4f3   : > { %v2235_v22 = vmul.f32 %v2233_v11, %v2223_v60 }
 0x4f4   : > { %v2248_v41 = vpop.permute.xlu0 %2247 }
 0x4f5   : > { %v2239_v13 = vadd.f32 %v2235_v22, %v2214_v44  ;;  %v2260_v26 = vmul.f32 %v2258_v10, %v2248_v41 }
 0x4f6   : > { %v2227_v18 = vpop.permute.xlu2 %2226  ;;  %3245 = vset.pattern.permute.xlu0 %v3371_v9 }
 0x4f7   : > { %v2264_v58 = vadd.f32 %v2260_v26, %v2239_v13  ;;  %v2236_v12 = vmul.f32 %v2233_v11, %v2227_v18  ;;  %2651 = vperm.xlu0 %3245, %v4749_v2   ;;  %v3376_v13 = vmov 31   ;;  %v5024_v26 = vmin.f32 %v1974_v45, 6.0 }
 0x4f8   : > { %3221 = vset.pattern.permute.xlu1 %v3372_v28 }
 0x4f9   : > { %v2240_v63 = vadd.f32 %v2236_v12, %v2215_v17  ;;  %2443 = vperm.xlu1 %3221, %v4727_v0  }
 0x4fa   : > { %3216 = vset.pattern.permute.xlu2 %v3363_v6  ;;  %v2231_v56 = vpop.permute.xlu1 %2230 }
 0x4fb   : > { %v2237_v14 = vmul.f32 %v2233_v11, %v2231_v56  ;;  %2397 = vperm.xlu2 %3216, %v4718_v40   ;;  %v3375_v11 = vmov 30  }
 0x4fd   : > { %v2241_v33 = vadd.f32 %v2237_v14, %v2216_v7  ;;  %v2277_v48 = vpop.permute.xlu0 %2276 }
 0x4fe   : > { %v2286_v25 = vmul.f32 %v2283_v15, %v2277_v48  ;;  %v2333_v48 = vperm.slane %v4971_v16, 5 }
 0x4ff   : > { %v2244_v24 = vpop.permute.xlu2 %2243  ;;  %3248 = vset.pattern.permute.xlu0 %v3373_v53 }
 0x500   : > { %v2259_v5 = vmul.f32 %v2258_v10, %v2244_v24  ;;  %2680 = vperm.xlu0 %3248, %v4741_v3  }
 0x501   : > { %2451 = vperm.xlu1 %3221, %v4749_v2  }
 0x502   : > { %v2263_v47 = vadd.f32 %v2259_v5, %v2238_v23  ;;  %v5016_v23 = vperm.slane %v4971_v16, 7 }
 0x503   : > { %3218 = vset.pattern.permute.xlu2 %v3364_v37  ;;  %v2252_v6 = vpop.permute.xlu1 %2251 }
 0x504   : > { %v2261_v32 = vmul.f32 %v2258_v10, %v2252_v6  ;;  %2418 = vperm.xlu2 %3218, %v4727_v0  }
 0x506   : > { %v2265_v59 = vadd.f32 %v2261_v32, %v2240_v63  ;;  %v2306_v52 = vpop.permute.xlu0 %2305 }
 0x507   : > { %v2256_v61 = vpop.permute.xlu2 %2255  ;;  %v2312_v29 = vmul.f32 %v2308_v30, %v2306_v52 }
 0x508   : > { %v2262_v35 = vmul.f32 %v2258_v10, %v2256_v61  ;;  %3251 = vset.pattern.permute.xlu0 %v3374_v8  ;;  %v2290_v27 = vadd.f32 %v2286_v25, %v2265_v59 }
 0x509   : > { %3224 = vset.pattern.permute.xlu1 %v3365_v21  ;;  %2718 = vperm.xlu0 %3251, %v4727_v0  }
 0x50a   : > { %v2266_v37 = vadd.f32 %v2262_v35, %v2241_v33  ;;  %2472 = vperm.xlu1 %3224, %v4718_v40  }
 0x50c   : > { %2426 = vperm.xlu2 %3218, %v4749_v2   ;;  %v2269_v38 = vpop.permute.xlu1 %2268 }
 0x50d   : > { %v2284_v54 = vmul.f32 %v2283_v15, %v2269_v38 }
 0x50f   : > { %v2288_v55 = vadd.f32 %v2284_v54, %v2263_v47  ;;  %v2344_v1 = vpop.permute.xlu0 %2343  ;;  %v5038_v47 = vperm.slane %v5024_v26, 1 }
 0x510   : > { %v2273_v44 = vpop.permute.xlu2 %2272  ;;  %v2359_v42 = vmul.f32 %v5008_v62, %v2344_v1 }
 0x511   : > { %v2285_v36 = vmul.f32 %v2283_v15, %v2273_v44  ;;  %3255 = vset.pattern.permute.xlu0 %v3375_v11 }
 0x512   : > { %2480 = vperm.xlu1 %3224, %v4741_v3   ;;  %2747 = vperm.xlu0 %3255, %v4718_v40  }
 0x513   : > { %v2289_v49 = vadd.f32 %v2285_v36, %v2264_v58 }
 0x514   : > { %3222 = vset.pattern.permute.xlu2 %v3372_v28  ;;  %v2281_v17 = vpop.permute.xlu1 %2280  ;;  %v5028_v28 = vperm.slane %v5024_v26, 0 }
 0x515   : > { %v2287_v57 = vmul.f32 %v2283_v15, %v2281_v17  ;;  %2447 = vperm.xlu2 %3222, %v4718_v40  }
 0x517   : > { %v2291_v51 = vadd.f32 %v2287_v57, %v2266_v37 }
 0x518   : > { %v2373_v7 = vpop.permute.xlu0 %2372 }
 0x519   : > { %v2294_v60 = vpop.permute.xlu2 %2293  ;;  %v2385_v22 = vmul.f32 %v5016_v23, %v2373_v7  ;;  %v2316_v10 = vadd.f32 %v2312_v29, %v2291_v51 }
 0x51a   : > { %v2309_v41 = vmul.f32 %v2308_v30, %v2294_v60  ;;  %3228 = vset.pattern.permute.xlu1 %v3366_v43  ;;  %3259 = vset.pattern.permute.xlu0 %v3376_v13 }
 0x51b   : > { %2501 = vperm.xlu1 %3228, %v4749_v2   ;;  %2776 = vperm.xlu0 %3259, %v4749_v2  }
 0x51c   : > { %v2313_v18 = vadd.f32 %v2309_v41, %v2288_v55 }
 0x51d   : > { %2455 = vperm.xlu2 %3222, %v4741_v3   ;;  %v2298_v31 = vpop.permute.xlu1 %2297 }
 0x51e   : > { %v2310_v58 = vmul.f32 %v2308_v30, %v2298_v31 }
 0x520   : > { %v2314_v12 = vadd.f32 %v2310_v58, %v2289_v49 }
 0x521   : > { %v2302_v63 = vpop.permute.xlu2 %2301  ;;  %v2402_v56 = vpop.permute.xlu0 %2401 }
 0x522   : > { %v2311_v14 = vmul.f32 %v2308_v30, %v2302_v63  ;;  %v2411_v15 = vmul.f32 %v5028_v28, %v2402_v56 }
 0x523   : > { %3229 = vset.pattern.permute.xlu1 %v3367_v50  ;;  %3262 = vset.pattern.permute.xlu0 %v5364_v39 }
 0x524   : > { %v2315_v33 = vadd.f32 %v2311_v14, %v2290_v27  ;;  %2518 = vperm.xlu1 %3229, %v4727_v0  }
 0x525   : > { %3225 = vset.pattern.permute.xlu2 %v3365_v21 }
 0x526   : > { %2476 = vperm.xlu2 %3225, %v4749_v2   ;;  %v2319_v25 = vpop.permute.xlu1 %2318 }
 0x527   : > { %v2334_v24 = vmul.f32 %v2333_v48, %v2319_v25 }
 0x529   : > { %v2338_v5 = vadd.f32 %v2334_v24, %v2313_v18 }
 0x52a   : > { %v2323_v6 = vpop.permute.xlu2 %2322  ;;  %v2431_v32 = vpop.permute.xlu0 %2430 }
 0x52b   : > { %v2335_v30 = vmul.f32 %v2333_v48, %v2323_v6  ;;  %v2437_v59 = vmul.f32 %v5038_v47, %v2431_v32  ;;  %v2363_v52 = vadd.f32 %v2359_v42, %v2338_v5  ;;  %v3377_v42 = vmov 23  }
 0x52c   : > { %2530 = vperm.xlu1 %3229, %v4741_v3  }
 0x52d   : > { %v2339_v61 = vadd.f32 %v2335_v30, %v2314_v12  ;;  %v5077_v30 = vld [vmem:[%s5202_s12] sm:$0xff] }
 0x52e   : > { %3226 = vset.pattern.permute.xlu2 %v3366_v43  ;;  %v2327_v21 = vpop.permute.xlu1 %2326 }
 0x52f   : > { %v2336_v16 = vmul.f32 %v2333_v48, %v2327_v21  ;;  %2493 = vperm.xlu2 %3226, %v4727_v0  }
 0x531   : > { %v2340_v29 = vadd.f32 %v2336_v16, %v2315_v33 }
 0x532   : > { %v2331_v35 = vpop.permute.xlu2 %2330 }
 0x533   : > { %v2337_v27 = vmul.f32 %v2333_v48, %v2331_v35 }
 0x534   : > { %3233 = vset.pattern.permute.xlu1 %v3368_v19 }
 0x535   : > { %v2341_v37 = vadd.f32 %v2337_v27, %v2316_v10  ;;  %2547 = vperm.xlu1 %3233, %v4718_v40  }
 0x537   : > { %2505 = vperm.xlu2 %3226, %v4741_v3   ;;  %v2348_v38 = vpop.permute.xlu1 %2347 }
 0x538   : > { %v2360_v54 = vmul.f32 %v5008_v62, %v2348_v38 }
 0x53a   : > { %v2364_v55 = vadd.f32 %v2360_v54, %v2339_v61 }
 0x53b   : > { %v2352_v1 = vpop.permute.xlu2 %2351 }
 0x53c   : > { %v2361_v43 = vmul.f32 %v5008_v62, %v2352_v1  ;;  %v2389_v44 = vadd.f32 %v2385_v22, %v2364_v55 }
 0x53d   : > { %3235 = vset.pattern.permute.xlu1 %v3377_v42 }
 0x53e   : > { %v2365_v36 = vadd.f32 %v2361_v43, %v2340_v29  ;;  %2568 = vperm.xlu1 %3235, %v4727_v0  }
 0x53f   : > { %3230 = vset.pattern.permute.xlu2 %v3367_v50  ;;  %v2356_v49 = vpop.permute.xlu1 %2355 }
 0x540   : > { %v2362_v17 = vmul.f32 %v5008_v62, %v2356_v49  ;;  %2522 = vperm.xlu2 %3230, %v4718_v40  }
 0x542   : > { %v2366_v57 = vadd.f32 %v2362_v17, %v2341_v37  ;;  %v5087_v37 = vld [vmem:[%s5202_s12 + $0x18] sm:$0xff] }
 0x544   : > { %v2369_v51 = vpop.permute.xlu2 %2368 }
 0x545   : > { %v2384_v45 = vmul.f32 %v5016_v23, %v2369_v51 }
 0x546   : > { %2576 = vperm.xlu1 %3235, %v4749_v2  }
 0x547   : > { %v2388_v7 = vadd.f32 %v2384_v45, %v2363_v52 }
 0x548   : > { %3232 = vset.pattern.permute.xlu2 %v3368_v19  ;;  %v2377_v60 = vpop.permute.xlu1 %2376 }
 0x549   : > { %v2386_v22 = vmul.f32 %v5016_v23, %v2377_v60  ;;  %2543 = vperm.xlu2 %3232, %v4727_v0   ;;  %v3378_v60 = vmov 28  }
 0x54b   : > { %v2390_v50 = vadd.f32 %v2386_v22, %v2365_v36  ;;  %v2508_v36 = vperm.slane %v5024_v26, 4 }
 0x54c   : > { %v2381_v10 = vpop.permute.xlu2 %2380 }
 0x54d   : > { %v2387_v62 = vmul.f32 %v5016_v23, %v2381_v10  ;;  %v2415_v41 = vadd.f32 %v2411_v15, %v2390_v50 }
 0x54e   : > { %3238 = vset.pattern.permute.xlu1 %v3369_v34 }
 0x54f   : > { %v2391_v18 = vadd.f32 %v2387_v62, %v2366_v57  ;;  %2597 = vperm.xlu1 %3238, %v4718_v40  }
 0x551   : > { %2551 = vperm.xlu2 %3232, %v4749_v2   ;;  %v2394_v31 = vpop.permute.xlu1 %2393 }
 0x552   : > { %v2409_v19 = vmul.f32 %v5028_v28, %v2394_v31  ;;  %v3267_v31 = vld [vmem:[%s5202_s12 + $0x10] sm:$0xff] }
 0x554   : > { %v2413_v58 = vadd.f32 %v2409_v19, %v2388_v7 }
 0x555   : > { %v2398_v12 = vpop.permute.xlu2 %2397 }
 0x556   : > { %v2410_v63 = vmul.f32 %v5028_v28, %v2398_v12 }
 0x557   : > { %2605 = vperm.xlu1 %3238, %v4741_v3  }
 0x558   : > { %v2414_v0 = vadd.f32 %v2410_v63, %v2389_v44  ;;  %v5096_v44 = vld [vmem:[%s5202_s12 + $0x8] sm:$0xff]  ;;  %v2533_v63 = vperm.slane %v5024_v26, 5 }
 0x559   : > { %3236 = vset.pattern.permute.xlu2 %v3377_v42  ;;  %v2406_v23 = vpop.permute.xlu1 %2405 }
 0x55a   : > { %v2412_v56 = vmul.f32 %v5028_v28, %v2406_v23  ;;  %2572 = vperm.xlu2 %3236, %v4718_v40  }
 0x55c   : > { %v2416_v14 = vadd.f32 %v2412_v56, %v2391_v18 }
 0x55e   : > { %v2419_v15 = vpop.permute.xlu2 %2418  ;;  %v2441_v33 = vadd.f32 %v2437_v59, %v2416_v14  ;;  %v2469_v59 = vpop.permute.xlu0 %2468 }
 0x55f   : > { %v2434_v48 = vmul.f32 %v5038_v47, %v2419_v15  ;;  %3242 = vset.pattern.permute.xlu1 %v3370_v4 }
 0x560   : > { %2626 = vperm.xlu1 %3242, %v4749_v2  }
 0x561   : > { %v2438_v25 = vadd.f32 %v2434_v48, %v2413_v58 }
 0x562   : > { %2580 = vperm.xlu2 %3236, %v4741_v3   ;;  %v2423_v24 = vpop.permute.xlu1 %2422  ;;  %v2458_v3 = vperm.slane %v5024_v26, 2 }
 0x563   : > { %v2435_v5 = vmul.f32 %v5038_v47, %v2423_v24 }
 0x565   : > { %v2439_v6 = vadd.f32 %v2435_v5, %v2414_v0 }
 0x566   : > { %v2427_v32 = vpop.permute.xlu2 %2426  ;;  %v2498_v42 = vpop.permute.xlu0 %2497 }
 0x567   : > { %v2436_v28 = vmul.f32 %v5038_v47, %v2427_v32  ;;  %v2483_v47 = vperm.slane %v5024_v26, 3  ;;  %v2510_v17 = vmul.f32 %v2508_v36, %v2498_v42 }
 0x568   : > { %3243 = vset.pattern.permute.xlu1 %v3371_v9 }
 0x569   : > { %v2440_v40 = vadd.f32 %v2436_v28, %v2415_v41  ;;  %2643 = vperm.xlu1 %3243, %v5077_v30   ;;  %v2484_v21 = vmul.f32 %v2483_v47, %v2469_v59 }
 0x56a   : > { %3239 = vset.pattern.permute.xlu2 %v3369_v34 }
 0x56b   : > { %2601 = vperm.xlu2 %3239, %v4749_v2   ;;  %v2444_v52 = vpop.permute.xlu1 %2443 }
 0x56c   : > { %v2459_v61 = vmul.f32 %v2458_v3, %v2444_v52 }
 0x56e   : > { %v2463_v16 = vadd.f32 %v2459_v61, %v2438_v25  ;;  %v2527_v58 = vpop.permute.xlu0 %2526 }
 0x56f   : > { %v2448_v29 = vpop.permute.xlu2 %2447  ;;  %v2536_v0 = vmul.f32 %v2533_v63, %v2527_v58 }
 0x570   : > { %v2460_v35 = vmul.f32 %v2458_v3, %v2448_v29  ;;  %v2488_v27 = vadd.f32 %v2484_v21, %v2463_v16  ;;  %v1971_v29 = vadd.f32 %v4821_v46, %v4802_v20  ;;  %v2583_v20 = vperm.slane %v5024_v26, 7 }
 0x571   : > { %2655 = vperm.xlu1 %3243, %v5087_v37  }
 0x572   : > { %v2464_v34 = vadd.f32 %v2460_v35, %v2439_v6  ;;  %v1987_v6 = vld [vmem:[%s5203_s13 + $0x18] sm:$0xff] }
 0x573   : > { %3240 = vset.pattern.permute.xlu2 %v3370_v4  ;;  %v2452_v2 = vpop.permute.xlu1 %2451  ;;  %2809 = vperm.xlu0 %3262, %v1987_v6  }
 0x574   : > { %v2461_v38 = vmul.f32 %v2458_v3, %v2452_v2  ;;  %2618 = vperm.xlu2 %3240, %v5077_v30   ;;  %v1975_v2 = vmax.f32 %v1971_v29, 0.0 }
 0x576   : > { %v2465_v54 = vadd.f32 %v2461_v38, %v2440_v40  ;;  %v2556_v28 = vpop.permute.xlu0 %2555 }
 0x577   : > { %v2456_v55 = vpop.permute.xlu2 %2455 }
 0x578   : > { %v2462_v1 = vmul.f32 %v2458_v3, %v2456_v55  ;;  %v2558_v3 = vperm.slane %v5024_v26, 6 }
 0x579   : > { %3247 = vset.pattern.permute.xlu1 %v3373_v53 }
 0x57a   : > { %v2466_v43 = vadd.f32 %v2462_v1, %v2441_v33  ;;  %2672 = vperm.xlu1 %3247, %v5096_v44   ;;  %v2562_v52 = vmul.f32 %v2558_v3, %v2556_v28  ;;  %v5122_v1 = vmin.f32 %v1975_v2, 6.0  ;;  %v1986_v28 = vld [vmem:[%s5203_s13 + $0x10] sm:$0xff] }
 0x57c   : > { %2630 = vperm.xlu2 %3240, %v5087_v37   ;;  %v2473_v4 = vpop.permute.xlu1 %2472  ;;  %v2683_v29 = vperm.slane %v5122_v1, 3 }
 0x57d   : > { %v2485_v49 = vmul.f32 %v2483_v47, %v2473_v4  ;;  %v2608_v4 = vperm.slane %v5122_v1, 0 }
 0x57e   : > { %v2594_v46 = vpop.permute.xlu0 %2593 }
 0x57f   : > { %v2489_v57 = vadd.f32 %v2485_v49, %v2464_v34  ;;  %v2609_v49 = vmul.f32 %v2608_v4, %v2594_v46 }
 0x580   : > { %v2477_v51 = vpop.permute.xlu2 %2476 }
 0x581   : > { %v2486_v45 = vmul.f32 %v2483_v47, %v2477_v51  ;;  %v2514_v7 = vadd.f32 %v2510_v17, %v2489_v57 }
 0x582   : > { %3249 = vset.pattern.permute.xlu1 %v3378_v60 }
 0x583   : > { %v2490_v22 = vadd.f32 %v2486_v45, %v2465_v54  ;;  %2693 = vperm.xlu1 %3249, %v5077_v30  }
 0x584   : > { %3244 = vset.pattern.permute.xlu2 %v3371_v9  ;;  %v2481_v50 = vpop.permute.xlu1 %2480 }
 0x585   : > { %v2487_v10 = vmul.f32 %v2483_v47, %v2481_v50  ;;  %2647 = vperm.xlu2 %3244, %v5096_v44   ;;  %v1985_v50 = vld [vmem:[%s5203_s13 + $0x8] sm:$0xff] }
 0x587   : > { %v2491_v62 = vadd.f32 %v2487_v10, %v2466_v43 }
 0x589   : > { %v2494_v41 = vpop.permute.xlu2 %2493 }
 0x58a   : > { %v2509_v18 = vmul.f32 %v2508_v36, %v2494_v41  ;;  %v2623_v41 = vpop.permute.xlu0 %2622 }
 0x58b   : > { %2701 = vperm.xlu1 %3249, %v3267_v31  }
 0x58c   : > { %v2513_v19 = vadd.f32 %v2509_v18, %v2488_v27 }
 0x58d   : > { %3246 = vset.pattern.permute.xlu2 %v3373_v53  ;;  %v2502_v12 = vpop.permute.xlu1 %2501 }
 0x58e   : > { %v2511_v9 = vmul.f32 %v2508_v36, %v2502_v12  ;;  %2668 = vperm.xlu2 %3246, %v5077_v30  }
 0x590   : > { %v2515_v23 = vadd.f32 %v2511_v9, %v2490_v22 }
 0x591   : > { %v2506_v56 = vpop.permute.xlu2 %2505 }
 0x592   : > { %v2512_v14 = vmul.f32 %v2508_v36, %v2506_v56  ;;  %v2540_v15 = vadd.f32 %v2536_v0, %v2515_v23 }
 0x593   : > { %3252 = vset.pattern.permute.xlu1 %v3374_v8 }
 0x594   : > { %v2516_v33 = vadd.f32 %v2512_v14, %v2491_v62  ;;  %2722 = vperm.xlu1 %3252, %v5096_v44  }
 0x596   : > { %2676 = vperm.xlu2 %3246, %v3267_v31   ;;  %v2519_v48 = vpop.permute.xlu1 %2518 }
 0x597   : > { %v2534_v25 = vmul.f32 %v2533_v63, %v2519_v48  ;;  %v2652_v48 = vpop.permute.xlu0 %2651 }
 0x599   : > { %v2538_v53 = vadd.f32 %v2534_v25, %v2513_v19 }
 0x59a   : > { %v2523_v24 = vpop.permute.xlu2 %2522 }
 0x59b   : > { %v2535_v5 = vmul.f32 %v2533_v63, %v2523_v24 }
 0x59c   : > { %2730 = vperm.xlu1 %3252, %v5087_v37  }
 0x59d   : > { %v2539_v32 = vadd.f32 %v2535_v5, %v2514_v7 }
 0x59e   : > { %3250 = vset.pattern.permute.xlu2 %v3378_v60  ;;  %v2531_v40 = vpop.permute.xlu1 %2530 }
 0x59f   : > { %v2537_v59 = vmul.f32 %v2533_v63, %v2531_v40  ;;  %2697 = vperm.xlu2 %3250, %v5096_v44  }
 0x5a1   : > { %v2541_v47 = vadd.f32 %v2537_v59, %v2516_v33 }
 0x5a3   : > { %v2544_v61 = vpop.permute.xlu2 %2543  ;;  %v2566_v21 = vadd.f32 %v2562_v52, %v2541_v47 }
 0x5a4   : > { %v2559_v16 = vmul.f32 %v2558_v3, %v2544_v61  ;;  %3256 = vset.pattern.permute.xlu1 %v3375_v11 }
 0x5a5   : > { %2751 = vperm.xlu1 %3256, %v3267_v31  }
 0x5a6   : > { %v2563_v35 = vadd.f32 %v2559_v16, %v2538_v53  ;;  %v2658_v53 = vperm.slane %v5122_v1, 2 }
 0x5a7   : > { %2705 = vperm.xlu2 %3250, %v5087_v37   ;;  %v2548_v27 = vpop.permute.xlu1 %2547 }
 0x5a8   : > { %v2560_v34 = vmul.f32 %v2558_v3, %v2548_v27 }
 0x5aa   : > { %v2564_v38 = vadd.f32 %v2560_v34, %v2539_v32 }
 0x5ab   : > { %v2552_v54 = vpop.permute.xlu2 %2551 }
 0x5ac   : > { %v2561_v55 = vmul.f32 %v2558_v3, %v2552_v54 }
 0x5ad   : > { %3257 = vset.pattern.permute.xlu1 %v3376_v13 }
 0x5ae   : > { %v2565_v43 = vadd.f32 %v2561_v55, %v2540_v15  ;;  %2768 = vperm.xlu1 %3257, %v5077_v30  }
 0x5af   : > { %3253 = vset.pattern.permute.xlu2 %v3374_v8 }
 0x5b0   : > { %2726 = vperm.xlu2 %3253, %v3267_v31   ;;  %v2569_v42 = vpop.permute.xlu1 %2568 }
 0x5b1   : > { %v2584_v36 = vmul.f32 %v2583_v20, %v2569_v42 }
 0x5b3   : > { %v2588_v17 = vadd.f32 %v2584_v36, %v2563_v35 }
 0x5b4   : > { %v2573_v57 = vpop.permute.xlu2 %2572 }
 0x5b5   : > { %v2585_v51 = vmul.f32 %v2583_v20, %v2573_v57  ;;  %v2613_v45 = vadd.f32 %v2609_v49, %v2588_v17  ;;  %v2708_v49 = vperm.slane %v5122_v1, 4 }
 0x5b6   : > { %2780 = vperm.xlu1 %3257, %v5087_v37  }
 0x5b7   : > { %v2589_v7 = vadd.f32 %v2585_v51, %v2564_v38  ;;  %v2733_v51 = vperm.slane %v5122_v1, 5 }
 0x5b8   : > { %3254 = vset.pattern.permute.xlu2 %v3375_v11  ;;  %v2577_v60 = vpop.permute.xlu1 %2576  ;;  %v2633_v11 = vperm.slane %v5122_v1, 1 }
 0x5b9   : > { %v2586_v8 = vmul.f32 %v2583_v20, %v2577_v60  ;;  %2743 = vperm.xlu2 %3254, %v5077_v30  }
 0x5ba   : > { %v2635_v19 = vmul.f32 %v2633_v11, %v2623_v41 }
 0x5bb   : > { %v2590_v26 = vadd.f32 %v2586_v8, %v2565_v43 }
 0x5bc   : > { %v2581_v22 = vpop.permute.xlu2 %2580 }
 0x5bd   : > { %v2587_v10 = vmul.f32 %v2583_v20, %v2581_v22 }
 0x5be   : > { %3261 = vset.pattern.permute.xlu1 %v5364_v39 }
 0x5bf   : > { %v2591_v62 = vadd.f32 %v2587_v10, %v2566_v21  ;;  %2799 = vperm.xlu1 %3261, %v1985_v50   ;;  %v2681_v21 = vpop.permute.xlu0 %2680 }
 0x5c0   : > { %v2687_v27 = vmul.f32 %v2683_v29, %v2681_v21 }
 0x5c1   : > { %2755 = vperm.xlu2 %3254, %v5087_v37   ;;  %v2598_v18 = vpop.permute.xlu1 %2597  ;;  %v1984_v37 = vld [vmem:[%s5203_s13] sm:$0xff] }
 0x5c2   : > { %v2610_v31 = vmul.f32 %v2608_v4, %v2598_v18 }
 0x5c4   : > { %v2614_v30 = vadd.f32 %v2610_v31, %v2589_v7 }
 0x5c5   : > { %v2602_v58 = vpop.permute.xlu2 %2601 }
 0x5c6   : > { %v2611_v12 = vmul.f32 %v2608_v4, %v2602_v58  ;;  %v2639_v63 = vadd.f32 %v2635_v19, %v2614_v30  ;;  %v2758_v58 = vperm.slane %v5122_v1, 6 }
 0x5c7   : > { %v2719_v17 = vpop.permute.xlu0 %2718 }
 0x5c8   : > { %v2615_v9 = vadd.f32 %v2611_v12, %v2590_v26  ;;  %v2734_v7 = vmul.f32 %v2733_v51, %v2719_v17 }
 0x5c9   : > { %3258 = vset.pattern.permute.xlu2 %v3376_v13  ;;  %v2606_v0 = vpop.permute.xlu1 %2605  ;;  %v2661_v13 = vmul.f32 %v2658_v53, %v2652_v48 }
 0x5ca   : > { %v2612_v23 = vmul.f32 %v2608_v4, %v2606_v0  ;;  %2772 = vperm.xlu2 %3258, %v5096_v44  }
 0x5cc   : > { %v2616_v56 = vadd.f32 %v2612_v23, %v2591_v62 }
 0x5ce   : > { %v2619_v14 = vpop.permute.xlu2 %2618 }
 0x5cf   : > { %v2634_v15 = vmul.f32 %v2633_v11, %v2619_v14  ;;  %v2748_v19 = vpop.permute.xlu0 %2747 }
 0x5d1   : > { %v2638_v33 = vadd.f32 %v2634_v15, %v2613_v45 }
 0x5d2   : > { %3260 = vset.pattern.permute.xlu2 %v5364_v39  ;;  %v2627_v25 = vpop.permute.xlu1 %2626 }
 0x5d3   : > { %v2636_v24 = vmul.f32 %v2633_v11, %v2627_v25  ;;  %2794 = vperm.xlu2 %3260, %v1984_v37  }
 0x5d5   : > { %v2640_v5 = vadd.f32 %v2636_v24, %v2615_v9 }
 0x5d6   : > { %v2631_v6 = vpop.permute.xlu2 %2630 }
 0x5d7   : > { %v2637_v44 = vmul.f32 %v2633_v11, %v2631_v6  ;;  %v2665_v32 = vadd.f32 %v2661_v13, %v2640_v5  ;;  %v2777_v24 = vpop.permute.xlu0 %2776  ;;  %v2783_v5 = vperm.slane %v5122_v1, 7 }
 0x5d9   : > { %v2641_v40 = vadd.f32 %v2637_v44, %v2616_v56  ;;  %v2786_v44 = vmul.f32 %v2783_v5, %v2777_v24 }
 0x5db   : > { %2804 = vperm.xlu2 %3260, %v1986_v28   ;;  %v2644_v3 = vpop.permute.xlu1 %2643 }
 0x5dc   : > { %v2659_v59 = vmul.f32 %v2658_v53, %v2644_v3 }
 0x5de   : > { %v2663_v52 = vadd.f32 %v2659_v59, %v2638_v33 }
 0x5df   : > { %v2648_v39 = vpop.permute.xlu2 %2647 }
 0x5e0   : > { %v2660_v47 = vmul.f32 %v2658_v53, %v2648_v39 }
 0x5e2   : > { %v2664_v61 = vadd.f32 %v2660_v47, %v2639_v63  ;;  %v2760_v63 = vmul.f32 %v2758_v58, %v2748_v19 }
 0x5e3   : > { %v2656_v16 = vpop.permute.xlu1 %2655 }
 0x5e4   : > { %v2662_v35 = vmul.f32 %v2658_v53, %v2656_v16 }
 0x5e6   : > { %v2666_v34 = vadd.f32 %v2662_v35, %v2641_v40 }
 0x5e8   : > { %v2669_v2 = vpop.permute.xlu2 %2668  ;;  %v2691_v38 = vadd.f32 %v2687_v27, %v2666_v34  ;;  %v2810_v27 = vpop.permute.xlu0 %2809 }
 0x5e9   : > { %v2684_v54 = vmul.f32 %v2683_v29, %v2669_v2 }
 0x5eb   : > { %v2688_v55 = vadd.f32 %v2684_v54, %v2663_v52 }
 0x5ec   : > { %v2673_v43 = vpop.permute.xlu1 %2672 }
 0x5ed   : > { %v2685_v20 = vmul.f32 %v2683_v29, %v2673_v43 }
 0x5ef   : > { %v2689_v46 = vadd.f32 %v2685_v20, %v2664_v61 }
 0x5f0   : > { %v2677_v42 = vpop.permute.xlu2 %2676 }
 0x5f1   : > { %v2686_v4 = vmul.f32 %v2683_v29, %v2677_v42 }
 0x5f3   : > { %v2690_v36 = vadd.f32 %v2686_v4, %v2665_v32 }
 0x5f5   : > { %v2694_v57 = vpop.permute.xlu1 %2693 }
 0x5f6   : > { %v2709_v45 = vmul.f32 %v2708_v49, %v2694_v57 }
 0x5f8   : > { %v2713_v60 = vadd.f32 %v2709_v45, %v2688_v55 }
 0x5f9   : > { %v2698_v8 = vpop.permute.xlu2 %2697 }
 0x5fa   : > { %v2710_v26 = vmul.f32 %v2708_v49, %v2698_v8  ;;  %v2738_v22 = vadd.f32 %v2734_v7, %v2713_v60 }
 0x5fc   : > { %v2714_v50 = vadd.f32 %v2710_v26, %v2689_v46 }
 0x5fd   : > { %v2702_v10 = vpop.permute.xlu1 %2701 }
 0x5fe   : > { %v2711_v62 = vmul.f32 %v2708_v49, %v2702_v10 }
 0x600   : > { %v2715_v41 = vadd.f32 %v2711_v62, %v2690_v36 }
 0x601   : > { %v2706_v18 = vpop.permute.xlu2 %2705 }
 0x602   : > { %v2712_v11 = vmul.f32 %v2708_v49, %v2706_v18 }
 0x604   : > { %v2716_v31 = vadd.f32 %v2712_v11, %v2691_v38 }
 0x606   : > { %v2723_v30 = vpop.permute.xlu1 %2722 }
 0x607   : > { %v2735_v12 = vmul.f32 %v2733_v51, %v2723_v30 }
 0x609   : > { %v2739_v9 = vadd.f32 %v2735_v12, %v2714_v50 }
 0x60a   : > { %v2727_v0 = vpop.permute.xlu2 %2726 }
 0x60b   : > { %v2736_v23 = vmul.f32 %v2733_v51, %v2727_v0  ;;  %v2764_v56 = vadd.f32 %v2760_v63, %v2739_v9 }
 0x60d   : > { %v2740_v14 = vadd.f32 %v2736_v23, %v2715_v41 }
 0x60e   : > { %v2731_v15 = vpop.permute.xlu1 %2730 }
 0x60f   : > { %v2737_v37 = vmul.f32 %v2733_v51, %v2731_v15 }
 0x611   : > { %v2741_v33 = vadd.f32 %v2737_v37, %v2716_v31 }
 0x613   : > { %v2744_v48 = vpop.permute.xlu2 %2743 }
 0x614   : > { %v2759_v25 = vmul.f32 %v2758_v58, %v2744_v48 }
 0x616   : > { %v2763_v53 = vadd.f32 %v2759_v25, %v2738_v22 }
 0x617   : > { %v2752_v13 = vpop.permute.xlu1 %2751 }
 0x618   : > { %v2761_v6 = vmul.f32 %v2758_v58, %v2752_v13 }
 0x61a   : > { %v2765_v32 = vadd.f32 %v2761_v6, %v2740_v14 }
 0x61b   : > { %v2756_v28 = vpop.permute.xlu2 %2755 }
 0x61c   : > { %v2762_v40 = vmul.f32 %v2758_v58, %v2756_v28  ;;  %v2790_v3 = vadd.f32 %v2786_v44, %v2765_v32 }
 0x61e   : > { %v2766_v59 = vadd.f32 %v2762_v40, %v2741_v33 }
 0x620   : > { %v2769_v52 = vpop.permute.xlu1 %2768 }
 0x621   : > { %v2784_v39 = vmul.f32 %v2783_v5, %v2769_v52 }
 0x623   : > { %v2788_v47 = vadd.f32 %v2784_v39, %v2763_v53 }
 0x624   : > { %v2773_v61 = vpop.permute.xlu2 %2772 }
 0x625   : > { %v2785_v21 = vmul.f32 %v2783_v5, %v2773_v61 }
 0x627   : > { %v2789_v16 = vadd.f32 %v2785_v21, %v2764_v56 }
 0x628   : > { %v2781_v29 = vpop.permute.xlu1 %2780 }
 0x629   : > { %v2787_v35 = vmul.f32 %v2783_v5, %v2781_v29 }
 0x62b   : > { %v2791_v1 = vadd.f32 %v2787_v35, %v2766_v59 }
 0x62d   : > { %v2795_v34 = vpop.permute.xlu2 %2794  ;;  %v2815_v2 = vadd.f32 %v2810_v27, %v2791_v1 }
 0x62e   : > { %v2812_v38 = vadd.f32 %v2795_v34, %v2788_v47 }
 0x62f   : > { %2819 = vst.msk [vmem:[%s460_s25 + $0x18] sm:$0xff] %vm1492_vm12, %v2815_v2 }
 0x630   : > { %2816 = vst.msk [vmem:[%s460_s25] sm:$0xff] %vm1492_vm12, %v2812_v38 }
 0x631   : > { %v2800_v54 = vpop.permute.xlu1 %2799 }
 0x632   : > { %v2813_v55 = vadd.f32 %v2800_v54, %v2789_v16 }
 0x634   : > { %2817 = vst.msk [vmem:[%s460_s25 + $0x8] sm:$0xff] %vm1492_vm12, %v2813_v55 }
 0x635   : > { %v2805_v43 = vpop.permute.xlu2 %2804 }
 0x636   : > { %v2814_v20 = vadd.f32 %v2805_v43, %v2790_v3 }
 0x638   : > { %2818 = vst.msk [vmem:[%s460_s25 + $0x10] sm:$0xff] %vm1492_vm12, %v2814_v20 }
 0x639   : > { %3295 = shalt.err (!%p3292_p3)
}
 0x63a   : > { %s3379_s2 = smov 128   ;;  %s5375_s25 = smov 8  }
 0x63b   : > { %2944 = dma.vmem_to_hbm [thread:$0]  (%p3493_p5), %s2834_s21, 512, %s2836_s0, %s2821_s17, %s3379_s2, %s3379_s2, %s5375_s25  }
 0x63c PF: > { %p2950_p4 = scmp.ge.s32.totalorder %s3330_s16, 2  ;;  %s2850_s26 = sand.u32 1, %s3318_s29  }
 0x63d   : > { %s2851_s18 = scalar_lea.sflag [#allocation5], %s2850_s26 }
 0x63e   : > { %p2947_p7 = pnand %p2950_p4, %p3497_p6 }
 0x640   : > { %p2948_p8 = pneg %p2947_p7 }
 0x642   : > { %3313 = dma.done.wait (%p2948_p8), %s2851_s18, 512  }
 0x643   : > { %3315 = vsyncadd (%p2948_p8), %s2851_s18, 4294966784  ;;  %p24_p9 = scmp.ge.s32.totalorder %s3480_s19, 4   ;;  %s5376_s29 = smov %s3322_s30 }
 0x644   : > { %s5377_s30 = smov %s3326_s15  ;;  %s5378_s15 = smov %s3491_s22 }
 0x645   : > { %s5379_s16 = smov %s3480_s19  ;;  %26 = sbr.rel (!%p24_p9) target bundleno = 8 (0x8), region = 111 }
 0x64a   :  { %2857 = vsyncpa [#allocation5], 1 }
 0x64b   :  { %2859 = vsyncpa [#allocation5 + $0x1], 1 }

</bundles_post_ra>
